<compile_context>
chip_gen: v7x
topology: tpu7x:2x2x1
jax: 0.10.0
libtpu: 0.0.40
codegen_flags: <defaults>
</compile_context>

<pallas_src>
import functools

import jax
import jax.numpy as jnp
from jax import lax
from jax.experimental import pallas as pl
from jax.experimental.pallas import tpu as pltpu


def grn_kernel(conv_ref, arc_in_ref, arc_out_ref, wi_ref, wh_ref, bias_ref,
               h0w_ref, c0_ref, out_ref, *, state_num, hidden_dim, turn_num,
               block_batch):
    H = hidden_dim
    T = turn_num
    Bb = block_batch
    N = Bb * T
    H4 = 4 * H
    H8 = 8 * H

    x = conv_ref[...]            # (N, In)      bf16
    arc_in = arc_in_ref[...]     # (Bb, T, T)   bf16
    arc_out = arc_out_ref[...]   # (Bb, T, T)   bf16
    w_i = wi_ref[...]            # (In, 8H)     bf16  [w_ip | w_is]
    w_h = wh_ref[...]            # (H, 8H)      bf16  [w_hp | w_hs]
    bias = bias_ref[...]         # (1, 8H)      f32   [b_ip+b_hp | b_is+b_hs]

    # Loop-invariant input contribution (+ all four biases), f32 accumulation.
    x_contrib = jnp.dot(x, w_i, preferred_element_type=jnp.float32)      # (N, 8H)
    x_contrib = x_contrib + bias

    c = jnp.broadcast_to(c0_ref[...], (N, H)).astype(jnp.float32)        # hoisted

    def gates_and_state(pre_suc, c):
        # pre_suc (N, 8H) f32 = [iofu_pre | iofu_suc] before the arc mixing.
        ps = pre_suc.astype(jnp.bfloat16).reshape(Bb, T, H8)
        # One batched contraction per arc: no per-batch loop, no sublane
        # concatenates; the 4H lane slices are 128-aligned (H % 128 == 0).
        iofu = jnp.einsum('btk,bkh->bth', arc_in, ps[:, :, :H4],
                          preferred_element_type=jnp.float32)
        iofu = iofu + jnp.einsum('btk,bkh->bth', arc_out, ps[:, :, H4:],
                                 preferred_element_type=jnp.float32)
        iofu = iofu.reshape(N, H4)
        # sigmoid(x) = 0.5*tanh(0.5*x) + 0.5 : one EUP push per element
        # (instead of exp + reciprocal, two pushes on the single EUP slot).
        gates = 0.5 * jnp.tanh(0.5 * iofu) + 0.5
        i_g = gates[:, 0 * H:1 * H]
        o_g = gates[:, 1 * H:2 * H]
        f_g = gates[:, 2 * H:3 * H]
        u_g = gates[:, 3 * H:4 * H]
        c_new = f_g * c + i_g * u_g
        h_new = o_g * jnp.tanh(c_new)
        return h_new, c_new

    # Step 0 peeled: h == broadcast(h0), so h @ W_h == broadcast(h0 @ W_h),
    # precomputed in the wrapper (saves one (N,H)x(H,8H) matmul per program).
    h, c = gates_and_state(x_contrib + h0w_ref[...], c)

    def step(carry):
        h, c = carry
        pre_suc = x_contrib + jnp.dot(h.astype(jnp.bfloat16), w_h,
                                      preferred_element_type=jnp.float32)
        return gates_and_state(pre_suc, c)

    remaining = state_num - 1
    if remaining > 0:
        if remaining <= 4:
            for _ in range(remaining):            # short: unroll
                h, c = step((h, c))
        else:                                     # long: bound live ranges
            h, c = lax.fori_loop(0, remaining, lambda _, hc: step(hc), (h, c))

    out_ref[...] = h.astype(out_ref.dtype)


def _round_up(x, m):
    return (x + m - 1) // m * m


def _tpu_vmem_and_cores():
    """(physical VMEM bytes per TensorCore, TensorCores per device)."""
    kind = ""
    try:
        kind = jax.devices()[0].device_kind.lower()
    except Exception:
        pass
    if "v7" in kind or "7x" in kind:
        return 64 << 20, 2
    if "v6" in kind or "trillium" in kind:
        return 128 << 20, 1
    if "v5 lite" in kind or "v5lite" in kind or "v5e" in kind:
        return 128 << 20, 1
    # Unknown generation: be conservative (v7x-like).
    return 64 << 20, 2


def _vmem_bytes_estimate(Bb, T, In, H, out_itemsize):
    """Rough per-program VMEM live set, padded to (8,128) tiles."""
    N = Bb * T
    H4, H8 = 4 * H, 8 * H
    In_p = _round_up(max(In, 1), 128)
    T_lane = _round_up(T, 128)
    T_sub = _round_up(T, 8)
    b = 0
    # Grid-varying operands (double-buffered by the pipeline).
    b += 2 * N * In_p * 2                      # conv block, bf16
    b += 2 * 2 * Bb * T_sub * T_lane * 2       # arc_in + arc_out blocks, bf16
    b += 2 * N * H * out_itemsize              # output block
    # Loop-invariant operands (single-buffered via pl.Buffered(1)).
    b += (In_p + H) * H8 * 2 + 2 * H8 * 4 + H * 4
    # Intermediates live inside one recurrence step.
    b += N * H8 * 4                            # x_contrib (f32)
    b += N * H8 * 4                            # pre_suc   (f32)
    b += N * H8 * 2                            # ps        (bf16)
    b += N * H4 * 4                            # iofu      (f32)
    b += N * H4 * 4                            # gates     (f32)
    b += 2 * N * H * 4                         # h, c      (f32)
    return b


def _pick_block_batch(B, T, In, H, out_itemsize, vmem_budget, num_cores):
    """Largest divisor of B whose working set fits the VMEM budget.  Keep at
    least 2 grid slices only on multi-TensorCore chips (v7x); on v5e/v6e a
    grid of 1 is fine and maximizes MXU row counts."""
    best = 1
    for cand in range(1, B + 1):
        if B % cand:
            continue
        if num_cores >= 2 and B >= 2 and (B // cand) < 2:
            continue
        if _vmem_bytes_estimate(cand, T, In, H, out_itemsize) > vmem_budget:
            continue
        best = cand
    return best


def grn_forward(conv_rep, arc_in, arc_out, params, *, state_num, hidden_dim,
                block_batch=None):
    B, T, In = conv_rep.shape
    H = hidden_dim
    H8 = 8 * H

    # Guard the layout assumptions (lane-aligned gate slices, sublane-aligned
    # per-batch row packing).
    assert H % 128 == 0, "hidden_dim must be a multiple of 128"
    assert T % 8 == 0, "turn_num must be a multiple of 8"

    (w_ip, b_ip, w_is, b_is, w_hp, b_hp, w_hs, b_hs, h0, c0) = params

    if state_num <= 0:
        return jnp.broadcast_to(h0, (B, T, H)).astype(conv_rep.dtype)

    vmem_phys, num_cores = _tpu_vmem_and_cores()
    vmem_limit = int(0.75 * vmem_phys)            # explicit scoped-VMEM limit
    out_itemsize = jnp.dtype(conv_rep.dtype).itemsize

    if block_batch is None:
        block_batch = _pick_block_batch(B, T, In, H, out_itemsize,
                                        int(0.8 * vmem_limit), num_cores)
    assert B % block_batch == 0, "block_batch must divide the batch size"
    grid = (B // block_batch,)
    N = block_batch * T

    # ---- wrapper-side packing / casting (layout plumbing, not compute) -----
    conv_flat = conv_rep.reshape(B * T, In).astype(jnp.bfloat16)
    arc_in_b = arc_in.astype(jnp.bfloat16)        # no (B,T,2T) HBM concat
    arc_out_b = arc_out.astype(jnp.bfloat16)
    w_i = jnp.concatenate([w_ip, w_is], axis=1).astype(jnp.bfloat16)    # (In, 8H)
    w_h = jnp.concatenate([w_hp, w_hs], axis=1).astype(jnp.bfloat16)    # (H, 8H)
    bias = jnp.concatenate([b_ip + b_hp, b_is + b_hs],
                           axis=0).reshape(1, H8).astype(jnp.float32)
    # Peeled step-0 hidden contribution: h0 @ [w_hp | w_hs] (no biases here;
    # they are already folded into `bias`).
    h0w = (h0.reshape(1, H) @ jnp.concatenate([w_hp, w_hs], axis=1)
           ).astype(jnp.float32)
    c0_2d = c0.reshape(1, H).astype(jnp.float32)

    kernel = functools.partial(grn_kernel, state_num=state_num, hidden_dim=H,
                               turn_num=T, block_batch=block_batch)

    def build_call(single_buffer_invariants):
        inv_kwargs = ({"pipeline_mode": pl.Buffered(1)}
                      if single_buffer_invariants else {})

        def inv(shape):
            return pl.BlockSpec(shape, lambda g: (0,) * len(shape),
                                **inv_kwargs)

        return pl.pallas_call(
            kernel,
            out_shape=jax.ShapeDtypeStruct((B * T, H), conv_rep.dtype),
            grid_spec=pltpu.PrefetchScalarGridSpec(
                num_scalar_prefetch=0,
                grid=grid,
                in_specs=[
                    pl.BlockSpec((N, In), lambda g: (g, 0)),                 # conv
                    pl.BlockSpec((block_batch, T, T), lambda g: (g, 0, 0)),  # arc_in
                    pl.BlockSpec((block_batch, T, T), lambda g: (g, 0, 0)),  # arc_out
                    inv((In, H8)),                                           # W_i
                    inv((H, H8)),                                            # W_h
                    inv((1, H8)),                                            # bias
                    inv((1, H8)),                                            # h0 @ W_h
                    inv((1, H)),                                             # c0
                ],
                out_specs=pl.BlockSpec((N, H), lambda g: (g, 0)),
            ),
            compiler_params=pltpu.CompilerParams(
                dimension_semantics=("parallel",),
                vmem_limit_bytes=vmem_limit),
        )

    args = (conv_flat, arc_in_b, arc_out_b, w_i, w_h, bias, h0w, c0_2d)
    try:
        out_flat = build_call(True)(*args)
    except Exception:
        # TODO(synk): drop fallback once pl.Buffered(1) on loop-invariant
        # operands is confirmed supported on all deployed jax versions.
        out_flat = build_call(False)(*args)

    return out_flat.reshape(B, T, H)


def grn_reference(conv_rep, arc_in, arc_out, params, *, state_num, hidden_dim):
    """Plain-JAX f32 re-implementation of the PyTorch forward (verification)."""
    (w_ip, b_ip, w_is, b_is, w_hp, b_hp, w_hs, b_hs, h0, c0) = params
    B, T, _ = conv_rep.shape
    H = hidden_dim
    h = jnp.broadcast_to(h0, (B, T, H))
    c = jnp.broadcast_to(c0, (B, T, H))
    for _ in range(state_num):
        iofu_pre = conv_rep @ w_ip + b_ip + h @ w_hp + b_hp
        iofu_suc = conv_rep @ w_is + b_is + h @ w_hs + b_hs
        iofu = jnp.einsum('bij,bjk->bik', arc_in, iofu_pre) \
             + jnp.einsum('bij,bjk->bik', arc_out, iofu_suc)
        i_g, o_g, f_g, u_g = jnp.split(iofu, 4, axis=-1)
        i_g, o_g, f_g, u_g = map(jax.nn.sigmoid, (i_g, o_g, f_g, u_g))
        c = f_g * c + i_g * u_g
        h = o_g * jnp.tanh(c)
    return h


if __name__ == "__main__":
    # Small deterministic config; H = 128 keeps the gate slices lane-aligned.
    B, T = 4, 8
    INPUT_DIM, HIDDEN_DIM, STATE_NUM = 16, 128, 3
    H4 = 4 * HIDDEN_DIM

    key = jax.random.PRNGKey(0)
    keys = jax.random.split(key, 16)

    # Synthetic parameters (PyTorch Linear weights stored transposed: (in, out)).
    w_ip = jax.random.normal(keys[0], (INPUT_DIM, H4), jnp.float32) * 0.1
    b_ip = jax.random.normal(keys[1], (H4,), jnp.float32) * 0.1
    w_is = jax.random.normal(keys[2], (INPUT_DIM, H4), jnp.float32) * 0.1
    b_is = jax.random.normal(keys[3], (H4,), jnp.float32) * 0.1
    w_hp = jax.random.normal(keys[4], (HIDDEN_DIM, H4), jnp.float32) * 0.1
    b_hp = jax.random.normal(keys[5], (H4,), jnp.float32) * 0.1
    w_hs = jax.random.normal(keys[6], (HIDDEN_DIM, H4), jnp.float32) * 0.1
    b_hs = jax.random.normal(keys[7], (H4,), jnp.float32) * 0.1
    h0 = jax.random.normal(keys[8], (HIDDEN_DIM,), jnp.float32)
    c0 = jax.random.normal(keys[9], (HIDDEN_DIM,), jnp.float32)
    params = (w_ip, b_ip, w_is, b_is, w_hp, b_hp, w_hs, b_hs, h0, c0)

    # Inputs.
    conv_rep = jax.random.normal(keys[10], (B, T, INPUT_DIM), jnp.float32)
    arc_in = jax.random.normal(keys[11], (B, T, T), jnp.float32) * 0.2
    arc_out = jax.random.normal(keys[12], (B, T, T), jnp.float32) * 0.2

    out = grn_forward(conv_rep, arc_in, arc_out, params,
                      state_num=STATE_NUM, hidden_dim=HIDDEN_DIM)
    out = jax.block_until_ready(out)

    ref = grn_reference(conv_rep, arc_in, arc_out, params,
                        state_num=STATE_NUM, hidden_dim=HIDDEN_DIM)
    assert out.shape == (B, T, HIDDEN_DIM)
    # bf16 MXU operands in the recurrence -> relaxed tolerance.
    assert jnp.allclose(out, ref, atol=4e-2, rtol=4e-2), "mismatch vs reference"

    print("KERNEL_OK")
</pallas_src>

<mosaic_0001>
module attributes {stable_mosaic.version = 11 : i64} {
  func.func @grn_kernel(%arg0: i32, %arg1: memref<16x16xbf16, #tpu.memory_space<vmem>>, %arg2: memref<2x8x8xbf16, #tpu.memory_space<vmem>>, %arg3: memref<2x8x8xbf16, #tpu.memory_space<vmem>>, %arg4: memref<16x1024xbf16, #tpu.memory_space<vmem>>, %arg5: memref<128x1024xbf16, #tpu.memory_space<vmem>>, %arg6: memref<1x1024xf32, #tpu.memory_space<vmem>>, %arg7: memref<1x1024xf32, #tpu.memory_space<vmem>>, %arg8: memref<1x128xf32, #tpu.memory_space<vmem>>, %arg9: memref<16x128xf32, #tpu.memory_space<vmem>>) attributes {dimension_semantics = [#tpu.dimension_semantics<parallel>], iteration_bounds = array<i64: 2>, scalar_prefetch = 0 : i64, scratch_operands = 0 : i64, tpu.core_type = #tpu.core_type<tc>, window_params = [{transform_indices = @transform_0, window_bounds = array<i64: 16, 16>}, {transform_indices = @transform_1, window_bounds = array<i64: 2, 8, 8>}, {transform_indices = @transform_2, window_bounds = array<i64: 2, 8, 8>}, {pipeline_mode = #tpu.pipeline_mode<synchronous>, transform_indices = @transform_3, window_bounds = array<i64: 16, 1024>}, {pipeline_mode = #tpu.pipeline_mode<synchronous>, transform_indices = @transform_4, window_bounds = array<i64: 128, 1024>}, {pipeline_mode = #tpu.pipeline_mode<synchronous>, transform_indices = @transform_5, window_bounds = array<i64: 1, 1024>}, {pipeline_mode = #tpu.pipeline_mode<synchronous>, transform_indices = @transform_6, window_bounds = array<i64: 1, 1024>}, {pipeline_mode = #tpu.pipeline_mode<synchronous>, transform_indices = @transform_7, window_bounds = array<i64: 1, 128>}, {transform_indices = @transform_8, window_bounds = array<i64: 16, 128>}]} {
    %c0 = arith.constant 0 : index
    %c0_0 = arith.constant 0 : index
    %0 = vector.load %arg1[%c0, %c0_0] : memref<16x16xbf16, #tpu.memory_space<vmem>>, vector<16x16xbf16>
    %c0_1 = arith.constant 0 : index
    %c0_2 = arith.constant 0 : index
    %c0_3 = arith.constant 0 : index
    %1 = vector.load %arg2[%c0_1, %c0_2, %c0_3] : memref<2x8x8xbf16, #tpu.memory_space<vmem>>, vector<2x8x8xbf16>
    %c0_4 = arith.constant 0 : index
    %c0_5 = arith.constant 0 : index
    %c0_6 = arith.constant 0 : index
    %2 = vector.load %arg3[%c0_4, %c0_5, %c0_6] : memref<2x8x8xbf16, #tpu.memory_space<vmem>>, vector<2x8x8xbf16>
    %c0_7 = arith.constant 0 : index
    %c0_8 = arith.constant 0 : index
    %3 = vector.load %arg4[%c0_7, %c0_8] : memref<16x1024xbf16, #tpu.memory_space<vmem>>, vector<16x1024xbf16>
    %c0_9 = arith.constant 0 : index
    %c0_10 = arith.constant 0 : index
    %4 = vector.load %arg5[%c0_9, %c0_10] : memref<128x1024xbf16, #tpu.memory_space<vmem>>, vector<128x1024xbf16>
    %c0_11 = arith.constant 0 : index
    %c0_12 = arith.constant 0 : index
    %5 = vector.load %arg6[%c0_11, %c0_12] : memref<1x1024xf32, #tpu.memory_space<vmem>>, vector<1x1024xf32>
    %cst = arith.constant dense<0.000000e+00> : vector<16x1024xf32>
    %6 = tpu.matmul %0, %3, %cst {dimension_numbers = #tpu.dot_dimension_numbers<[1], [0], [0], [1], [0, 0, 1, 1], [], []>} : vector<16x16xbf16>, vector<16x1024xbf16>, vector<16x1024xf32> -> vector<16x1024xf32>
    %7 = vector.broadcast %5 : vector<1x1024xf32> to vector<16x1024xf32>
    %8 = arith.addf %6, %7 : vector<16x1024xf32>
    %c0_13 = arith.constant 0 : index
    %c0_14 = arith.constant 0 : index
    %9 = vector.load %arg8[%c0_13, %c0_14] : memref<1x128xf32, #tpu.memory_space<vmem>>, vector<1x128xf32>
    %10 = vector.shape_cast %9 : vector<1x128xf32> to vector<1x128xf32>
    %11 = vector.broadcast %10 : vector<1x128xf32> to vector<16x128xf32>
    %c0_15 = arith.constant 0 : index
    %c0_16 = arith.constant 0 : index
    %12 = vector.load %arg7[%c0_15, %c0_16] : memref<1x1024xf32, #tpu.memory_space<vmem>>, vector<1x1024xf32>
    %13 = vector.broadcast %12 : vector<1x1024xf32> to vector<16x1024xf32>
    %14 = arith.addf %8, %13 : vector<16x1024xf32>
    %15 = arith.truncf %14 : vector<16x1024xf32> to vector<16x1024xbf16>
    %16 = vector.shape_cast %15 : vector<16x1024xbf16> to vector<2x8x1024xbf16>
    %17 = vector.extract_strided_slice %16 {offsets = [0, 0, 0], sizes = [2, 8, 512], strides = [1, 1, 1]} : vector<2x8x1024xbf16> to vector<2x8x512xbf16>
    "tpu.trace_start"() <{level = 10 : i32, message = "btk,bkh->bth"}> : () -> ()
    %cst_17 = arith.constant dense<0.000000e+00> : vector<2x8x512xf32>
    %18 = tpu.matmul %1, %17, %cst_17 {dimension_numbers = #tpu.dot_dimension_numbers<[2], [1], [1], [2], [0, 0, 0, 1, 1, 2], [0], [0]>} : vector<2x8x8xbf16>, vector<2x8x512xbf16>, vector<2x8x512xf32> -> vector<2x8x512xf32>
    "tpu.trace_stop"() : () -> ()
    %19 = vector.extract_strided_slice %16 {offsets = [0, 0, 512], sizes = [2, 8, 512], strides = [1, 1, 1]} : vector<2x8x1024xbf16> to vector<2x8x512xbf16>
    "tpu.trace_start"() <{level = 10 : i32, message = "btk,bkh->bth"}> : () -> ()
    %cst_18 = arith.constant dense<0.000000e+00> : vector<2x8x512xf32>
    %20 = tpu.matmul %2, %19, %cst_18 {dimension_numbers = #tpu.dot_dimension_numbers<[2], [1], [1], [2], [0, 0, 0, 1, 1, 2], [0], [0]>} : vector<2x8x8xbf16>, vector<2x8x512xbf16>, vector<2x8x512xf32> -> vector<2x8x512xf32>
    "tpu.trace_stop"() : () -> ()
    %21 = arith.addf %18, %20 : vector<2x8x512xf32>
    %22 = vector.shape_cast %21 : vector<2x8x512xf32> to vector<16x512xf32>
    %cst_19 = arith.constant 5.000000e-01 : f32
    %23 = vector.broadcast %cst_19 : f32 to vector<16x512xf32>
    %24 = arith.mulf %23, %22 : vector<16x512xf32>
    %25 = math.tanh %24 : vector<16x512xf32>
    %cst_20 = arith.constant 5.000000e-01 : f32
    %26 = vector.broadcast %cst_20 : f32 to vector<16x512xf32>
    %27 = arith.mulf %26, %25 : vector<16x512xf32>
    %cst_21 = arith.constant 5.000000e-01 : f32
    %28 = vector.broadcast %cst_21 : f32 to vector<16x512xf32>
    %29 = arith.addf %27, %28 : vector<16x512xf32>
    %30 = vector.extract_strided_slice %29 {offsets = [0, 0], sizes = [16, 128], strides = [1, 1]} : vector<16x512xf32> to vector<16x128xf32>
    %31 = vector.extract_strided_slice %29 {offsets = [0, 128], sizes = [16, 128], strides = [1, 1]} : vector<16x512xf32> to vector<16x128xf32>
    %32 = vector.extract_strided_slice %29 {offsets = [0, 256], sizes = [16, 128], strides = [1, 1]} : vector<16x512xf32> to vector<16x128xf32>
    %33 = vector.extract_strided_slice %29 {offsets = [0, 384], sizes = [16, 128], strides = [1, 1]} : vector<16x512xf32> to vector<16x128xf32>
    %34 = arith.mulf %32, %11 : vector<16x128xf32>
    %35 = arith.mulf %30, %33 : vector<16x128xf32>
    %36 = arith.addf %34, %35 : vector<16x128xf32>
    %37 = math.tanh %36 : vector<16x128xf32>
    %38 = arith.mulf %31, %37 : vector<16x128xf32>
    %39 = arith.truncf %38 : vector<16x128xf32> to vector<16x128xbf16>
    %cst_22 = arith.constant dense<0.000000e+00> : vector<16x1024xf32>
    %40 = tpu.matmul %39, %4, %cst_22 {dimension_numbers = #tpu.dot_dimension_numbers<[1], [0], [0], [1], [0, 0, 1, 1], [], []>} : vector<16x128xbf16>, vector<128x1024xbf16>, vector<16x1024xf32> -> vector<16x1024xf32>
    %41 = arith.addf %8, %40 : vector<16x1024xf32>
    %42 = arith.truncf %41 : vector<16x1024xf32> to vector<16x1024xbf16>
    %43 = vector.shape_cast %42 : vector<16x1024xbf16> to vector<2x8x1024xbf16>
    %44 = vector.extract_strided_slice %43 {offsets = [0, 0, 0], sizes = [2, 8, 512], strides = [1, 1, 1]} : vector<2x8x1024xbf16> to vector<2x8x512xbf16>
    "tpu.trace_start"() <{level = 10 : i32, message = "btk,bkh->bth"}> : () -> ()
    %cst_23 = arith.constant dense<0.000000e+00> : vector<2x8x512xf32>
    %45 = tpu.matmul %1, %44, %cst_23 {dimension_numbers = #tpu.dot_dimension_numbers<[2], [1], [1], [2], [0, 0, 0, 1, 1, 2], [0], [0]>} : vector<2x8x8xbf16>, vector<2x8x512xbf16>, vector<2x8x512xf32> -> vector<2x8x512xf32>
    "tpu.trace_stop"() : () -> ()
    %46 = vector.extract_strided_slice %43 {offsets = [0, 0, 512], sizes = [2, 8, 512], strides = [1, 1, 1]} : vector<2x8x1024xbf16> to vector<2x8x512xbf16>
    "tpu.trace_start"() <{level = 10 : i32, message = "btk,bkh->bth"}> : () -> ()
    %cst_24 = arith.constant dense<0.000000e+00> : vector<2x8x512xf32>
    %47 = tpu.matmul %2, %46, %cst_24 {dimension_numbers = #tpu.dot_dimension_numbers<[2], [1], [1], [2], [0, 0, 0, 1, 1, 2], [0], [0]>} : vector<2x8x8xbf16>, vector<2x8x512xbf16>, vector<2x8x512xf32> -> vector<2x8x512xf32>
    "tpu.trace_stop"() : () -> ()
    %48 = arith.addf %45, %47 : vector<2x8x512xf32>
    %49 = vector.shape_cast %48 : vector<2x8x512xf32> to vector<16x512xf32>
    %cst_25 = arith.constant 5.000000e-01 : f32
    %50 = vector.broadcast %cst_25 : f32 to vector<16x512xf32>
    %51 = arith.mulf %50, %49 : vector<16x512xf32>
    %52 = math.tanh %51 : vector<16x512xf32>
    %cst_26 = arith.constant 5.000000e-01 : f32
    %53 = vector.broadcast %cst_26 : f32 to vector<16x512xf32>
    %54 = arith.mulf %53, %52 : vector<16x512xf32>
    %cst_27 = arith.constant 5.000000e-01 : f32
    %55 = vector.broadcast %cst_27 : f32 to vector<16x512xf32>
    %56 = arith.addf %54, %55 : vector<16x512xf32>
    %57 = vector.extract_strided_slice %56 {offsets = [0, 0], sizes = [16, 128], strides = [1, 1]} : vector<16x512xf32> to vector<16x128xf32>
    %58 = vector.extract_strided_slice %56 {offsets = [0, 128], sizes = [16, 128], strides = [1, 1]} : vector<16x512xf32> to vector<16x128xf32>
    %59 = vector.extract_strided_slice %56 {offsets = [0, 256], sizes = [16, 128], strides = [1, 1]} : vector<16x512xf32> to vector<16x128xf32>
    %60 = vector.extract_strided_slice %56 {offsets = [0, 384], sizes = [16, 128], strides = [1, 1]} : vector<16x512xf32> to vector<16x128xf32>
    %61 = arith.mulf %59, %36 : vector<16x128xf32>
    %62 = arith.mulf %57, %60 : vector<16x128xf32>
    %63 = arith.addf %61, %62 : vector<16x128xf32>
    %64 = math.tanh %63 : vector<16x128xf32>
    %65 = arith.mulf %58, %64 : vector<16x128xf32>
    %66 = arith.truncf %65 : vector<16x128xf32> to vector<16x128xbf16>
    %cst_28 = arith.constant dense<0.000000e+00> : vector<16x1024xf32>
    %67 = tpu.matmul %66, %4, %cst_28 {dimension_numbers = #tpu.dot_dimension_numbers<[1], [0], [0], [1], [0, 0, 1, 1], [], []>} : vector<16x128xbf16>, vector<128x1024xbf16>, vector<16x1024xf32> -> vector<16x1024xf32>
    %68 = arith.addf %8, %67 : vector<16x1024xf32>
    %69 = arith.truncf %68 : vector<16x1024xf32> to vector<16x1024xbf16>
    %70 = vector.shape_cast %69 : vector<16x1024xbf16> to vector<2x8x1024xbf16>
    %71 = vector.extract_strided_slice %70 {offsets = [0, 0, 0], sizes = [2, 8, 512], strides = [1, 1, 1]} : vector<2x8x1024xbf16> to vector<2x8x512xbf16>
    "tpu.trace_start"() <{level = 10 : i32, message = "btk,bkh->bth"}> : () -> ()
    %cst_29 = arith.constant dense<0.000000e+00> : vector<2x8x512xf32>
    %72 = tpu.matmul %1, %71, %cst_29 {dimension_numbers = #tpu.dot_dimension_numbers<[2], [1], [1], [2], [0, 0, 0, 1, 1, 2], [0], [0]>} : vector<2x8x8xbf16>, vector<2x8x512xbf16>, vector<2x8x512xf32> -> vector<2x8x512xf32>
    "tpu.trace_stop"() : () -> ()
    %73 = vector.extract_strided_slice %70 {offsets = [0, 0, 512], sizes = [2, 8, 512], strides = [1, 1, 1]} : vector<2x8x1024xbf16> to vector<2x8x512xbf16>
    "tpu.trace_start"() <{level = 10 : i32, message = "btk,bkh->bth"}> : () -> ()
    %cst_30 = arith.constant dense<0.000000e+00> : vector<2x8x512xf32>
    %74 = tpu.matmul %2, %73, %cst_30 {dimension_numbers = #tpu.dot_dimension_numbers<[2], [1], [1], [2], [0, 0, 0, 1, 1, 2], [0], [0]>} : vector<2x8x8xbf16>, vector<2x8x512xbf16>, vector<2x8x512xf32> -> vector<2x8x512xf32>
    "tpu.trace_stop"() : () -> ()
    %75 = arith.addf %72, %74 : vector<2x8x512xf32>
    %76 = vector.shape_cast %75 : vector<2x8x512xf32> to vector<16x512xf32>
    %cst_31 = arith.constant 5.000000e-01 : f32
    %77 = vector.broadcast %cst_31 : f32 to vector<16x512xf32>
    %78 = arith.mulf %77, %76 : vector<16x512xf32>
    %79 = math.tanh %78 : vector<16x512xf32>
    %cst_32 = arith.constant 5.000000e-01 : f32
    %80 = vector.broadcast %cst_32 : f32 to vector<16x512xf32>
    %81 = arith.mulf %80, %79 : vector<16x512xf32>
    %cst_33 = arith.constant 5.000000e-01 : f32
    %82 = vector.broadcast %cst_33 : f32 to vector<16x512xf32>
    %83 = arith.addf %81, %82 : vector<16x512xf32>
    %84 = vector.extract_strided_slice %83 {offsets = [0, 0], sizes = [16, 128], strides = [1, 1]} : vector<16x512xf32> to vector<16x128xf32>
    %85 = vector.extract_strided_slice %83 {offsets = [0, 128], sizes = [16, 128], strides = [1, 1]} : vector<16x512xf32> to vector<16x128xf32>
    %86 = vector.extract_strided_slice %83 {offsets = [0, 256], sizes = [16, 128], strides = [1, 1]} : vector<16x512xf32> to vector<16x128xf32>
    %87 = vector.extract_strided_slice %83 {offsets = [0, 384], sizes = [16, 128], strides = [1, 1]} : vector<16x512xf32> to vector<16x128xf32>
    %88 = arith.mulf %86, %63 : vector<16x128xf32>
    %89 = arith.mulf %84, %87 : vector<16x128xf32>
    %90 = arith.addf %88, %89 : vector<16x128xf32>
    %91 = math.tanh %90 : vector<16x128xf32>
    %92 = arith.mulf %85, %91 : vector<16x128xf32>
    %c0_34 = arith.constant 0 : index
    %c0_35 = arith.constant 0 : index
    %93 = vector.load %arg9[%c0_34, %c0_35] : memref<16x128xf32, #tpu.memory_space<vmem>>, vector<16x128xf32>
    tpu.vector_store %arg9[%c0_34, %c0_35], %92 {strides = array<i32>} : memref<16x128xf32, #tpu.memory_space<vmem>>, vector<16x128xf32>,
    return
  }
  func.func @transform_0(%arg0: i32) -> (i32, i32) {
    %c0_i32 = arith.constant 0 : i32
    %c0_i32_0 = arith.constant 0 : i32
    return %arg0, %c0_i32 : i32, i32
  }
  func.func @transform_1(%arg0: i32) -> (i32, i32, i32) {
    %c0_i32 = arith.constant 0 : i32
    %c0_i32_0 = arith.constant 0 : i32
    %c0_i32_1 = arith.constant 0 : i32
    return %arg0, %c0_i32, %c0_i32_0 : i32, i32, i32
  }
  func.func @transform_2(%arg0: i32) -> (i32, i32, i32) {
    %c0_i32 = arith.constant 0 : i32
    %c0_i32_0 = arith.constant 0 : i32
    %c0_i32_1 = arith.constant 0 : i32
    return %arg0, %c0_i32, %c0_i32_0 : i32, i32, i32
  }
  func.func @transform_3(%arg0: i32) -> (i32, i32) {
    %c0_i32 = arith.constant 0 : i32
    %c0_i32_0 = arith.constant 0 : i32
    %c0_i32_1 = arith.constant 0 : i32
    return %c0_i32, %c0_i32_0 : i32, i32
  }
  func.func @transform_4(%arg0: i32) -> (i32, i32) {
    %c0_i32 = arith.constant 0 : i32
    %c0_i32_0 = arith.constant 0 : i32
    %c0_i32_1 = arith.constant 0 : i32
    return %c0_i32, %c0_i32_0 : i32, i32
  }
  func.func @transform_5(%arg0: i32) -> (i32, i32) {
    %c0_i32 = arith.constant 0 : i32
    %c0_i32_0 = arith.constant 0 : i32
    %c0_i32_1 = arith.constant 0 : i32
    return %c0_i32, %c0_i32_0 : i32, i32
  }
  func.func @transform_6(%arg0: i32) -> (i32, i32) {
    %c0_i32 = arith.constant 0 : i32
    %c0_i32_0 = arith.constant 0 : i32
    %c0_i32_1 = arith.constant 0 : i32
    return %c0_i32, %c0_i32_0 : i32, i32
  }
  func.func @transform_7(%arg0: i32) -> (i32, i32) {
    %c0_i32 = arith.constant 0 : i32
    %c0_i32_0 = arith.constant 0 : i32
    %c0_i32_1 = arith.constant 0 : i32
    return %c0_i32, %c0_i32_0 : i32, i32
  }
  func.func @transform_8(%arg0: i32) -> (i32, i32) {
    %c0_i32 = arith.constant 0 : i32
    %c0_i32_0 = arith.constant 0 : i32
    return %arg0, %c0_i32 : i32, i32
  }
}

module attributes {stable_mosaic.version = 11 : i64} {
  func.func @grn_kernel(%arg0: i32, %arg1: memref<16x16xbf16, #tpu.memory_space<vmem>>, %arg2: memref<2x8x8xbf16, #tpu.memory_space<vmem>>, %arg3: memref<2x8x8xbf16, #tpu.memory_space<vmem>>, %arg4: memref<16x1024xbf16, #tpu.memory_space<vmem>>, %arg5: memref<128x1024xbf16, #tpu.memory_space<vmem>>, %arg6: memref<1x1024xf32, #tpu.memory_space<vmem>>, %arg7: memref<1x1024xf32, #tpu.memory_space<vmem>>, %arg8: memref<1x128xf32, #tpu.memory_space<vmem>>, %arg9: memref<16x128xf32, #tpu.memory_space<vmem>>) attributes {dimension_semantics = [#tpu.dimension_semantics<parallel>], iteration_bounds = array<i64: 2>, scalar_prefetch = 0 : i64, scratch_operands = 0 : i64, tpu.core_type = #tpu.core_type<tc>, window_params = [{transform_indices = @transform_0, window_bounds = array<i64: 16, 16>}, {transform_indices = @transform_1, window_bounds = array<i64: 2, 8, 8>}, {transform_indices = @transform_2, window_bounds = array<i64: 2, 8, 8>}, {pipeline_mode = #tpu.pipeline_mode<synchronous>, transform_indices = @transform_3, window_bounds = array<i64: 16, 1024>}, {pipeline_mode = #tpu.pipeline_mode<synchronous>, transform_indices = @transform_4, window_bounds = array<i64: 128, 1024>}, {pipeline_mode = #tpu.pipeline_mode<synchronous>, transform_indices = @transform_5, window_bounds = array<i64: 1, 1024>}, {pipeline_mode = #tpu.pipeline_mode<synchronous>, transform_indices = @transform_6, window_bounds = array<i64: 1, 1024>}, {pipeline_mode = #tpu.pipeline_mode<synchronous>, transform_indices = @transform_7, window_bounds = array<i64: 1, 128>}, {transform_indices = @transform_8, window_bounds = array<i64: 16, 128>}]} {
    %c0 = arith.constant 0 : index
    %c0_0 = arith.constant 0 : index
    %0 = vector.load %arg1[%c0, %c0_0] : memref<16x16xbf16, #tpu.memory_space<vmem>>, vector<16x16xbf16>
    %c0_1 = arith.constant 0 : index
    %c0_2 = arith.constant 0 : index
    %c0_3 = arith.constant 0 : index
    %1 = vector.load %arg2[%c0_1, %c0_2, %c0_3] : memref<2x8x8xbf16, #tpu.memory_space<vmem>>, vector<2x8x8xbf16>
    %c0_4 = arith.constant 0 : index
    %c0_5 = arith.constant 0 : index
    %c0_6 = arith.constant 0 : index
    %2 = vector.load %arg3[%c0_4, %c0_5, %c0_6] : memref<2x8x8xbf16, #tpu.memory_space<vmem>>, vector<2x8x8xbf16>
    %c0_7 = arith.constant 0 : index
    %c0_8 = arith.constant 0 : index
    %3 = vector.load %arg4[%c0_7, %c0_8] : memref<16x1024xbf16, #tpu.memory_space<vmem>>, vector<16x1024xbf16>
    %c0_9 = arith.constant 0 : index
    %c0_10 = arith.constant 0 : index
    %4 = vector.load %arg5[%c0_9, %c0_10] : memref<128x1024xbf16, #tpu.memory_space<vmem>>, vector<128x1024xbf16>
    %c0_11 = arith.constant 0 : index
    %c0_12 = arith.constant 0 : index
    %5 = vector.load %arg6[%c0_11, %c0_12] : memref<1x1024xf32, #tpu.memory_space<vmem>>, vector<1x1024xf32>
    %cst = arith.constant dense<0.000000e+00> : vector<16x1024xf32>
    %6 = tpu.matmul %0, %3, %cst {dimension_numbers = #tpu.dot_dimension_numbers<[1], [0], [0], [1], [0, 0, 1, 1], [], []>} : vector<16x16xbf16>, vector<16x1024xbf16>, vector<16x1024xf32> -> vector<16x1024xf32>
    %7 = vector.broadcast %5 : vector<1x1024xf32> to vector<16x1024xf32>
    %8 = arith.addf %6, %7 : vector<16x1024xf32>
    %c0_13 = arith.constant 0 : index
    %c0_14 = arith.constant 0 : index
    %9 = vector.load %arg8[%c0_13, %c0_14] : memref<1x128xf32, #tpu.memory_space<vmem>>, vector<1x128xf32>
    %10 = vector.shape_cast %9 : vector<1x128xf32> to vector<1x128xf32>
    %11 = vector.broadcast %10 : vector<1x128xf32> to vector<16x128xf32>
    %c0_15 = arith.constant 0 : index
    %c0_16 = arith.constant 0 : index
    %12 = vector.load %arg7[%c0_15, %c0_16] : memref<1x1024xf32, #tpu.memory_space<vmem>>, vector<1x1024xf32>
    %13 = vector.broadcast %12 : vector<1x1024xf32> to vector<16x1024xf32>
    %14 = arith.addf %8, %13 : vector<16x1024xf32>
    %15 = arith.truncf %14 : vector<16x1024xf32> to vector<16x1024xbf16>
    %16 = vector.shape_cast %15 : vector<16x1024xbf16> to vector<2x8x1024xbf16>
    %17 = vector.extract_strided_slice %16 {offsets = [0, 0, 0], sizes = [2, 8, 512], strides = [1, 1, 1]} : vector<2x8x1024xbf16> to vector<2x8x512xbf16>
    "tpu.trace_start"() <{level = 10 : i32, message = "btk,bkh->bth"}> : () -> ()
    %cst_17 = arith.constant dense<0.000000e+00> : vector<2x8x512xf32>
    %18 = tpu.matmul %1, %17, %cst_17 {dimension_numbers = #tpu.dot_dimension_numbers<[2], [1], [1], [2], [0, 0, 0, 1, 1, 2], [0], [0]>} : vector<2x8x8xbf16>, vector<2x8x512xbf16>, vector<2x8x512xf32> -> vector<2x8x512xf32>
    "tpu.trace_stop"() : () -> ()
    %19 = vector.extract_strided_slice %16 {offsets = [0, 0, 512], sizes = [2, 8, 512], strides = [1, 1, 1]} : vector<2x8x1024xbf16> to vector<2x8x512xbf16>
    "tpu.trace_start"() <{level = 10 : i32, message = "btk,bkh->bth"}> : () -> ()
    %cst_18 = arith.constant dense<0.000000e+00> : vector<2x8x512xf32>
    %20 = tpu.matmul %2, %19, %cst_18 {dimension_numbers = #tpu.dot_dimension_numbers<[2], [1], [1], [2], [0, 0, 0, 1, 1, 2], [0], [0]>} : vector<2x8x8xbf16>, vector<2x8x512xbf16>, vector<2x8x512xf32> -> vector<2x8x512xf32>
    "tpu.trace_stop"() : () -> ()
    %21 = arith.addf %18, %20 : vector<2x8x512xf32>
    %22 = vector.shape_cast %21 : vector<2x8x512xf32> to vector<16x512xf32>
    %cst_19 = arith.constant 5.000000e-01 : f32
    %23 = vector.broadcast %cst_19 : f32 to vector<16x512xf32>
    %24 = arith.mulf %23, %22 : vector<16x512xf32>
    %25 = math.tanh %24 : vector<16x512xf32>
    %cst_20 = arith.constant 5.000000e-01 : f32
    %26 = vector.broadcast %cst_20 : f32 to vector<16x512xf32>
    %27 = arith.mulf %26, %25 : vector<16x512xf32>
    %cst_21 = arith.constant 5.000000e-01 : f32
    %28 = vector.broadcast %cst_21 : f32 to vector<16x512xf32>
    %29 = arith.addf %27, %28 : vector<16x512xf32>
    %30 = vector.extract_strided_slice %29 {offsets = [0, 0], sizes = [16, 128], strides = [1, 1]} : vector<16x512xf32> to vector<16x128xf32>
    %31 = vector.extract_strided_slice %29 {offsets = [0, 128], sizes = [16, 128], strides = [1, 1]} : vector<16x512xf32> to vector<16x128xf32>
    %32 = vector.extract_strided_slice %29 {offsets = [0, 256], sizes = [16, 128], strides = [1, 1]} : vector<16x512xf32> to vector<16x128xf32>
    %33 = vector.extract_strided_slice %29 {offsets = [0, 384], sizes = [16, 128], strides = [1, 1]} : vector<16x512xf32> to vector<16x128xf32>
    %34 = arith.mulf %32, %11 : vector<16x128xf32>
    %35 = arith.mulf %30, %33 : vector<16x128xf32>
    %36 = arith.addf %34, %35 : vector<16x128xf32>
    %37 = math.tanh %36 : vector<16x128xf32>
    %38 = arith.mulf %31, %37 : vector<16x128xf32>
    %39 = arith.truncf %38 : vector<16x128xf32> to vector<16x128xbf16>
    %cst_22 = arith.constant dense<0.000000e+00> : vector<16x1024xf32>
    %40 = tpu.matmul %39, %4, %cst_22 {dimension_numbers = #tpu.dot_dimension_numbers<[1], [0], [0], [1], [0, 0, 1, 1], [], []>} : vector<16x128xbf16>, vector<128x1024xbf16>, vector<16x1024xf32> -> vector<16x1024xf32>
    %41 = arith.addf %8, %40 : vector<16x1024xf32>
    %42 = arith.truncf %41 : vector<16x1024xf32> to vector<16x1024xbf16>
    %43 = vector.shape_cast %42 : vector<16x1024xbf16> to vector<2x8x1024xbf16>
    %44 = vector.extract_strided_slice %43 {offsets = [0, 0, 0], sizes = [2, 8, 512], strides = [1, 1, 1]} : vector<2x8x1024xbf16> to vector<2x8x512xbf16>
    "tpu.trace_start"() <{level = 10 : i32, message = "btk,bkh->bth"}> : () -> ()
    %cst_23 = arith.constant dense<0.000000e+00> : vector<2x8x512xf32>
    %45 = tpu.matmul %1, %44, %cst_23 {dimension_numbers = #tpu.dot_dimension_numbers<[2], [1], [1], [2], [0, 0, 0, 1, 1, 2], [0], [0]>} : vector<2x8x8xbf16>, vector<2x8x512xbf16>, vector<2x8x512xf32> -> vector<2x8x512xf32>
    "tpu.trace_stop"() : () -> ()
    %46 = vector.extract_strided_slice %43 {offsets = [0, 0, 512], sizes = [2, 8, 512], strides = [1, 1, 1]} : vector<2x8x1024xbf16> to vector<2x8x512xbf16>
    "tpu.trace_start"() <{level = 10 : i32, message = "btk,bkh->bth"}> : () -> ()
    %cst_24 = arith.constant dense<0.000000e+00> : vector<2x8x512xf32>
    %47 = tpu.matmul %2, %46, %cst_24 {dimension_numbers = #tpu.dot_dimension_numbers<[2], [1], [1], [2], [0, 0, 0, 1, 1, 2], [0], [0]>} : vector<2x8x8xbf16>, vector<2x8x512xbf16>, vector<2x8x512xf32> -> vector<2x8x512xf32>
    "tpu.trace_stop"() : () -> ()
    %48 = arith.addf %45, %47 : vector<2x8x512xf32>
    %49 = vector.shape_cast %48 : vector<2x8x512xf32> to vector<16x512xf32>
    %cst_25 = arith.constant 5.000000e-01 : f32
    %50 = vector.broadcast %cst_25 : f32 to vector<16x512xf32>
    %51 = arith.mulf %50, %49 : vector<16x512xf32>
    %52 = math.tanh %51 : vector<16x512xf32>
    %cst_26 = arith.constant 5.000000e-01 : f32
    %53 = vector.broadcast %cst_26 : f32 to vector<16x512xf32>
    %54 = arith.mulf %53, %52 : vector<16x512xf32>
    %cst_27 = arith.constant 5.000000e-01 : f32
    %55 = vector.broadcast %cst_27 : f32 to vector<16x512xf32>
    %56 = arith.addf %54, %55 : vector<16x512xf32>
    %57 = vector.extract_strided_slice %56 {offsets = [0, 0], sizes = [16, 128], strides = [1, 1]} : vector<16x512xf32> to vector<16x128xf32>
    %58 = vector.extract_strided_slice %56 {offsets = [0, 128], sizes = [16, 128], strides = [1, 1]} : vector<16x512xf32> to vector<16x128xf32>
    %59 = vector.extract_strided_slice %56 {offsets = [0, 256], sizes = [16, 128], strides = [1, 1]} : vector<16x512xf32> to vector<16x128xf32>
    %60 = vector.extract_strided_slice %56 {offsets = [0, 384], sizes = [16, 128], strides = [1, 1]} : vector<16x512xf32> to vector<16x128xf32>
    %61 = arith.mulf %59, %36 : vector<16x128xf32>
    %62 = arith.mulf %57, %60 : vector<16x128xf32>
    %63 = arith.addf %61, %62 : vector<16x128xf32>
    %64 = math.tanh %63 : vector<16x128xf32>
    %65 = arith.mulf %58, %64 : vector<16x128xf32>
    %66 = arith.truncf %65 : vector<16x128xf32> to vector<16x128xbf16>
    %cst_28 = arith.constant dense<0.000000e+00> : vector<16x1024xf32>
    %67 = tpu.matmul %66, %4, %cst_28 {dimension_numbers = #tpu.dot_dimension_numbers<[1], [0], [0], [1], [0, 0, 1, 1], [], []>} : vector<16x128xbf16>, vector<128x1024xbf16>, vector<16x1024xf32> -> vector<16x1024xf32>
    %68 = arith.addf %8, %67 : vector<16x1024xf32>
    %69 = arith.truncf %68 : vector<16x1024xf32> to vector<16x1024xbf16>
    %70 = vector.shape_cast %69 : vector<16x1024xbf16> to vector<2x8x1024xbf16>
    %71 = vector.extract_strided_slice %70 {offsets = [0, 0, 0], sizes = [2, 8, 512], strides = [1, 1, 1]} : vector<2x8x1024xbf16> to vector<2x8x512xbf16>
    "tpu.trace_start"() <{level = 10 : i32, message = "btk,bkh->bth"}> : () -> ()
    %cst_29 = arith.constant dense<0.000000e+00> : vector<2x8x512xf32>
    %72 = tpu.matmul %1, %71, %cst_29 {dimension_numbers = #tpu.dot_dimension_numbers<[2], [1], [1], [2], [0, 0, 0, 1, 1, 2], [0], [0]>} : vector<2x8x8xbf16>, vector<2x8x512xbf16>, vector<2x8x512xf32> -> vector<2x8x512xf32>
    "tpu.trace_stop"() : () -> ()
    %73 = vector.extract_strided_slice %70 {offsets = [0, 0, 512], sizes = [2, 8, 512], strides = [1, 1, 1]} : vector<2x8x1024xbf16> to vector<2x8x512xbf16>
    "tpu.trace_start"() <{level = 10 : i32, message = "btk,bkh->bth"}> : () -> ()
    %cst_30 = arith.constant dense<0.000000e+00> : vector<2x8x512xf32>
    %74 = tpu.matmul %2, %73, %cst_30 {dimension_numbers = #tpu.dot_dimension_numbers<[2], [1], [1], [2], [0, 0, 0, 1, 1, 2], [0], [0]>} : vector<2x8x8xbf16>, vector<2x8x512xbf16>, vector<2x8x512xf32> -> vector<2x8x512xf32>
    "tpu.trace_stop"() : () -> ()
    %75 = arith.addf %72, %74 : vector<2x8x512xf32>
    %76 = vector.shape_cast %75 : vector<2x8x512xf32> to vector<16x512xf32>
    %cst_31 = arith.constant 5.000000e-01 : f32
    %77 = vector.broadcast %cst_31 : f32 to vector<16x512xf32>
    %78 = arith.mulf %77, %76 : vector<16x512xf32>
    %79 = math.tanh %78 : vector<16x512xf32>
    %cst_32 = arith.constant 5.000000e-01 : f32
    %80 = vector.broadcast %cst_32 : f32 to vector<16x512xf32>
    %81 = arith.mulf %80, %79 : vector<16x512xf32>
    %cst_33 = arith.constant 5.000000e-01 : f32
    %82 = vector.broadcast %cst_33 : f32 to vector<16x512xf32>
    %83 = arith.addf %81, %82 : vector<16x512xf32>
    %84 = vector.extract_strided_slice %83 {offsets = [0, 0], sizes = [16, 128], strides = [1, 1]} : vector<16x512xf32> to vector<16x128xf32>
    %85 = vector.extract_strided_slice %83 {offsets = [0, 128], sizes = [16, 128], strides = [1, 1]} : vector<16x512xf32> to vector<16x128xf32>
    %86 = vector.extract_strided_slice %83 {offsets = [0, 256], sizes = [16, 128], strides = [1, 1]} : vector<16x512xf32> to vector<16x128xf32>
    %87 = vector.extract_strided_slice %83 {offsets = [0, 384], sizes = [16, 128], strides = [1, 1]} : vector<16x512xf32> to vector<16x128xf32>
    %88 = arith.mulf %86, %63 : vector<16x128xf32>
    %89 = arith.mulf %84, %87 : vector<16x128xf32>
    %90 = arith.addf %88, %89 : vector<16x128xf32>
    %91 = math.tanh %90 : vector<16x128xf32>
    %92 = arith.mulf %85, %91 : vector<16x128xf32>
    %c0_34 = arith.constant 0 : index
    %c0_35 = arith.constant 0 : index
    %93 = vector.load %arg9[%c0_34, %c0_35] : memref<16x128xf32, #tpu.memory_space<vmem>>, vector<16x128xf32>
    tpu.vector_store %arg9[%c0_34, %c0_35], %92 {strides = array<i32>} : memref<16x128xf32, #tpu.memory_space<vmem>>, vector<16x128xf32>,
    return
  }
  func.func @transform_0(%arg0: i32) -> (i32, i32) {
    %c0_i32 = arith.constant 0 : i32
    %c0_i32_0 = arith.constant 0 : i32
    return %arg0, %c0_i32 : i32, i32
  }
  func.func @transform_1(%arg0: i32) -> (i32, i32, i32) {
    %c0_i32 = arith.constant 0 : i32
    %c0_i32_0 = arith.constant 0 : i32
    %c0_i32_1 = arith.constant 0 : i32
    return %arg0, %c0_i32, %c0_i32_0 : i32, i32, i32
  }
  func.func @transform_2(%arg0: i32) -> (i32, i32, i32) {
    %c0_i32 = arith.constant 0 : i32
    %c0_i32_0 = arith.constant 0 : i32
    %c0_i32_1 = arith.constant 0 : i32
    return %arg0, %c0_i32, %c0_i32_0 : i32, i32, i32
  }
  func.func @transform_3(%arg0: i32) -> (i32, i32) {
    %c0_i32 = arith.constant 0 : i32
    %c0_i32_0 = arith.constant 0 : i32
    %c0_i32_1 = arith.constant 0 : i32
    return %c0_i32, %c0_i32_0 : i32, i32
  }
  func.func @transform_4(%arg0: i32) -> (i32, i32) {
    %c0_i32 = arith.constant 0 : i32
    %c0_i32_0 = arith.constant 0 : i32
    %c0_i32_1 = arith.constant 0 : i32
    return %c0_i32, %c0_i32_0 : i32, i32
  }
  func.func @transform_5(%arg0: i32) -> (i32, i32) {
    %c0_i32 = arith.constant 0 : i32
    %c0_i32_0 = arith.constant 0 : i32
    %c0_i32_1 = arith.constant 0 : i32
    return %c0_i32, %c0_i32_0 : i32, i32
  }
  func.func @transform_6(%arg0: i32) -> (i32, i32) {
    %c0_i32 = arith.constant 0 : i32
    %c0_i32_0 = arith.constant 0 : i32
    %c0_i32_1 = arith.constant 0 : i32
    return %c0_i32, %c0_i32_0 : i32, i32
  }
  func.func @transform_7(%arg0: i32) -> (i32, i32) {
    %c0_i32 = arith.constant 0 : i32
    %c0_i32_0 = arith.constant 0 : i32
    %c0_i32_1 = arith.constant 0 : i32
    return %c0_i32, %c0_i32_0 : i32, i32
  }
  func.func @transform_8(%arg0: i32) -> (i32, i32) {
    %c0_i32 = arith.constant 0 : i32
    %c0_i32_0 = arith.constant 0 : i32
    return %arg0, %c0_i32 : i32, i32
  }
}

</mosaic_0001>

<bundles_post_ra>
// kernel: tpu_custom_call.1
= control target key start
LH: loop header
LB: loop body
LE: loop exit
PB: predicated region body
PF: predicated region fallthrough
CT: control target
= control target key end

     0   :  { %13 = vsyncpa [#allocation3], 0  ;;  %s4499_s0 = inlined_call_operand.vmem [shape: bf16[32,16], index: 0, kind: input, shape index: {}]   ;;  %s4500_s1 = inlined_call_operand.vmem [shape: bf16[4,8,8], index: 1, kind: input, shape index: {}]   ;;  %s4501_s2 = inlined_call_operand.hbm [shape: bf16[4,8,8], index: 2, kind: input, shape index: {}]   ;;  %s4502_s3 = inlined_call_operand.hbm [shape: bf16[16,1024], index: 3, kind: input, shape index: {}]   ;;  %s4503_s4 = inlined_call_operand.hbm [shape: bf16[128,1024], index: 4, kind: input, shape index: {}]   ;;  %s4504_s5 = inlined_call_operand.vmem [shape: f32[1,1024], index: 5, kind: input, shape index: {}]   ;;  %s4505_s6 = inlined_call_operand.vmem [shape: f32[1,1024], index: 6, kind: input, shape index: {}]   ;;  %s4506_s7 = inlined_call_operand.vmem [shape: f32[1,128], index: 7, kind: input, shape index: {}]   ;;  %s4507_s8 = inlined_call_operand.hbm [shape: f32[32,128], index: 8, kind: output, shape index: {}]  }
   0x1   :  { %15 = vsyncpa [#allocation3 + $0x1], 0 }
   0x2   :  { %16 = vsyncpa [#allocation6], 0 }
   0x3   :  { %17 = vsyncpa [#allocation4], 0 }
   0x4   :  { %19 = vsyncpa [#allocation4 + $0x1], 0  ;;  %s3695_s27 = smov 0   ;;  %s3697_s28 = smov 0  }
   0x5   :  { %s3699_s29 = smov 0   ;;  %s3701_s30 = smov 0  }
   0x6 LB: > { %s3716_s9 = sadd.s32 4294967295, %s3637_s30   ;;  %s3048_s10 = sadd.s32 4294967294, %s3637_s30   ;;  %s3637_s30 = sphi %s3701_s30, %s4683_s30   ;;  %s3633_s29 = sphi %s3699_s29, %s4682_s29   ;;  %s3629_s28 = sphi %s3697_s28, %s4681_s28   ;;  %s3625_s27 = sphi %s3695_s27, %s4680_s27  }
   0x7   : > { %p97_p0 = scmp.ne.s32.totalorder %s3629_s28, %s3625_s27  ;;  %p4508_p1 = scmp.eq.s32.totalorder %s3716_s9, 0 }
   0x8   : > { %p232_p3 = scmp.eq.s32.totalorder %s3048_s10, 1  ;;  %p3049_p5 = scmp.ge.s32.totalorder %s3637_s30, 1 }
   0x9   : > { %p3725_p4 = por %p4508_p1, %p97_p0  ;;  %p239_p7 = scmp.lt.s32.totalorder %s3637_s30, 3 }
   0xa   : > { %p3730_p6 = por %p232_p3, %p97_p0  ;;  %s3639_s14 = smov [#allocation5]  }
   0xb   : > { %s4564_s11 = scalar_select %p3725_p4, 1, 0 }
   0xc   : > { %s4565_s12 = scalar_select %p3730_p6, 1, 0 }
   0xd   : > { %p3735_p8 = pnand %p3049_p5, %p239_p7  ;;  %s251_s15 = sshll.u32 %s3639_s14, 4  ;;  %s3739_s15 = int_to_ptr.vmem [resolvable:$true] %s251_s15 }
   0xe   : > { %s3640_s17 = smov [#allocation7]   ;;  %s3481_s21 = scalar_lea.hbm %s4502_s3, 1024 }
   0xf   : > { %p3354_p9 = pneg %p3735_p8  ;;  %s264_s18 = sshll.u32 %s3640_s17, 4  ;;  %s3750_s18 = int_to_ptr.vmem [resolvable:$true] %s264_s18 }
  0x10   : > { %p3482_p12 = scmp.ne.s32.totalorder %s4502_s3, %s3481_s21  ;;  %p3488_p5 = scmp.lt.u32.totalorder %s3481_s21, %s4502_s3 }
  0x11   : > { %p3746_p11 = pnand %p3354_p9, %p4508_p1 }
  0x13   : > { %p3483_p13 = pneg %p3746_p11 }
  0x15   : > { %p3484_p0 = pnand %p3483_p13, %p3482_p12 }
  0x17   : > { %p3485_p3 = pneg %p3484_p0 }
  0x19   : > { %p3490_p7 = pnand %p3488_p5, %p3485_p3 }
  0x1b   : > { %3493 = shalt.err (!%p3490_p7)
}
  0x1c   : > { %s3494_s26 = scalar_lea.vmem %s3739_s15, 1024  ;;  %p3502_p2 = scmp.lt.s32.totalorder %s3739_s15, %s3739_s15 }
  0x1d   : > { %p3495_p9 = scmp.ne.s32.totalorder %s3739_s15, %s3494_s26  ;;  %p3503_p12 = scmp.lt.s32.totalorder %s3494_s26, %s3494_s26 }
  0x1f   : > { %p3497_p10 = pnand %p3495_p9, %p3483_p13  ;;  %p3504_p0 = por %p3503_p12, %p3502_p2 }
  0x21   : > { %p3498_p1 = pneg %p3497_p10 }
  0x23   : > { %p3505_p6 = pnand %p3504_p0, %p3498_p1 }
  0x25   : > { %3508 = shalt.err (!%p3505_p6)
}
  0x26   : > { %s3641_s10 = smov 512   ;;  %s3642_s14 = smov 32  }
  0x27   : > { %3357 = dma.hbm_to_vmem [thread:$0]  (!%p3746_p11), %s4502_s3, 1024, %s3739_s15, [#allocation6], %s3641_s10, %s3641_s10, %s3642_s14  }
  0x28   : > { %s3509_s22 = scalar_lea.hbm %s4503_s4, 8192 }
  0x29   : > { %p3510_p2 = scmp.ne.s32.totalorder %s4503_s4, %s3509_s22  ;;  %p3516_p10 = scmp.lt.u32.totalorder %s3509_s22, %s4503_s4 }
  0x2b   : > { %p3512_p1 = pnand %p3510_p2, %p3483_p13 }
  0x2d   : > { %p3513_p6 = pneg %p3512_p1 }
  0x2f   : > { %p3518_p3 = pnand %p3516_p10, %p3513_p6 }
  0x31   : > { %3521 = shalt.err (!%p3518_p3)
}
  0x32   : > { %s3522_s15 = scalar_lea.vmem %s3750_s18, 8192  ;;  %p3530_p12 = scmp.lt.s32.totalorder %s3750_s18, %s3750_s18 }
  0x33   : > { %p3523_p5 = scmp.ne.s32.totalorder %s3750_s18, %s3522_s15  ;;  %p3531_p0 = scmp.lt.s32.totalorder %s3522_s15, %s3522_s15 }
  0x35   : > { %p3525_p7 = pnand %p3523_p5, %p3483_p13  ;;  %p3532_p2 = por %p3531_p0, %p3530_p12 }
  0x37   : > { %p3526_p9 = pneg %p3525_p7 }
  0x39   : > { %p3533_p1 = pnand %p3532_p2, %p3526_p9 }
  0x3b   : > { %3536 = shalt.err (!%p3533_p1)
}
  0x3c   : > { %3360 = dma.hbm_to_vmem [thread:$0]  (!%p3746_p11), %s4503_s4, 8192, %s3750_s18, [#allocation6], %s3641_s10, %s3641_s10, %s3642_s14  }
  0x3d   : > { %s3805_s20 = sadd.s32 1, %s3637_s30   ;;  %s84_s16 = sadd.s32 1, %s3633_s29 }
  0x3e   : > { %s81_s21 = ssub.s32 %s3637_s30, %s3805_s20  ;;  %p91_p13 = scmp.ne.s32.totalorder %s3633_s29, %s3629_s28 }
  0x3f   : > { %p82_p6 = scmp.eq.s32.totalorder %s81_s21, 0  ;;  %p92_p10 = scmp.eq.s32.totalorder %s3637_s30, 0 }
  0x40   : > { %p4568_p3 = scmp.eq.s32.totalorder %s3716_s9, 1  ;;  %p3371_p7 = scmp.lt.s32.totalorder %s3637_s30, 2 }
  0x41   : > { %s3821_s23 = scalar_select %p82_p6, %s3633_s29, %s84_s16  }
  0x42   : > { %p3815_p5 = por %p4568_p3, %p91_p13  ;;  %p93_p9 = por %p92_p10, %p91_p13 }
  0x43   : > { %s305_s24 = sand.u32 1, %s3633_s29   ;;  %s3244_s18 = sshll.u32 %s3637_s30, 7 }
  0x44   : > { %s4569_s22 = scalar_select %p3815_p5, 1, 0 }
  0x45   : > { %s3053_s25 = sshll.u32 %s305_s24, 3  ;;  %s3828_s26 = scalar_lea.hbm %s4501_s2, %s3244_s18 }
  0x46   : > { %s309_s15 = scalar_lea.vmem [#allocation2], %s3053_s25  ;;  %p3832_p11 = pnand %p3371_p7, %p93_p9 }
  0x47   : > { %s316_s17 = sshll.u32 %s309_s15, 4  ;;  %s3836_s16 = scalar_lea.sflag [#allocation3], %s305_s24  ;;  %s3830_s17 = int_to_ptr.vmem [resolvable:$true] %s316_s17 }
  0x48   : > { %s3537_s21 = scalar_lea.hbm %s3828_s26, 128  ;;  %p3539_p0 = pneg %p3832_p11 }
  0x49   : > { %p3538_p12 = scmp.ne.s32.totalorder %s3828_s26, %s3537_s21  ;;  %s3542_s10 = scalar_lea.hbm %s4501_s2, 256 }
  0x4a   : > { %p3543_p13 = scmp.lt.u32.totalorder %s3828_s26, %s4501_s2  ;;  %p3544_p6 = scmp.lt.u32.totalorder %s3542_s10, %s3537_s21 }
  0x4b   : > { %p3540_p2 = pnand %p3539_p0, %p3538_p12  ;;  %p3546_p3 = scmp.lt.u32.totalorder %s3537_s21, %s3828_s26 }
  0x4c   : > { %p3545_p10 = por %p3544_p6, %p3543_p13 }
  0x4d   : > { %p3541_p1 = pneg %p3540_p2 }
  0x4e   : > { %p3547_p7 = por %p3546_p3, %p3545_p10 }
  0x50   : > { %p3548_p9 = pnand %p3547_p7, %p3541_p1 }
  0x52   : > { %3551 = shalt.err (!%p3548_p9)
}
  0x53   : > { %s3552_s24 = scalar_lea.vmem %s3830_s17, 128  ;;  %s3643_s25 = smov [#allocation2]  }
  0x54   : > { %p3553_p12 = scmp.ne.s32.totalorder %s3830_s17, %s3552_s24  ;;  %s3557_s18 = sshll.u32 %s3643_s25, 4  ;;  %s3558_s18 = int_to_ptr.vmem [resolvable:$false] %s3557_s18 }
  0x55   : > { %s3559_s14 = scalar_lea.vmem %s3558_s18, 256  ;;  %p3560_p4 = scmp.lt.s32.totalorder %s3830_s17, %s3558_s18 }
  0x56   : > { %p3555_p2 = pnand %p3553_p12, %p3539_p0  ;;  %p3561_p13 = scmp.lt.s32.totalorder %s3559_s14, %s3552_s24 }
  0x58   : > { %p3556_p5 = pneg %p3555_p2  ;;  %p3562_p6 = por %p3561_p13, %p3560_p4 }
  0x5a   : > { %p3563_p10 = pnand %p3562_p6, %p3556_p5 }
  0x5c   : > { %3566 = shalt.err (!%p3563_p10)
}
  0x5d   : > { %s3644_s21 = smov 64   ;;  %s3645_s10 = smov 4  }
  0x5e   : > { %3364 = dma.hbm_to_vmem [thread:$0]  (!%p3832_p11), %s3828_s26, 128, %s3830_s17, %s3836_s16, %s3644_s21, %s3644_s21, %s3645_s10  }
  0x5f   : > { %328 = sbr.rel (%p3735_p8) target bundleno = 1689 (0x699), region = 52 }
  0x66   : > { %s3867_s15 = sand.u32 1, %s3629_s28   ;;  %p4571_p4 = scmp.ne.s32.totalorder %s4564_s11, 0 }
  0x67   : > { %s3057_s24 = sshll.u32 %s3867_s15, 3  ;;  %s331_s25 = scalar_lea.sflag [#allocation3], %s3867_s15 }
  0x68   : > { %s3871_s18 = scalar_lea.vmem [#allocation2], %s3057_s24 }
  0x69   : > { %3612 = dma.done.wait (%p4571_p4), %s331_s25, 128  }
  0x6a   : > { %3614 = vsyncadd (%p4571_p4), %s331_s25, 4294967168  ;;  %p4572_p5 = scmp.eq.s32.totalorder %s3716_s9, 0 }
  0x6c   : > { %3616 = dma.done.wait (%p4572_p5), [#allocation6], 9216   ;;  %p4573_p8 = pmov %p4572_p5 }
  0x6d   : > { %s3061_s13 = sshll.u32 %s3716_s9, 1  ;;  %v4511_v0 = vmov 0   ;;  %v406_v1 = vld [vmem:[#allocation5] sm:$0xff]  ;;  %v407_v3 = vld [vmem:[#allocation5 + $0x8] sm:$0xff]  ;;  %v408_v9 = vld [vmem:[#allocation5 + $0x10] sm:$0xff]  ;;  %vm565_vm0 = vcmask 130048   ;;  %v480_v18 = vlaneseq }
  0x6e   : > { %3618 = vsyncadd (%p4573_p8), [#allocation6], 4294958080  ;;  %601 = vmatprep.mubr.bf16.mxu0 %v4511_v0  ;;  %644 = vmatprep.mubr.bf16.mxu1 %v4511_v0  ;;  %p386_p11 = scmp.lt.s32.totalorder %s3061_s13, 3  ;;  %v410_v2 = vld [vmem:[#allocation5 + $0x20] sm:$0xff]  ;;  %v411_v5 = vld [vmem:[#allocation5 + $0x28] sm:$0xff]  ;;  %vm846_vm1 = vcmask 1043456  }
  0x6f   : > { %v3067_v4 = vcombine.high %v406_v1, %v410_v2  ;;  %v3066_v6 = vcombine.low %v406_v1, %v410_v2  ;;  %v3069_v7 = vcombine.high %v407_v3, %v411_v5  ;;  %v3068_v8 = vcombine.low %v407_v3, %v411_v5  ;;  %v412_v10 = vld [vmem:[#allocation5 + $0x30] sm:$0xff]  ;;  %v409_v13 = vld [vmem:[#allocation5 + $0x18] sm:$0xff]  ;;  %s2919_s24 = scalar_lea.sflag [#allocation4], %s3867_s15  ;;  %p4677_p1 = scmp.ne.s32.totalorder %s4569_s22, 0 }
  0x70   : > { %s4685_s13 = smov (!%p386_p11, %s3061_s13), 3  ;;  %v3071_v12 = vcombine.high %v408_v9, %v412_v10  ;;  %v413_v14 = vld [vmem:[#allocation5 + $0x38] sm:$0xff]  ;;  %v3070_v15 = vcombine.low %v408_v9, %v412_v10  ;;  %v481_v19 = vshrl.u32 %v480_v18, 7  ;;  %vm842_vm2 = vcmask 64512  }
  0x71   : > { %s3062_s11 = sshll.u32 %s4685_s13, 2  ;;  %569 = vmatprep.subr.bf16.mxu0 %v3067_v4  ;;  %612 = vmatprep.subr.bf16.mxu1 %v3069_v7  ;;  %v3073_v16 = vcombine.high %v409_v13, %v413_v14  ;;  %v3072_v17 = vcombine.low %v409_v13, %v413_v14  ;;  %v478_v21 = vld [vmem:[%s4504_s5] sm:$0xff] }
  0x72   : > { %s389_s19 = scalar_lea.vmem %s4499_s0, %s3062_s11  ;;  %570 = vmatpush1.bf16.msra.mxu0 %v3066_v6  ;;  %613 = vmatpush1.bf16.msra.mxu1 %v3068_v8  ;;  %v482_v22 = vsub.s32 0, %v481_v19  ;;  %v498_v25 = vsub.s32 4, %v481_v19  ;;  %v490_v26 = vsub.s32 2, %v481_v19  ;;  %v486_v27 = vsub.s32 1, %v481_v19  ;;  %v748_v36 = vld [vmem:[%s4505_s6] sm:$0xff]  ;;  %s4028_s26 = scalar_lea.vmem %s4500_s1, %s3062_s11 }
  0x73   : > { %v3416_v11 = vld [vmem:[%s389_s19] sm:$0xff]   ;;  %655 = vmatprep.subr.bf16.mxu0 %v3071_v12  ;;  %698 = vmatprep.subr.bf16.mxu1 %v3073_v16  ;;  %v506_v30 = vsub.s32 6, %v481_v19  ;;  %v502_v31 = vsub.s32 5, %v481_v19  ;;  %v494_v32 = vsub.s32 3, %v481_v19  ;;  %v510_v35 = vsub.s32 7, %v481_v19  ;;  %s3293_s19 = sshll.u32 %s3716_s9, 8 }
  0x74   : > { %v3910_v38 = vrot.slane %v478_v21, %v482_v22  ;;  %v499_v39 = vrot.slane %v478_v21, %v498_v25  ;;  %v3912_v40 = vrot.slane %v478_v21, %v490_v26  ;;  %v3914_v41 = vrot.slane %v478_v21, %v486_v27  ;;  %s4453_s10 = scalar_lea.hbm %s4507_s8, %s3293_s19  ;;  %s3647_s9 = smov [#allocation8]  }
  0x75   : > { %3074 = vmatmul.mubr.msk.bf16.vlgmr.msra.gmra.mrb[0].mxu0 %vm565_vm0, %v3416_v11  ;;  %3075 = vmatmul.mubr.msk.bf16.vlgmr.msra.gmra.mrb[0].mxu1 %vm565_vm0, %v3416_v11  ;;  %v507_v42 = vrot.slane %v478_v21, %v506_v30  ;;  %v503_v43 = vrot.slane %v478_v21, %v502_v31  ;;  %v3916_v44 = vrot.slane %v748_v36, %v482_v22 }
  0x76   : > { %656 = vmatpush1.bf16.msra.mxu0 %v3070_v15  ;;  %699 = vmatpush1.bf16.msra.mxu1 %v3072_v17  ;;  %v3918_v45 = vrot.slane %v478_v21, %v494_v32  ;;  %v769_v46 = vrot.slane %v748_v36, %v498_v25  ;;  %v511_v47 = vrot.slane %v478_v21, %v510_v35 }
  0x77   : > { %687 = vmatprep.mubr.bf16.mxu0 %v4511_v0  ;;  %730 = vmatprep.mubr.bf16.mxu1 %v4511_v0  ;;  %v3920_v48 = vrot.slane %v748_v36, %v490_v26  ;;  %v3922_v49 = vrot.slane %v748_v36, %v486_v27  ;;  %v777_v51 = vrot.slane %v748_v36, %v506_v30 }
  0x78   : > { %v773_v52 = vrot.slane %v748_v36, %v502_v31  ;;  %v3924_v53 = vrot.slane %v748_v36, %v494_v32  ;;  %v781_v57 = vrot.slane %v748_v36, %v510_v35 }
  0x7d   : > { %3076 = vmatmul.mubr.msk.bf16.vlgmr.msra.gmra.mrb[4].mxu0 %vm565_vm0, %v3416_v11  ;;  %3077 = vmatmul.mubr.msk.bf16.vlgmr.msra.gmra.mrb[4].mxu1 %vm565_vm0, %v3416_v11 }
  0x7e   : > { %891 = vmatprep.mubr.bf16.mxu0 %v4511_v0  ;;  %932 = vmatprep.mubr.bf16.mxu1 %v4511_v0 }
 0x148   : > { %v603_v20 = vpop.f32.mrb[0].mxu0  ;;  %v646_v23 = vpop.f32.mrb[0].mxu1 }
 0x149   : > { %v605_v24 = vpop.f32.mrb[1].mxu0  ;;  %v648_v28 = vpop.f32.mrb[1].mxu1  ;;  %v3929_v58 = vadd.f32 %v603_v20, %v3910_v38  ;;  %v3959_v20 = vadd.f32 %v646_v23, %v3912_v40  ;;  %v3971_v23 = vld [vmem:[%s3871_s18] sm:$0xf] }
 0x14a   : > { %v3899_v29 = vpop.f32.mrb[2].mxu0  ;;  %v3901_v33 = vpop.f32.mrb[2].mxu1  ;;  %v3932_v59 = vadd.f32 %v605_v24, %v3914_v41  ;;  %v3939_v1 = vadd.f32 %v648_v28, %v3918_v45 }
 0x14b   : > { %v3903_v34 = vpop.f32.mrb[3].mxu0  ;;  %v3908_v37 = vpop.f32.mrb[3].mxu1  ;;  %v790_v35 = vadd.f32 %v3916_v44, %v3929_v58 }
 0x14c   : > { %v791_v25 = vadd.f32 %v3922_v49, %v3932_v59  ;;  %v793_v30 = vadd.f32 %v3924_v53, %v3939_v1 }
 0x14e   : > { %v3254_v36 = vpack.c.bf16 %v791_v25, %v791_v25  ;;  %v430_v25 = vld [vmem:[#allocation7 + $0x80] sm:$0xff] }
 0x150   : > { %v689_v50 = vpop.f32.mrb[4].mxu0  ;;  %v732_v55 = vpop.f32.mrb[4].mxu1 }
 0x151   : > { %v3926_v54 = vadd.f32 %v689_v50, %v499_v39  ;;  %v691_v56 = vpop.f32.mrb[5].mxu0  ;;  %v3934_v60 = vadd.f32 %v732_v55, %v507_v42  ;;  %v734_v62 = vpop.f32.mrb[5].mxu1  ;;  %v4005_v50 = vadd.f32 %v3901_v33, %v3912_v40 }
 0x152   : > { %v3936_v61 = vadd.f32 %v691_v56, %v503_v43  ;;  %v693_v63 = vpop.f32.mrb[6].mxu0  ;;  %v3942_v3 = vadd.f32 %v734_v62, %v511_v47  ;;  %v736_v5 = vpop.f32.mrb[6].mxu1 }
 0x153   : > { %4574 = vst [vmem:[#allocation12_spill] sm:$0xff] %v3926_v54  ;;  %4575 = vst [vmem:[#allocation13_spill] sm:$0xff] %v3934_v60  ;;  %v794_v2 = vadd.f32 %v769_v46, %v3926_v54  ;;  %v3944_v4 = vadd.f32 %v693_v63, %v499_v39  ;;  %v695_v6 = vpop.f32.mrb[7].mxu0  ;;  %v796_v7 = vadd.f32 %v777_v51, %v3934_v60  ;;  %v738_v11 = vpop.f32.mrb[7].mxu1  ;;  %v4045_v63 = vld [vmem:[%s4028_s26 + $0x4] sm:$0xf] }
 0x154   : > { %4576 = vst [vmem:[#allocation14_spill] sm:$0xff] %v3936_v61  ;;  %4577 = vst [vmem:[#allocation15_spill] sm:$0xff] %v3942_v3  ;;  %v795_v8 = vadd.f32 %v773_v52, %v3936_v61  ;;  %v3948_v9 = vadd.f32 %v736_v5, %v507_v42  ;;  %v3950_v10 = vadd.f32 %v695_v6, %v503_v43  ;;  %v418_v5 = vld [vmem:[#allocation7 + $0x20] sm:$0xff]  ;;  %v415_v6 = vld [vmem:[#allocation7 + $0x8] sm:$0xff] }
 0x155   : > { %v797_v12 = vadd.f32 %v781_v57, %v3942_v3  ;;  %v802_v13 = vadd.f32 %v769_v46, %v3944_v4  ;;  %v3954_v14 = vadd.f32 %v738_v11, %v511_v47  ;;  %v3245_v15 = vpack.c.bf16 %v794_v2, %v794_v2  ;;  %v414_v2 = vld [vmem:[#allocation7] sm:$0xff] }
 0x156   : > { %v3246_v16 = vpack.c.bf16 %v795_v8, %v795_v8  ;;  %v804_v17 = vadd.f32 %v777_v51, %v3948_v9  ;;  %v803_v18 = vadd.f32 %v773_v52, %v3950_v10  ;;  %v3247_v19 = vpack.c.bf16 %v796_v7, %v796_v7  ;;  %v4010_v52 = vld [vmem:[%s3871_s18 + $0x4] sm:$0xf]  ;;  %v419_v8 = vld [vmem:[#allocation7 + $0x28] sm:$0xff] }
 0x157   : > { %v3248_v21 = vpack.c.bf16 %v797_v12, %v797_v12  ;;  %v805_v22 = vadd.f32 %v781_v57, %v3954_v14  ;;  %v848_v24 = vsel %vm846_vm1, %v3245_v15, 0  ;;  %v3249_v28 = vpack.c.bf16 %v802_v13, %v802_v13  ;;  %v422_v15 = vld [vmem:[#allocation7 + $0x40] sm:$0xff] }
 0x158   : > { %v3250_v26 = vpack.c.bf16 %v803_v18, %v803_v18  ;;  %3083 = vmatprep.subr.msk.bf16.mxu0 %vm846_vm1, %v3246_v16  ;;  %v854_v27 = vsel %vm846_vm1, %v3247_v19, 0  ;;  %v3251_v32 = vpack.c.bf16 %v804_v17, %v804_v17  ;;  %v3979_v39 = vadd.f32 %v3903_v34, %v3914_v41  ;;  %v426_v16 = vld [vmem:[#allocation7 + $0x60] sm:$0xff]  ;;  %v423_v18 = vld [vmem:[#allocation7 + $0x48] sm:$0xff] }
 0x159   : > { %v3252_v31 = vpack.c.bf16 %v805_v22, %v805_v22  ;;  %3085 = vmatprep.subr.msk.bf16.mxu1 %vm846_vm1, %v3248_v21  ;;  %860 = vmatpush1.bf16.msra.mxu0 %v848_v24  ;;  %v949_v42 = vsel %vm846_vm1, %v3249_v28, 0  ;;  %v792_v43 = vadd.f32 %v3920_v48, %v3959_v20  ;;  %v3256_v46 = vpack.c.bf16 %v793_v30, %v793_v30  ;;  %v427_v19 = vld [vmem:[#allocation7 + $0x68] sm:$0xff] }
 0x15a   : > { %901 = vmatpush1.bf16.msra.mxu1 %v854_v27  ;;  %3091 = vmatprep.subr.msk.bf16.mxu0 %vm846_vm1, %v3250_v26  ;;  %v3988_v47 = vadd.f32 %v3908_v37, %v3918_v45  ;;  %v955_v34 = vsel %vm846_vm1, %v3251_v32, 0  ;;  %v3998_v41 = vadd.f32 %v3899_v29, %v3910_v38  ;;  %v799_v37 = vadd.f32 %v3922_v49, %v3979_v39  ;;  %v434_v26 = vld [vmem:[#allocation7 + $0xa0] sm:$0xff]  ;;  %v431_v27 = vld [vmem:[#allocation7 + $0x88] sm:$0xff] }
 0x15b   : > { %3093 = vmatprep.subr.msk.bf16.mxu1 %vm846_vm1, %v3252_v31  ;;  %v3253_v45 = vpack.c.bf16 %v790_v35, %v790_v35  ;;  %v3255_v55 = vpack.c.bf16 %v792_v43, %v792_v43  ;;  %v800_v56 = vadd.f32 %v3920_v48, %v4005_v50  ;;  %v4034_v48 = vld [vmem:[%s4028_s26] sm:$0xf]  ;;  %v4053_v7 = vcombine.high %v414_v2, %v418_v5  ;;  %v435_v30 = vld [vmem:[#allocation7 + $0xa8] sm:$0xff] }
 0x15c   : > { %3084 = vmatmul.mubr.msk.bf16.vlgmr.msra.gmra.mrb[8].mxu0 %vm842_vm2, %v3971_v23  ;;  %v801_v51 = vadd.f32 %v3924_v53, %v3988_v47  ;;  %v798_v29 = vadd.f32 %v3916_v44, %v3998_v41  ;;  %v3258_v38 = vpack.c.bf16 %v799_v37, %v799_v37  ;;  %v4055_v11 = vcombine.low %v414_v2, %v418_v5  ;;  %v439_v43 = vld [vmem:[#allocation7 + $0xc8] sm:$0xff] }
 0x15d   : > { %3086 = vmatmul.mubr.msk.bf16.vlgmr.msra.gmra.mrb[8].mxu1 %vm842_vm2, %v3971_v23  ;;  %961 = vmatpush1.bf16.msra.mxu0 %v949_v42  ;;  %v1050_v49 = vsel %vm846_vm1, %v3253_v45, 0  ;;  %v1056_v40 = vsel %vm846_vm1, %v3255_v55, 0  ;;  %v3259_v53 = vpack.c.bf16 %v800_v56, %v800_v56  ;;  %v4057_v12 = vcombine.low %v415_v6, %v419_v8  ;;  %v442_v42 = vld [vmem:[#allocation7 + $0xe0] sm:$0xff]  ;;  %v451_v56 = vld [vmem:[#allocation7 + $0x128] sm:$0xff] }
 0x15e   : > { %1002 = vmatpush1.bf16.msra.mxu1 %v955_v34  ;;  %3099 = vmatprep.subr.msk.bf16.mxu0 %vm846_vm1, %v3254_v36  ;;  %v3260_v33 = vpack.c.bf16 %v801_v51, %v801_v51  ;;  %v3257_v44 = vpack.c.bf16 %v798_v29, %v798_v29  ;;  %v4059_v13 = vcombine.high %v415_v6, %v419_v8  ;;  %v438_v36 = vld [vmem:[#allocation7 + $0xc0] sm:$0xff]  ;;  %v443_v34 = vld [vmem:[#allocation7 + $0xe8] sm:$0xff] }
 0x15f   : > { %3101 = vmatprep.subr.msk.bf16.mxu1 %vm846_vm1, %v3256_v46  ;;  %992 = vmatprep.mubr.bf16.mxu0 %v4511_v0  ;;  %v1157_v62 = vsel %vm846_vm1, %v3259_v53, 0  ;;  %v4065_v17 = vcombine.high %v422_v15, %v426_v16  ;;  %v4067_v21 = vcombine.low %v422_v15, %v426_v16  ;;  %v4069_v22 = vcombine.low %v423_v18, %v427_v19  ;;  %v446_v55 = vld [vmem:[#allocation7 + $0x100] sm:$0xff]  ;;  %v459_v6 = vld [vmem:[#allocation7 + $0x168] sm:$0xff] }
 0x160   : > { %1033 = vmatprep.mubr.bf16.mxu1 %v4511_v0  ;;  %v1151_v57 = vsel %vm846_vm1, %v3257_v44, 0  ;;  %v4071_v24 = vcombine.high %v423_v18, %v427_v19  ;;  %v4077_v28 = vcombine.high %v430_v25, %v434_v26  ;;  %v4079_v31 = vcombine.low %v430_v25, %v434_v26  ;;  %v450_v29 = vld [vmem:[#allocation7 + $0x120] sm:$0xff]  ;;  %v463_v25 = vld [vmem:[#allocation7 + $0x188] sm:$0xff] }
 0x161   : > { %v4081_v32 = vcombine.low %v431_v27, %v435_v30  ;;  %v4083_v35 = vcombine.high %v431_v27, %v435_v30  ;;  %v4089_v46 = vcombine.high %v438_v36, %v442_v42  ;;  %v4091_v37 = vcombine.low %v438_v36, %v442_v42  ;;  %v454_v53 = vld [vmem:[#allocation7 + $0x140] sm:$0xff]  ;;  %v467_v26 = vld [vmem:[#allocation7 + $0x1a8] sm:$0xff] }
 0x162   : > { %v4093_v45 = vcombine.low %v439_v43, %v443_v34  ;;  %v4095_v51 = vcombine.high %v439_v43, %v443_v34  ;;  %v462_v8 = vld [vmem:[#allocation7 + $0x180] sm:$0xff]  ;;  %v4124_v30 = vcombine.high %v463_v25, %v467_v26  ;;  %v471_v42 = vld [vmem:[#allocation7 + $0x1c8] sm:$0xff] }
 0x163   : > { %v466_v15 = vld [vmem:[#allocation7 + $0x1a0] sm:$0xff]  ;;  %v475_v43 = vld [vmem:[#allocation7 + $0x1e8] sm:$0xff] }
 0x164   : > { %3092 = vmatmul.mubr.msk.bf16.vlgmr.msra.gmra.mrb[12].mxu0 %vm842_vm2, %v4010_v52  ;;  %v4121_v19 = vcombine.high %v462_v8, %v466_v15  ;;  %v470_v27 = vld [vmem:[#allocation7 + $0x1c0] sm:$0xff]  ;;  %4584 = vst [vmem:[#allocation22_spill] sm:$0xff] %v4124_v30  ;;  %v4128_v34 = vcombine.low %v462_v8, %v466_v15 }
 0x165   : > { %3094 = vmatmul.mubr.msk.bf16.vlgmr.msra.gmra.mrb[12].mxu1 %vm842_vm2, %v4010_v52  ;;  %1062 = vmatpush1.bf16.msra.mxu0 %v1050_v49  ;;  %v4101_v49 = vcombine.high %v446_v55, %v450_v29  ;;  %v474_v36 = vld [vmem:[#allocation7 + $0x1e0] sm:$0xff] }
 0x166   : > { %1103 = vmatpush1.bf16.msra.mxu1 %v1056_v40  ;;  %3107 = vmatprep.subr.msk.bf16.mxu0 %vm846_vm1, %v3258_v38  ;;  %v447_v38 = vld [vmem:[#allocation7 + $0x108] sm:$0xff]  ;;  %4583 = vst [vmem:[#allocation21_spill] sm:$0xff] %v4121_v19  ;;  %4585 = vst [vmem:[#allocation23_spill] sm:$0xff] %v4128_v34  ;;  %v4144_v15 = vcombine.low %v470_v27, %v474_v36 }
 0x167   : > { %3109 = vmatprep.subr.msk.bf16.mxu1 %vm846_vm1, %v3260_v33  ;;  %1093 = vmatprep.mubr.bf16.mxu0 %v4511_v0  ;;  %v4103_v33 = vcombine.low %v446_v55, %v450_v29  ;;  %v4105_v40 = vcombine.low %v447_v38, %v451_v56  ;;  %v4107_v44 = vcombine.high %v447_v38, %v451_v56  ;;  %v416_v55 = vld [vmem:[#allocation7 + $0x10] sm:$0xff]  ;;  %v417_v38 = vld [vmem:[#allocation7 + $0x18] sm:$0xff] }
 0x168   : > { %1134 = vmatprep.mubr.bf16.mxu1 %v4511_v0  ;;  %v420_v29 = vld [vmem:[#allocation7 + $0x30] sm:$0xff]  ;;  %v4132_v56 = vcombine.low %v463_v25, %v467_v26  ;;  %4591 = vst [vmem:[#allocation29_spill] sm:$0xff] %v4144_v15  ;;  %v4148_v25 = vcombine.low %v471_v42, %v475_v43 }
 0x169   : > { %4578 = vst [vmem:[#allocation16_spill] sm:$0xff] %v4105_v40  ;;  %v4150_v26 = vcombine.high %v416_v55, %v420_v29 }
 0x16a   : > { %4586 = vst [vmem:[#allocation24_spill] sm:$0xff] %v4132_v56  ;;  %4592 = vst [vmem:[#allocation30_spill] sm:$0xff] %v4148_v25 }
 0x16b   : > { %4593 = vst [vmem:[#allocation31_spill] sm:$0xff] %v4150_v26 }
 0x16c   : > { %3100 = vmatmul.mubr.msk.bf16.vlgmr.msra.gmra.mrb[8].mxu0 %vm842_vm2, %v4034_v48 }
 0x16d   : > { %3102 = vmatmul.mubr.msk.bf16.vlgmr.msra.gmra.mrb[8].mxu1 %vm842_vm2, %v4034_v48  ;;  %1163 = vmatpush1.bf16.msra.mxu0 %v1151_v57  ;;  %v458_v57 = vld [vmem:[#allocation7 + $0x160] sm:$0xff] }
 0x16e   : > { %1204 = vmatpush1.bf16.msra.mxu1 %v1157_v62  ;;  %1194 = vmatprep.mubr.bf16.mxu0 %v4511_v0  ;;  %v455_v62 = vld [vmem:[#allocation7 + $0x148] sm:$0xff]  ;;  %v4113_v2 = vcombine.low %v454_v53, %v458_v57  ;;  %v4115_v5 = vcombine.high %v454_v53, %v458_v57  ;;  %v4134_v53 = vcombine.high %v470_v27, %v474_v36 }
 0x16f   : > { %1235 = vmatprep.mubr.bf16.mxu1 %v4511_v0  ;;  %1607 = vmatprep.subr.bf16.mxu0 %v4053_v7  ;;  %v4117_v16 = vcombine.low %v455_v62, %v459_v6  ;;  %v4119_v18 = vcombine.high %v455_v62, %v459_v6  ;;  %v4136_v57 = vcombine.low %v416_v55, %v420_v29  ;;  %v421_v62 = vld [vmem:[#allocation7 + $0x38] sm:$0xff] }
 0x170   : > { %1650 = vmatprep.subr.bf16.mxu1 %v4059_v13  ;;  %4579 = vst [vmem:[#allocation17_spill] sm:$0xff] %v4113_v2  ;;  %4580 = vst [vmem:[#allocation18_spill] sm:$0xff] %v4115_v5  ;;  %v4139_v6 = vcombine.high %v471_v42, %v475_v43  ;;  %v4141_v8 = vcombine.low %v417_v38, %v421_v62 }
 0x171   : > { %4581 = vst [vmem:[#allocation19_spill] sm:$0xff] %v4117_v16  ;;  %4582 = vst [vmem:[#allocation20_spill] sm:$0xff] %v4119_v18 }
 0x172   : > { %4587 = vst [vmem:[#allocation25_spill] sm:$0xff] %v4134_v53  ;;  %4588 = vst [vmem:[#allocation26_spill] sm:$0xff] %v4136_v57 }
 0x173   : > { %4589 = vst [vmem:[#allocation27_spill] sm:$0xff] %v4139_v6  ;;  %4590 = vst [vmem:[#allocation28_spill] sm:$0xff] %v4141_v8 }
 0x174   : > { %3108 = vmatmul.mubr.msk.bf16.vlgmr.msra.gmra.mrb[12].mxu0 %vm842_vm2, %v4045_v63 }
 0x175   : > { %3110 = vmatmul.mubr.msk.bf16.vlgmr.msra.gmra.mrb[12].mxu1 %vm842_vm2, %v4045_v63  ;;  %1639 = vmatprep.mubr.bf16.mxu0 %v4511_v0 }
 0x176   : > { %1682 = vmatprep.mubr.bf16.mxu1 %v4511_v0  ;;  %1608 = vmatpush1.bf16.msra.mxu0 %v4055_v11  ;;  %v4153_v0 = vcombine.high %v417_v38, %v421_v62 }
 0x177   : > { %1651 = vmatpush1.bf16.msra.mxu1 %v4057_v12  ;;  %1609 = vmatprep.subr.bf16.mxu0 %v4065_v17 }
 0x178   : > { %1652 = vmatprep.subr.bf16.mxu1 %v4071_v24  ;;  %4594 = vst [vmem:[#allocation32_spill] sm:$0xff] %v4153_v0 }
 0x17a   : > { %1610 = vmatpush1.bf16.msra.mxu0 %v4067_v21 }
 0x17b   : > { %1653 = vmatpush1.bf16.msra.mxu1 %v4069_v22  ;;  %1611 = vmatprep.subr.bf16.mxu0 %v4077_v28 }
 0x17c   : > { %1654 = vmatprep.subr.bf16.mxu1 %v4083_v35 }
 0x17e   : > { %1612 = vmatpush1.bf16.msra.mxu0 %v4079_v31 }
 0x17f   : > { %1655 = vmatpush1.bf16.msra.mxu1 %v4081_v32  ;;  %1613 = vmatprep.subr.bf16.mxu0 %v4089_v46 }
 0x180   : > { %1656 = vmatprep.subr.bf16.mxu1 %v4095_v51 }
 0x182   : > { %1614 = vmatpush1.bf16.msra.mxu0 %v4091_v37 }
 0x183   : > { %1657 = vmatpush1.bf16.msra.mxu1 %v4093_v45  ;;  %1615 = vmatprep.subr.bf16.mxu0 %v4101_v49 }
 0x184   : > { %1658 = vmatprep.subr.bf16.mxu1 %v4107_v44 }
 0x186   : > { %1616 = vmatpush1.bf16.msra.mxu0 %v4103_v33 }
 0x187   : > { %1659 = vmatpush1.bf16.msra.mxu1 %v4105_v40  ;;  %1617 = vmatprep.subr.bf16.mxu0 %v4115_v5 }
 0x188   : > { %1660 = vmatprep.subr.bf16.mxu1 %v4119_v18 }
 0x18a   : > { %1618 = vmatpush1.bf16.msra.mxu0 %v4113_v2 }
 0x18b   : > { %1661 = vmatpush1.bf16.msra.mxu1 %v4117_v16  ;;  %1619 = vmatprep.subr.bf16.mxu0 %v4121_v19 }
 0x18c   : > { %1662 = vmatprep.subr.bf16.mxu1 %v4124_v30 }
 0x18e   : > { %1620 = vmatpush1.bf16.msra.mxu0 %v4128_v34 }
 0x18f   : > { %1663 = vmatpush1.bf16.msra.mxu1 %v4132_v56  ;;  %1621 = vmatprep.subr.bf16.mxu0 %v4134_v53 }
 0x190   : > { %1664 = vmatprep.subr.bf16.mxu1 %v4139_v6 }
 0x192   : > { %1622 = vmatpush1.bf16.msra.mxu0 %v4144_v15 }
 0x193   : > { %1665 = vmatpush1.bf16.msra.mxu1 %v4148_v25  ;;  %1693 = vmatprep.subr.bf16.mxu0 %v4150_v26 }
 0x194   : > { %1736 = vmatprep.subr.bf16.mxu1 %v4153_v0 }
 0x23f   : > { %v1095_v27 = vpop.f32.mrb[8].mxu0 }
 0x240   : > { %v1244_v36 = vmul.f32 0.5, %v1095_v27  ;;  %v1136_v56 = vpop.f32.mrb[8].mxu1  ;;  %v1097_v53 = vpop.f32.mrb[9].mxu0 }
 0x241   : > { %v1246_v42 = vmul.f32 0.5, %v1136_v56  ;;  %v1138_v43 = vpop.f32.mrb[9].mxu1  ;;  %v1099_v55 = vpop.f32.mrb[10].mxu0 }
 0x242   : > { %3417 = vtanh.f32 %v1244_v36  ;;  %v1247_v29 = vmul.f32 0.5, %v1138_v43  ;;  %v1140_v6 = vpop.f32.mrb[10].mxu1  ;;  %v1100_v38 = vpop.f32.mrb[11].mxu0 }
 0x243   : > { %3419 = vtanh.f32 %v1246_v42  ;;  %v1141_v62 = vpop.f32.mrb[11].mxu1 }
 0x244   : > { %3421 = vtanh.f32 %v1247_v29 }
 0x247   : > { %v1196_v15 = vpop.f32.mrb[12].mxu0 }
 0x248   : > { %v1248_v25 = vmul.f32 0.5, %v1196_v15  ;;  %v1237_v34 = vpop.f32.mrb[12].mxu1  ;;  %v1198_v26 = vpop.f32.mrb[13].mxu0  ;;  %v3078_v15 = vld [vmem:[%s4506_s7] ss:$0 sm:$0xff] }
 0x249   : > { %v1250_v30 = vmul.f32 0.5, %v1237_v34  ;;  %v1239_v0 = vpop.f32.mrb[13].mxu1  ;;  %v1200_v19 = vpop.f32.mrb[14].mxu0 }
 0x24a   : > { %3423 = vtanh.f32 %v1248_v25  ;;  %v1251_v27 = vmul.f32 0.5, %v1239_v0  ;;  %v1241_v16 = vpop.f32.mrb[14].mxu1  ;;  %v1201_v56 = vpop.f32.mrb[15].mxu0  ;;  %v1245_v0 = vmul.f32 0.5, %v1097_v53 }
 0x24b   : > { %3425 = vtanh.f32 %v1250_v30  ;;  %v1242_v55 = vpop.f32.mrb[15].mxu1  ;;  %v1249_v30 = vmul.f32 0.5, %v1198_v26 }
 0x24c   : > { %v3418_v36 = vpop.eup %3417  ;;  %3427 = vtanh.f32 %v1251_v27 }
 0x24d   : > { %v3420_v43 = vpop.eup %3419  ;;  %v1260_v6 = vmul.f32 0.5, %v3418_v36  ;;  %3429 = vtanh.f32 %v1245_v0 }
 0x24e   : > { %v1262_v42 = vmul.f32 0.5, %v3420_v43  ;;  %v3422_v38 = vpop.eup %3421  ;;  %3431 = vtanh.f32 %v1249_v30  ;;  %v425_v30 = vld [vmem:[#allocation7 + $0x58] sm:$0xff] }
 0x24f   : > { %v1268_v29 = vadd.f32 0.5, %v1260_v6  ;;  %v1263_v62 = vmul.f32 0.5, %v3422_v38 }
 0x250   : > { %v1270_v34 = vadd.f32 0.5, %v1262_v42 }
 0x251   : > { %v1271_v25 = vadd.f32 0.5, %v1263_v62 }
 0x252   : > { %v1276_v19 = vmul.f32 %v3078_v15, %v1270_v34 }
 0x253   : > { %v1278_v56 = vmul.f32 %v1271_v25, %v1268_v29 }
 0x254   : > { %v3424_v16 = vpop.eup %3423 }
 0x255   : > { %v3426_v55 = vpop.eup %3425  ;;  %v1264_v2 = vmul.f32 0.5, %v3424_v16  ;;  %v4162_v18 = vadd.f32 %v1278_v56, %v1276_v19  ;;  %v428_v56 = vld [vmem:[#allocation7 + $0x70] sm:$0xff] }
 0x256   : > { %v1266_v27 = vmul.f32 0.5, %v3426_v55  ;;  %v3428_v36 = vpop.eup %3427 }
 0x257   : > { %4595 = vst [vmem:[#allocation33_spill] sm:$0xff] %v4162_v18  ;;  %v1272_v43 = vadd.f32 0.5, %v1264_v2  ;;  %v1267_v40 = vmul.f32 0.5, %v3428_v36  ;;  %3433 = vtanh.f32 %v4162_v18  ;;  %v3430_v26 = vpop.eup %3429  ;;  %v424_v2 = vld [vmem:[#allocation7 + $0x50] sm:$0xff] }
 0x258   : > { %v1274_v5 = vadd.f32 0.5, %v1266_v27  ;;  %v3432_v29 = vpop.eup %3431  ;;  %v1261_v34 = vmul.f32 0.5, %v3430_v26  ;;  %v4170_v27 = vcombine.high %v424_v2, %v428_v56  ;;  %v4178_v26 = vcombine.low %v424_v2, %v428_v56 }
 0x259   : > { %v1275_v42 = vadd.f32 0.5, %v1267_v40  ;;  %v1265_v62 = vmul.f32 0.5, %v3432_v29 }
 0x25a   : > { %v1277_v6 = vmul.f32 %v3078_v15, %v1274_v5  ;;  %v1269_v25 = vadd.f32 0.5, %v1261_v34  ;;  %v429_v5 = vld [vmem:[#allocation7 + $0x78] sm:$0xff]  ;;  %4597 = vst [vmem:[#allocation35_spill] sm:$0xff] %v4170_v27  ;;  %4599 = vst [vmem:[#allocation37_spill] sm:$0xff] %v4178_v26 }
 0x25b   : > { %v1279_v38 = vmul.f32 %v1275_v42, %v1272_v43  ;;  %v1273_v0 = vadd.f32 0.5, %v1265_v62  ;;  %v4172_v36 = vcombine.high %v425_v30, %v429_v5  ;;  %v432_v43 = vld [vmem:[#allocation7 + $0x90] sm:$0xff]  ;;  %v433_v42 = vld [vmem:[#allocation7 + $0x98] sm:$0xff]  ;;  %v4180_v29 = vcombine.low %v425_v30, %v429_v5 }
 0x25d   : > { %v4165_v53 = vadd.f32 %v1279_v38, %v1277_v6  ;;  %4598 = vst [vmem:[#allocation36_spill] sm:$0xff] %v4172_v36  ;;  %v436_v6 = vld [vmem:[#allocation7 + $0xb0] sm:$0xff]  ;;  %v437_v38 = vld [vmem:[#allocation7 + $0xb8] sm:$0xff]  ;;  %4600 = vst [vmem:[#allocation38_spill] sm:$0xff] %v4180_v29 }
 0x25e   : > { %v4184_v34 = vcombine.high %v432_v43, %v436_v6  ;;  %v4186_v62 = vcombine.high %v433_v42, %v437_v38  ;;  %v4192_v2 = vcombine.low %v432_v43, %v436_v6  ;;  %v4194_v56 = vcombine.low %v433_v42, %v437_v38 }
 0x25f   : > { %4596 = vst [vmem:[#allocation34_spill] sm:$0xff] %v4165_v53  ;;  %3435 = vtanh.f32 %v4165_v53 }
 0x260   : > { %4601 = vst [vmem:[#allocation39_spill] sm:$0xff] %v4184_v34  ;;  %4602 = vst [vmem:[#allocation40_spill] sm:$0xff] %v4186_v62 }
 0x261   : > { %v3434_v19 = vpop.eup %3433  ;;  %4604 = vst [vmem:[#allocation41_spill] sm:$0xff] %v4192_v2  ;;  %4605 = vst [vmem:[#allocation42_spill] sm:$0xff] %v4194_v56 }
 0x262   : > { %v1284_v40 = vmul.f32 %v3434_v19, %v1269_v25  ;;  %v440_v19 = vld [vmem:[#allocation7 + $0xd0] sm:$0xff] }
 0x263   : > { %v444_v25 = vld [vmem:[#allocation7 + $0xf0] sm:$0xff] }
 0x264   : > { %v4198_v30 = vcombine.high %v440_v19, %v444_v25  ;;  %v4204_v43 = vcombine.low %v440_v19, %v444_v25 }
 0x266   : > { %4606 = vst [vmem:[#allocation43_spill] sm:$0xff] %v4198_v30  ;;  %4608 = vst [vmem:[#allocation45_spill] sm:$0xff] %v4204_v43 }
 0x269   : > { %v3436_v16 = vpop.eup %3435 }
 0x26a   : > { %v1285_v15 = vmul.f32 %v3436_v16, %v1273_v0  ;;  %v441_v0 = vld [vmem:[#allocation7 + $0xd8] sm:$0xff] }
 0x26b   : > { %v445_v16 = vld [vmem:[#allocation7 + $0xf8] sm:$0xff] }
 0x26c   : > { %v4168_v55 = vpack.c.bf16 %v1285_v15, %v1284_v40  ;;  %v4603_v40 = vmov 0   ;;  %v4200_v5 = vcombine.high %v441_v0, %v445_v16  ;;  %v448_v15 = vld [vmem:[#allocation7 + $0x110] sm:$0xff]  ;;  %v4206_v6 = vcombine.low %v441_v0, %v445_v16 }
 0x26e   : > { %1640 = vmatmul.mubr.bf16.vlgmr.msra.gmra.mrb[16].mxu0 %v4168_v55  ;;  %1683 = vmatmul.mubr.bf16.vlgmr.msra.gmra.mrb[16].mxu1 %v4168_v55  ;;  %4607 = vst [vmem:[#allocation44_spill] sm:$0xff] %v4200_v5  ;;  %4609 = vst [vmem:[#allocation46_spill] sm:$0xff] %v4206_v6 }
 0x26f   : > { %1694 = vmatpush1.bf16.msra.mxu0 %v4136_v57  ;;  %1737 = vmatpush1.bf16.msra.mxu1 %v4141_v8  ;;  %v453_v8 = vld [vmem:[#allocation7 + $0x138] sm:$0xff] }
 0x270   : > { %1695 = vmatprep.subr.bf16.mxu0 %v4170_v27  ;;  %1738 = vmatprep.subr.bf16.mxu1 %v4172_v36  ;;  %v452_v36 = vld [vmem:[#allocation7 + $0x130] sm:$0xff]  ;;  %v449_v27 = vld [vmem:[#allocation7 + $0x118] sm:$0xff] }
 0x271   : > { %1725 = vmatprep.mubr.bf16.mxu0 %v4603_v40  ;;  %1768 = vmatprep.mubr.bf16.mxu1 %v4603_v40  ;;  %v4210_v42 = vcombine.high %v448_v15, %v452_v36  ;;  %v4212_v38 = vcombine.high %v449_v27, %v453_v8  ;;  %v4216_v19 = vcombine.low %v448_v15, %v452_v36 }
 0x272   : > { %v4218_v25 = vcombine.low %v449_v27, %v453_v8 }
 0x273   : > { %1696 = vmatpush1.bf16.msra.mxu0 %v4178_v26  ;;  %1739 = vmatpush1.bf16.msra.mxu1 %v4180_v29  ;;  %4610 = vst [vmem:[#allocation47_spill] sm:$0xff] %v4210_v42  ;;  %4611 = vst [vmem:[#allocation48_spill] sm:$0xff] %v4212_v38  ;;  %v457_v29 = vld [vmem:[#allocation7 + $0x158] sm:$0xff] }
 0x274   : > { %1697 = vmatprep.subr.bf16.mxu0 %v4184_v34  ;;  %1740 = vmatprep.subr.bf16.mxu1 %v4186_v62  ;;  %v456_v62 = vld [vmem:[#allocation7 + $0x150] sm:$0xff]  ;;  %v461_v26 = vld [vmem:[#allocation7 + $0x178] sm:$0xff]  ;;  %4612 = vst [vmem:[#allocation49_spill] sm:$0xff] %v4216_v19  ;;  %4613 = vst [vmem:[#allocation50_spill] sm:$0xff] %v4218_v25 }
 0x275   : > { %v460_v34 = vld [vmem:[#allocation7 + $0x170] sm:$0xff]  ;;  %v4224_v16 = vcombine.high %v457_v29, %v461_v26  ;;  %v4230_v8 = vcombine.low %v457_v29, %v461_v26 }
 0x276   : > { %v4222_v0 = vcombine.high %v456_v62, %v460_v34  ;;  %v4228_v36 = vcombine.low %v456_v62, %v460_v34 }
 0x277   : > { %1698 = vmatpush1.bf16.msra.mxu0 %v4192_v2  ;;  %1741 = vmatpush1.bf16.msra.mxu1 %v4194_v56  ;;  %4615 = vst [vmem:[#allocation52_spill] sm:$0xff] %v4224_v16  ;;  %v465_v56 = vld [vmem:[#allocation7 + $0x198] sm:$0xff]  ;;  %4617 = vst [vmem:[#allocation54_spill] sm:$0xff] %v4230_v8 }
 0x278   : > { %1699 = vmatprep.subr.bf16.mxu0 %v4198_v30  ;;  %1742 = vmatprep.subr.bf16.mxu1 %v4200_v5  ;;  %4614 = vst [vmem:[#allocation51_spill] sm:$0xff] %v4222_v0  ;;  %v464_v5 = vld [vmem:[#allocation7 + $0x190] sm:$0xff]  ;;  %v469_v2 = vld [vmem:[#allocation7 + $0x1b8] sm:$0xff]  ;;  %4616 = vst [vmem:[#allocation53_spill] sm:$0xff] %v4228_v36 }
 0x279   : > { %v468_v30 = vld [vmem:[#allocation7 + $0x1b0] sm:$0xff]  ;;  %v4236_v15 = vcombine.high %v465_v56, %v469_v2  ;;  %v4242_v26 = vcombine.low %v465_v56, %v469_v2 }
 0x27a   : > { %v4234_v27 = vcombine.high %v464_v5, %v468_v30  ;;  %v4240_v34 = vcombine.low %v464_v5, %v468_v30 }
 0x27b   : > { %1700 = vmatpush1.bf16.msra.mxu0 %v4204_v43  ;;  %1743 = vmatpush1.bf16.msra.mxu1 %v4206_v6  ;;  %4619 = vst [vmem:[#allocation56_spill] sm:$0xff] %v4236_v15  ;;  %v473_v6 = vld [vmem:[#allocation7 + $0x1d8] sm:$0xff]  ;;  %4621 = vst [vmem:[#allocation58_spill] sm:$0xff] %v4242_v26 }
 0x27c   : > { %1701 = vmatprep.subr.bf16.mxu0 %v4210_v42  ;;  %1744 = vmatprep.subr.bf16.mxu1 %v4212_v38  ;;  %4618 = vst [vmem:[#allocation55_spill] sm:$0xff] %v4234_v27  ;;  %v472_v38 = vld [vmem:[#allocation7 + $0x1d0] sm:$0xff]  ;;  %v477_v43 = vld [vmem:[#allocation7 + $0x1f8] sm:$0xff]  ;;  %4620 = vst [vmem:[#allocation57_spill] sm:$0xff] %v4240_v34 }
 0x27d   : > { %v476_v42 = vld [vmem:[#allocation7 + $0x1f0] sm:$0xff]  ;;  %v4248_v62 = vcombine.high %v473_v6, %v477_v43 }
 0x27e   : > { %v4246_v29 = vcombine.high %v472_v38, %v476_v42 }
 0x27f   : > { %1702 = vmatpush1.bf16.msra.mxu0 %v4216_v19  ;;  %1745 = vmatpush1.bf16.msra.mxu1 %v4218_v25  ;;  %4623 = vst [vmem:[#allocation60_spill] sm:$0xff] %v4248_v62 }
 0x280   : > { %1703 = vmatprep.subr.bf16.mxu0 %v4222_v0  ;;  %1746 = vmatprep.subr.bf16.mxu1 %v4224_v16  ;;  %4622 = vst [vmem:[#allocation59_spill] sm:$0xff] %v4246_v29  ;;  %v4252_v16 = vcombine.low %v472_v38, %v476_v42 }
 0x282   : > { %4624 = vst [vmem:[#allocation61_spill] sm:$0xff] %v4252_v16 }
 0x283   : > { %1704 = vmatpush1.bf16.msra.mxu0 %v4228_v36  ;;  %1747 = vmatpush1.bf16.msra.mxu1 %v4230_v8  ;;  %v4254_v36 = vcombine.low %v473_v6, %v477_v43 }
 0x284   : > { %1705 = vmatprep.subr.bf16.mxu0 %v4234_v27  ;;  %1748 = vmatprep.subr.bf16.mxu1 %v4236_v15 }
 0x285   : > { %4625 = vst [vmem:[#allocation62_spill] sm:$0xff] %v4254_v36 }
 0x287   : > { %1706 = vmatpush1.bf16.msra.mxu0 %v4240_v34  ;;  %1749 = vmatpush1.bf16.msra.mxu1 %v4242_v26 }
 0x288   : > { %1707 = vmatprep.subr.bf16.mxu0 %v4246_v29  ;;  %1750 = vmatprep.subr.bf16.mxu1 %v4248_v62 }
 0x28b   : > { %1708 = vmatpush1.bf16.msra.mxu0 %v4252_v16  ;;  %1751 = vmatpush1.bf16.msra.mxu1 %v4254_v36 }
 0x28e   : > { %1726 = vmatmul.mubr.bf16.vlgmr.msra.gmra.mrb[20].mxu0 %v4168_v55  ;;  %1769 = vmatmul.mubr.bf16.vlgmr.msra.gmra.mrb[20].mxu1 %v4168_v55 }
 0x28f   : > { %1875 = vmatprep.mubr.bf16.mxu0 %v4603_v40  ;;  %1916 = vmatprep.mubr.bf16.mxu1 %v4603_v40 }
 0x341   : > { %v1641_v2 = vpop.f32.mrb[16].mxu0  ;;  %v1684_v56 = vpop.f32.mrb[16].mxu1 }
 0x342   : > { %v1643_v30 = vpop.f32.mrb[17].mxu0  ;;  %v1686_v5 = vpop.f32.mrb[17].mxu1 }
 0x343   : > { %v1645_v43 = vpop.f32.mrb[18].mxu0  ;;  %v1688_v6 = vpop.f32.mrb[18].mxu1  ;;  %v1780_v34 = vadd.f32 %v1643_v30, %v3932_v59 }
 0x344   : > { %v1647_v42 = vpop.f32.mrb[19].mxu0  ;;  %v1690_v38 = vpop.f32.mrb[19].mxu1 }
 0x361   : > { %v1727_v62 = vpop.f32.mrb[20].mxu0  ;;  %v1770_v16 = vpop.f32.mrb[20].mxu1 }
 0x362   : > { %v1783_v36 = vadd.f32 %v1727_v62, %v3926_v54  ;;  %v1785_v29 = vadd.f32 %v1770_v16, %v3934_v60  ;;  %v1729_v26 = vpop.f32.mrb[21].mxu0  ;;  %v1772_v55 = vpop.f32.mrb[21].mxu1 }
 0x363   : > { %v1784_v15 = vadd.f32 %v1729_v26, %v3936_v61  ;;  %v1786_v27 = vadd.f32 %v1772_v55, %v3942_v3  ;;  %v1731_v8 = vpop.f32.mrb[22].mxu0  ;;  %v1774_v0 = vpop.f32.mrb[22].mxu1  ;;  %v1782_v26 = vadd.f32 %v1686_v5, %v3939_v1 }
 0x364   : > { %v3261_v25 = vpack.c.bf16 %v1783_v36, %v1783_v36  ;;  %v3263_v19 = vpack.c.bf16 %v1785_v29, %v1785_v29  ;;  %v1791_v57 = vadd.f32 %v1731_v8, %v3944_v4  ;;  %v1793_v53 = vadd.f32 %v1774_v0, %v3948_v9  ;;  %v1733_v18 = vpop.f32.mrb[23].mxu0  ;;  %v1776_v62 = vpop.f32.mrb[23].mxu1 }
 0x365   : > { %v3262_v54 = vpack.c.bf16 %v1784_v15, %v1784_v15  ;;  %v3264_v16 = vpack.c.bf16 %v1786_v27, %v1786_v27  ;;  %v1792_v60 = vadd.f32 %v1733_v18, %v3950_v10  ;;  %v1794_v30 = vadd.f32 %v1776_v62, %v3954_v14 }
 0x366   : > { %v1832_v55 = vsel %vm846_vm1, %v3261_v25, 0  ;;  %v1838_v3 = vsel %vm846_vm1, %v3263_v19, 0  ;;  %v3265_v36 = vpack.c.bf16 %v1791_v57, %v1791_v57  ;;  %v3267_v29 = vpack.c.bf16 %v1793_v53, %v1793_v53 }
 0x367   : > { %v3266_v61 = vpack.c.bf16 %v1792_v60, %v1792_v60  ;;  %v3268_v8 = vpack.c.bf16 %v1794_v30, %v1794_v30  ;;  %3179 = vmatprep.subr.msk.bf16.mxu0 %vm846_vm1, %v3262_v54  ;;  %3181 = vmatprep.subr.msk.bf16.mxu1 %vm846_vm1, %v3264_v16  ;;  %v1779_v18 = vadd.f32 %v1641_v2, %v3929_v58 }
 0x368   : > { %1844 = vmatpush1.bf16.msra.mxu0 %v1832_v55  ;;  %1885 = vmatpush1.bf16.msra.mxu1 %v1838_v3  ;;  %v1781_v25 = vadd.f32 %v1684_v56, %v3959_v20  ;;  %v3270_v0 = vpack.c.bf16 %v1780_v34, %v1780_v34  ;;  %v3272_v19 = vpack.c.bf16 %v1782_v26, %v1782_v26  ;;  %v1930_v57 = vsel %vm846_vm1, %v3265_v36, 0 }
 0x369   : > { %3187 = vmatprep.subr.msk.bf16.mxu0 %vm846_vm1, %v3266_v61  ;;  %3189 = vmatprep.subr.msk.bf16.mxu1 %vm846_vm1, %v3268_v8  ;;  %v1936_v60 = vsel %vm846_vm1, %v3267_v29, 0  ;;  %v3269_v54 = vpack.c.bf16 %v1779_v18, %v1779_v18  ;;  %v1788_v3 = vadd.f32 %v1647_v42, %v3979_v39  ;;  %v1790_v53 = vadd.f32 %v1690_v38, %v3988_v47 }
 0x36a   : > { %v3271_v61 = vpack.c.bf16 %v1781_v25, %v1781_v25  ;;  %v1787_v27 = vadd.f32 %v1645_v43, %v3998_v41 }
 0x36b   : > { %3180 = vmatmul.mubr.msk.bf16.vlgmr.msra.gmra.mrb[24].mxu0 %vm842_vm2, %v3971_v23  ;;  %3182 = vmatmul.mubr.msk.bf16.vlgmr.msra.gmra.mrb[24].mxu1 %vm842_vm2, %v3971_v23  ;;  %v1789_v23 = vadd.f32 %v1688_v6, %v4005_v50  ;;  %v2028_v15 = vsel %vm846_vm1, %v3269_v54, 0  ;;  %v3274_v2 = vpack.c.bf16 %v1788_v3, %v1788_v3  ;;  %v3276_v56 = vpack.c.bf16 %v1790_v53, %v1790_v53 }
 0x36c   : > { %1942 = vmatpush1.bf16.msra.mxu0 %v1930_v57  ;;  %1983 = vmatpush1.bf16.msra.mxu1 %v1936_v60  ;;  %v2034_v34 = vsel %vm846_vm1, %v3271_v61, 0  ;;  %v3273_v5 = vpack.c.bf16 %v1787_v27, %v1787_v27 }
 0x36d   : > { %3195 = vmatprep.subr.msk.bf16.mxu0 %vm846_vm1, %v3270_v0  ;;  %3197 = vmatprep.subr.msk.bf16.mxu1 %vm846_vm1, %v3272_v19  ;;  %v3275_v43 = vpack.c.bf16 %v1789_v23, %v1789_v23 }
 0x36e   : > { %1973 = vmatprep.mubr.bf16.mxu0 %v4603_v40  ;;  %2014 = vmatprep.mubr.bf16.mxu1 %v4603_v40  ;;  %v2126_v6 = vsel %vm846_vm1, %v3273_v5, 0 }
 0x36f   : > { %v2132_v42 = vsel %vm846_vm1, %v3275_v43, 0 }
 0x373   : > { %3188 = vmatmul.mubr.msk.bf16.vlgmr.msra.gmra.mrb[28].mxu0 %vm842_vm2, %v4010_v52  ;;  %3190 = vmatmul.mubr.msk.bf16.vlgmr.msra.gmra.mrb[28].mxu1 %vm842_vm2, %v4010_v52  ;;  %v4626_v52 = vld [vmem:[#allocation16_spill] sm:$0xff] }
 0x374   : > { %2040 = vmatpush1.bf16.msra.mxu0 %v2028_v15  ;;  %2081 = vmatpush1.bf16.msra.mxu1 %v2034_v34 }
 0x375   : > { %3203 = vmatprep.subr.msk.bf16.mxu0 %vm846_vm1, %v3274_v2  ;;  %3205 = vmatprep.subr.msk.bf16.mxu1 %vm846_vm1, %v3276_v56  ;;  %v4641_v2 = vld [vmem:[#allocation33_spill] sm:$0xff] }
 0x376   : > { %2071 = vmatprep.mubr.bf16.mxu0 %v4603_v40  ;;  %2112 = vmatprep.mubr.bf16.mxu1 %v4603_v40 }
 0x37b   : > { %3196 = vmatmul.mubr.msk.bf16.vlgmr.msra.gmra.mrb[24].mxu0 %vm842_vm2, %v4034_v48  ;;  %3198 = vmatmul.mubr.msk.bf16.vlgmr.msra.gmra.mrb[24].mxu1 %vm842_vm2, %v4034_v48  ;;  %v4627_v48 = vld [vmem:[#allocation18_spill] sm:$0xff] }
 0x37c   : > { %2138 = vmatpush1.bf16.msra.mxu0 %v2126_v6  ;;  %2179 = vmatpush1.bf16.msra.mxu1 %v2132_v42 }
 0x37d   : > { %2169 = vmatprep.mubr.bf16.mxu0 %v4603_v40  ;;  %2210 = vmatprep.mubr.bf16.mxu1 %v4603_v40 }
 0x37e   : > { %2262 = vmatprep.subr.bf16.mxu0 %v4053_v7  ;;  %2305 = vmatprep.subr.bf16.mxu1 %v4059_v13  ;;  %v4629_v7 = vld [vmem:[#allocation17_spill] sm:$0xff]  ;;  %v4632_v13 = vld [vmem:[#allocation22_spill] sm:$0xff] }
 0x383   : > { %3204 = vmatmul.mubr.msk.bf16.vlgmr.msra.gmra.mrb[28].mxu0 %vm842_vm2, %v4045_v63  ;;  %3206 = vmatmul.mubr.msk.bf16.vlgmr.msra.gmra.mrb[28].mxu1 %vm842_vm2, %v4045_v63  ;;  %v4628_v63 = vld [vmem:[#allocation20_spill] sm:$0xff] }
 0x384   : > { %2263 = vmatpush1.bf16.msra.mxu0 %v4055_v11  ;;  %2306 = vmatpush1.bf16.msra.mxu1 %v4057_v12  ;;  %v4630_v11 = vld [vmem:[#allocation19_spill] sm:$0xff]  ;;  %v4631_v12 = vld [vmem:[#allocation21_spill] sm:$0xff] }
 0x385   : > { %2264 = vmatprep.subr.bf16.mxu0 %v4065_v17  ;;  %2307 = vmatprep.subr.bf16.mxu1 %v4071_v24  ;;  %v4633_v17 = vld [vmem:[#allocation23_spill] sm:$0xff] }
 0x386   : > { %2294 = vmatprep.mubr.bf16.mxu0 %v4603_v40  ;;  %2337 = vmatprep.mubr.bf16.mxu1 %v4603_v40  ;;  %v4636_v24 = vld [vmem:[#allocation27_spill] sm:$0xff] }
 0x388   : > { %2265 = vmatpush1.bf16.msra.mxu0 %v4067_v21  ;;  %2308 = vmatpush1.bf16.msra.mxu1 %v4069_v22  ;;  %v4634_v21 = vld [vmem:[#allocation24_spill] sm:$0xff]  ;;  %v4635_v22 = vld [vmem:[#allocation25_spill] sm:$0xff] }
 0x389   : > { %2266 = vmatprep.subr.bf16.mxu0 %v4077_v28  ;;  %2309 = vmatprep.subr.bf16.mxu1 %v4083_v35  ;;  %v4637_v28 = vld [vmem:[#allocation29_spill] sm:$0xff]  ;;  %v4640_v35 = vld [vmem:[#allocation32_spill] sm:$0xff] }
 0x38c   : > { %2267 = vmatpush1.bf16.msra.mxu0 %v4079_v31  ;;  %2310 = vmatpush1.bf16.msra.mxu1 %v4081_v32  ;;  %v4638_v31 = vld [vmem:[#allocation30_spill] sm:$0xff]  ;;  %v4639_v32 = vld [vmem:[#allocation31_spill] sm:$0xff] }
 0x38d   : > { %2268 = vmatprep.subr.bf16.mxu0 %v4089_v46  ;;  %2311 = vmatprep.subr.bf16.mxu1 %v4095_v51 }
 0x390   : > { %2269 = vmatpush1.bf16.msra.mxu0 %v4091_v37  ;;  %2312 = vmatpush1.bf16.msra.mxu1 %v4093_v45 }
 0x391   : > { %2270 = vmatprep.subr.bf16.mxu0 %v4101_v49  ;;  %2313 = vmatprep.subr.bf16.mxu1 %v4107_v44 }
 0x394   : > { %2271 = vmatpush1.bf16.msra.mxu0 %v4103_v33  ;;  %2314 = vmatpush1.bf16.msra.mxu1 %v4626_v52 }
 0x395   : > { %2272 = vmatprep.subr.bf16.mxu0 %v4627_v48  ;;  %2315 = vmatprep.subr.bf16.mxu1 %v4628_v63 }
 0x398   : > { %2273 = vmatpush1.bf16.msra.mxu0 %v4629_v7  ;;  %2316 = vmatpush1.bf16.msra.mxu1 %v4630_v11 }
 0x399   : > { %2274 = vmatprep.subr.bf16.mxu0 %v4631_v12  ;;  %2317 = vmatprep.subr.bf16.mxu1 %v4632_v13 }
 0x39c   : > { %2275 = vmatpush1.bf16.msra.mxu0 %v4633_v17  ;;  %2318 = vmatpush1.bf16.msra.mxu1 %v4634_v21 }
 0x39d   : > { %2276 = vmatprep.subr.bf16.mxu0 %v4635_v22  ;;  %2319 = vmatprep.subr.bf16.mxu1 %v4636_v24  ;;  %v4642_v22 = vld [vmem:[#allocation34_spill] sm:$0xff] }
 0x3a0   : > { %2277 = vmatpush1.bf16.msra.mxu0 %v4637_v28  ;;  %2320 = vmatpush1.bf16.msra.mxu1 %v4638_v31 }
 0x3a1   : > { %2348 = vmatprep.subr.bf16.mxu0 %v4639_v32  ;;  %2391 = vmatprep.subr.bf16.mxu1 %v4640_v35 }
 0x44e   : > { %v2073_v46 = vpop.f32.mrb[24].mxu0  ;;  %v2114_v37 = vpop.f32.mrb[24].mxu1 }
 0x44f   : > { %v2219_v45 = vmul.f32 0.5, %v2073_v46  ;;  %v2221_v51 = vmul.f32 0.5, %v2114_v37  ;;  %v2075_v49 = vpop.f32.mrb[25].mxu0  ;;  %v2116_v33 = vpop.f32.mrb[25].mxu1 }
 0x450   : > { %v2222_v44 = vmul.f32 0.5, %v2116_v33  ;;  %v2077_v38 = vpop.f32.mrb[26].mxu0  ;;  %v2118_v62 = vpop.f32.mrb[26].mxu1  ;;  %v2220_v43 = vmul.f32 0.5, %v2075_v49 }
 0x451   : > { %3437 = vtanh.f32 %v2219_v45  ;;  %v2078_v16 = vpop.f32.mrb[27].mxu0  ;;  %v2119_v30 = vpop.f32.mrb[27].mxu1 }
 0x452   : > { %3439 = vtanh.f32 %v2221_v51  ;;  %v4643_v30 = vld [vmem:[#allocation26_spill] sm:$0xff] }
 0x453   : > { %3441 = vtanh.f32 %v2222_v44 }
 0x456   : > { %v2171_v26 = vpop.f32.mrb[28].mxu0  ;;  %v2212_v55 = vpop.f32.mrb[28].mxu1 }
 0x457   : > { %v2223_v36 = vmul.f32 0.5, %v2171_v26  ;;  %v2225_v29 = vmul.f32 0.5, %v2212_v55  ;;  %v2173_v8 = vpop.f32.mrb[29].mxu0  ;;  %v2214_v18 = vpop.f32.mrb[29].mxu1  ;;  %v4644_v26 = vld [vmem:[#allocation28_spill] sm:$0xff]  ;;  %v4645_v55 = vld [vmem:[#allocation35_spill] sm:$0xff] }
 0x458   : > { %v2226_v25 = vmul.f32 0.5, %v2214_v18  ;;  %v2175_v0 = vpop.f32.mrb[30].mxu0  ;;  %v2216_v19 = vpop.f32.mrb[30].mxu1  ;;  %v2224_v52 = vmul.f32 0.5, %v2173_v8  ;;  %v4648_v8 = vld [vmem:[#allocation38_spill] sm:$0xff]  ;;  %v4649_v18 = vld [vmem:[#allocation39_spill] sm:$0xff] }
 0x459   : > { %3443 = vtanh.f32 %v2223_v36  ;;  %v2176_v57 = vpop.f32.mrb[31].mxu0  ;;  %v2217_v60 = vpop.f32.mrb[31].mxu1  ;;  %v4646_v36 = vld [vmem:[#allocation36_spill] sm:$0xff]  ;;  %v4651_v0 = vld [vmem:[#allocation41_spill] sm:$0xff]  ;;  %v4652_v19 = vld [vmem:[#allocation42_spill] sm:$0xff] }
 0x45a   : > { %3445 = vtanh.f32 %v2225_v29  ;;  %v4647_v29 = vld [vmem:[#allocation37_spill] sm:$0xff]  ;;  %v4653_v57 = vld [vmem:[#allocation43_spill] sm:$0xff]  ;;  %v4654_v60 = vld [vmem:[#allocation44_spill] sm:$0xff] }
 0x45b   : > { %v3438_v54 = vpop.eup %3437  ;;  %3447 = vtanh.f32 %v2226_v25  ;;  %v4650_v25 = vld [vmem:[#allocation40_spill] sm:$0xff] }
 0x45c   : > { %v3440_v61 = vpop.eup %3439  ;;  %v2235_v3 = vmul.f32 0.5, %v3438_v54  ;;  %3449 = vtanh.f32 %v2220_v43  ;;  %v4655_v54 = vld [vmem:[#allocation45_spill] sm:$0xff]  ;;  %v4666_v43 = vld [vmem:[#allocation56_spill] sm:$0xff] }
 0x45d   : > { %v2237_v53 = vmul.f32 0.5, %v3440_v61  ;;  %v3442_v27 = vpop.eup %3441  ;;  %3451 = vtanh.f32 %v2224_v52  ;;  %v4656_v61 = vld [vmem:[#allocation46_spill] sm:$0xff]  ;;  %v4669_v52 = vld [vmem:[#allocation59_spill] sm:$0xff] }
 0x45e   : > { %v2243_v23 = vadd.f32 0.5, %v2235_v3  ;;  %v2238_v34 = vmul.f32 0.5, %v3442_v27  ;;  %v4657_v3 = vld [vmem:[#allocation47_spill] sm:$0xff]  ;;  %v4659_v27 = vld [vmem:[#allocation49_spill] sm:$0xff] }
 0x45f   : > { %v2245_v15 = vadd.f32 0.5, %v2237_v53  ;;  %v4658_v53 = vld [vmem:[#allocation48_spill] sm:$0xff] }
 0x460   : > { %v2246_v5 = vadd.f32 0.5, %v2238_v34  ;;  %v4662_v34 = vld [vmem:[#allocation52_spill] sm:$0xff] }
 0x461   : > { %v2251_v56 = vmul.f32 %v2245_v15, %v4641_v2  ;;  %v4661_v15 = vld [vmem:[#allocation51_spill] sm:$0xff]  ;;  %v4663_v2 = vld [vmem:[#allocation53_spill] sm:$0xff] }
 0x462   : > { %v2253_v42 = vmul.f32 %v2246_v5, %v2243_v23  ;;  %v4660_v23 = vld [vmem:[#allocation50_spill] sm:$0xff]  ;;  %v4665_v5 = vld [vmem:[#allocation55_spill] sm:$0xff] }
 0x463   : > { %v3444_v6 = vpop.eup %3443 }
 0x464   : > { %v3446_v48 = vpop.eup %3445  ;;  %v2239_v63 = vmul.f32 0.5, %v3444_v6  ;;  %v4355_v7 = vadd.f32 %v2253_v42, %v2251_v56  ;;  %v4664_v56 = vld [vmem:[#allocation54_spill] sm:$0xff]  ;;  %v4667_v6 = vld [vmem:[#allocation57_spill] sm:$0xff] }
 0x465   : > { %v2241_v11 = vmul.f32 0.5, %v3446_v48  ;;  %v3448_v12 = vpop.eup %3447  ;;  %v4668_v42 = vld [vmem:[#allocation58_spill] sm:$0xff]  ;;  %v4670_v48 = vld [vmem:[#allocation60_spill] sm:$0xff] }
 0x466   : > { %v2247_v13 = vadd.f32 0.5, %v2239_v63  ;;  %v2242_v21 = vmul.f32 0.5, %v3448_v12  ;;  %3453 = vtanh.f32 %v4355_v7  ;;  %v3450_v35 = vpop.eup %3449  ;;  %v4671_v63 = vld [vmem:[#allocation61_spill] sm:$0xff] }
 0x467   : > { %v2249_v17 = vadd.f32 0.5, %v2241_v11  ;;  %v3452_v46 = vpop.eup %3451  ;;  %v2236_v37 = vmul.f32 0.5, %v3450_v35  ;;  %v4672_v11 = vld [vmem:[#allocation62_spill] sm:$0xff] }
 0x468   : > { %v2250_v28 = vadd.f32 0.5, %v2242_v21  ;;  %v2240_v45 = vmul.f32 0.5, %v3452_v46 }
 0x469   : > { %v2252_v24 = vmul.f32 %v2249_v17, %v4642_v22  ;;  %v2244_v49 = vadd.f32 0.5, %v2236_v37  ;;  %v4673_v37 = vld [vmem:[#allocation12_spill] sm:$0xff] }
 0x46a   : > { %v2254_v31 = vmul.f32 %v2250_v28, %v2247_v13  ;;  %v2248_v33 = vadd.f32 0.5, %v2240_v45 }
 0x46c   : > { %v4359_v32 = vadd.f32 %v2254_v31, %v2252_v24 }
 0x46e   : > { %3455 = vtanh.f32 %v4359_v32 }
 0x470   : > { %v3454_v51 = vpop.eup %3453 }
 0x471   : > { %v2259_v38 = vmul.f32 %v3454_v51, %v2244_v49  ;;  %v4674_v51 = vld [vmem:[#allocation13_spill] sm:$0xff] }
 0x478   : > { %v3456_v44 = vpop.eup %3455 }
 0x479   : > { %v2260_v62 = vmul.f32 %v3456_v44, %v2248_v33 }
 0x47b   : > { %v2261_v16 = vpack.c.bf16 %v2260_v62, %v2259_v38  ;;  %v4675_v62 = vld [vmem:[#allocation14_spill] sm:$0xff] }
 0x47d   : > { %2295 = vmatmul.mubr.bf16.vlgmr.msra.gmra.mrb[32].mxu0 %v2261_v16  ;;  %2338 = vmatmul.mubr.bf16.vlgmr.msra.gmra.mrb[32].mxu1 %v2261_v16 }
 0x47e   : > { %2349 = vmatpush1.bf16.msra.mxu0 %v4643_v30  ;;  %2392 = vmatpush1.bf16.msra.mxu1 %v4644_v26  ;;  %v4676_v30 = vld [vmem:[#allocation15_spill] sm:$0xff] }
 0x47f   : > { %2350 = vmatprep.subr.bf16.mxu0 %v4645_v55  ;;  %2393 = vmatprep.subr.bf16.mxu1 %v4646_v36 }
 0x480   : > { %2380 = vmatprep.mubr.bf16.mxu0 %v4603_v40  ;;  %2423 = vmatprep.mubr.bf16.mxu1 %v4603_v40 }
 0x482   : > { %2351 = vmatpush1.bf16.msra.mxu0 %v4647_v29  ;;  %2394 = vmatpush1.bf16.msra.mxu1 %v4648_v8 }
 0x483   : > { %2352 = vmatprep.subr.bf16.mxu0 %v4649_v18  ;;  %2395 = vmatprep.subr.bf16.mxu1 %v4650_v25 }
 0x486   : > { %2353 = vmatpush1.bf16.msra.mxu0 %v4651_v0  ;;  %2396 = vmatpush1.bf16.msra.mxu1 %v4652_v19 }
 0x487   : > { %2354 = vmatprep.subr.bf16.mxu0 %v4653_v57  ;;  %2397 = vmatprep.subr.bf16.mxu1 %v4654_v60 }
 0x48a   : > { %2355 = vmatpush1.bf16.msra.mxu0 %v4655_v54  ;;  %2398 = vmatpush1.bf16.msra.mxu1 %v4656_v61 }
 0x48b   : > { %2356 = vmatprep.subr.bf16.mxu0 %v4657_v3  ;;  %2399 = vmatprep.subr.bf16.mxu1 %v4658_v53 }
 0x48e   : > { %2357 = vmatpush1.bf16.msra.mxu0 %v4659_v27  ;;  %2400 = vmatpush1.bf16.msra.mxu1 %v4660_v23 }
 0x48f   : > { %2358 = vmatprep.subr.bf16.mxu0 %v4661_v15  ;;  %2401 = vmatprep.subr.bf16.mxu1 %v4662_v34 }
 0x492   : > { %2359 = vmatpush1.bf16.msra.mxu0 %v4663_v2  ;;  %2402 = vmatpush1.bf16.msra.mxu1 %v4664_v56  ;;  %v3477_v56 = vld [vmem:[%s3871_s18] sm:$0xf] }
 0x493   : > { %2360 = vmatprep.subr.bf16.mxu0 %v4665_v5  ;;  %2403 = vmatprep.subr.bf16.mxu1 %v4666_v43 }
 0x496   : > { %2361 = vmatpush1.bf16.msra.mxu0 %v4667_v6  ;;  %2404 = vmatpush1.bf16.msra.mxu1 %v4668_v42 }
 0x497   : > { %2362 = vmatprep.subr.bf16.mxu0 %v4669_v52  ;;  %2405 = vmatprep.subr.bf16.mxu1 %v4670_v48 }
 0x49a   : > { %2363 = vmatpush1.bf16.msra.mxu0 %v4671_v63  ;;  %2406 = vmatpush1.bf16.msra.mxu1 %v4672_v11 }
 0x49d   : > { %2381 = vmatmul.mubr.bf16.vlgmr.msra.gmra.mrb[36].mxu0 %v2261_v16  ;;  %2424 = vmatmul.mubr.bf16.vlgmr.msra.gmra.mrb[36].mxu1 %v2261_v16 }
 0x49e   : > { %2530 = vmatprep.mubr.bf16.mxu0 %v4603_v40  ;;  %2571 = vmatprep.mubr.bf16.mxu1 %v4603_v40 }
 0x550   : > { %v2296_v12 = vpop.f32.mrb[32].mxu0  ;;  %v2339_v13 = vpop.f32.mrb[32].mxu1 }
 0x551   : > { %v2298_v17 = vpop.f32.mrb[33].mxu0  ;;  %v2341_v21 = vpop.f32.mrb[33].mxu1 }
 0x552   : > { %v2300_v22 = vpop.f32.mrb[34].mxu0  ;;  %v2343_v24 = vpop.f32.mrb[34].mxu1  ;;  %v2435_v38 = vadd.f32 %v2298_v17, %v3932_v59  ;;  %v2437_v61 = vadd.f32 %v2341_v21, %v3939_v1  ;;  %v2434_v1 = vadd.f32 %v2296_v12, %v3929_v58  ;;  %v3478_v12 = vld [vmem:[%s3871_s18 + $0x4] sm:$0xf]  ;;  %s3060_s18 = sshll.u32 %s3867_s15, 4 }
 0x553   : > { %v2302_v28 = vpop.f32.mrb[35].mxu0  ;;  %v2345_v31 = vpop.f32.mrb[35].mxu1  ;;  %v2442_v6 = vadd.f32 %v2300_v22, %v3998_v41  ;;  %v2444_v42 = vadd.f32 %v2343_v24, %v4005_v50  ;;  %v3480_v17 = vld [vmem:[%s4028_s26 + $0x4] sm:$0xf]  ;;  %s384_s17 = scalar_lea.vmem [#allocation8], %s3060_s18 }
 0x554   : > { %v3285_v58 = vpack.c.bf16 %v2434_v1, %v2434_v1  ;;  %v2443_v5 = vadd.f32 %v2302_v28, %v3979_v39  ;;  %v2445_v43 = vadd.f32 %v2345_v31, %v3988_v47  ;;  %s2932_s16 = sshll.u32 %s384_s17, 4  ;;  %s4455_s16 = int_to_ptr.vmem [resolvable:$true] %s2932_s16 }
 0x555   : > { %v3289_v39 = vpack.c.bf16 %v2442_v6, %v2442_v6  ;;  %v3291_v47 = vpack.c.bf16 %v2444_v42, %v2444_v42  ;;  %s3567_s25 = scalar_lea.vmem %s4455_s16, 256 }
 0x556   : > { %v2683_v52 = vsel %vm846_vm1, %v3285_v58, 0  ;;  %v3290_v63 = vpack.c.bf16 %v2443_v5, %v2443_v5  ;;  %v3292_v11 = vpack.c.bf16 %v2445_v43, %v2445_v43  ;;  %p3568_p0 = scmp.ne.s32.totalorder %s4455_s16, %s3567_s25 }
 0x557   : > { %v2781_v41 = vsel %vm846_vm1, %v3289_v39, 0  ;;  %v2787_v50 = vsel %vm846_vm1, %v3291_v47, 0 }
 0x558   : > { %p3569_p3 = pnand %p3568_p0, %p4677_p1 }
 0x55a   : > { %p3570_p7 = pneg %p3569_p3 }
 0x570   : > { %v2382_v35 = vpop.f32.mrb[36].mxu0  ;;  %v2425_v46 = vpop.f32.mrb[36].mxu1 }
 0x571   : > { %v2438_v45 = vadd.f32 %v2382_v35, %v4673_v37  ;;  %v2440_v49 = vadd.f32 %v2425_v46, %v4674_v51  ;;  %v2384_v33 = vpop.f32.mrb[37].mxu0  ;;  %v2427_v44 = vpop.f32.mrb[37].mxu1 }
 0x572   : > { %v2439_v16 = vadd.f32 %v2384_v33, %v4675_v62  ;;  %v2441_v26 = vadd.f32 %v2427_v44, %v4676_v30  ;;  %v2386_v55 = vpop.f32.mrb[38].mxu0  ;;  %v2429_v36 = vpop.f32.mrb[38].mxu1 }
 0x573   : > { %v3277_v29 = vpack.c.bf16 %v2438_v45, %v2438_v45  ;;  %v3279_v8 = vpack.c.bf16 %v2440_v49, %v2440_v49  ;;  %v2446_v18 = vadd.f32 %v2386_v55, %v3944_v4  ;;  %v2448_v25 = vadd.f32 %v2429_v36, %v3948_v9  ;;  %v2388_v0 = vpop.f32.mrb[39].mxu0  ;;  %v2431_v19 = vpop.f32.mrb[39].mxu1 }
 0x574   : > { %v3278_v57 = vpack.c.bf16 %v2439_v16, %v2439_v16  ;;  %v3280_v60 = vpack.c.bf16 %v2441_v26, %v2441_v26  ;;  %v2447_v54 = vadd.f32 %v2388_v0, %v3950_v10  ;;  %v2449_v59 = vadd.f32 %v2431_v19, %v3954_v14 }
 0x575   : > { %v2487_v3 = vsel %vm846_vm1, %v3277_v29, 0  ;;  %v2493_v53 = vsel %vm846_vm1, %v3279_v8, 0  ;;  %v3281_v27 = vpack.c.bf16 %v2446_v18, %v2446_v18  ;;  %v3283_v23 = vpack.c.bf16 %v2448_v25, %v2448_v25 }
 0x576   : > { %v3282_v4 = vpack.c.bf16 %v2447_v54, %v2447_v54  ;;  %v3284_v15 = vpack.c.bf16 %v2449_v59, %v2449_v59  ;;  %3211 = vmatprep.subr.msk.bf16.mxu0 %vm846_vm1, %v3278_v57  ;;  %3213 = vmatprep.subr.msk.bf16.mxu1 %vm846_vm1, %v3280_v60  ;;  %v2436_v9 = vadd.f32 %v2339_v13, %v3959_v20  ;;  %v3479_v13 = vld [vmem:[%s4028_s26] sm:$0xf]  ;;  %s3571_s26 = sshll.u32 %s3647_s9, 4  ;;  %s3572_s26 = int_to_ptr.vmem [resolvable:$false] %s3571_s26 }
 0x577   : > { %2499 = vmatpush1.bf16.msra.mxu0 %v2487_v3  ;;  %2540 = vmatpush1.bf16.msra.mxu1 %v2493_v53  ;;  %v3286_v10 = vpack.c.bf16 %v2435_v38, %v2435_v38  ;;  %v3288_v14 = vpack.c.bf16 %v2437_v61, %v2437_v61  ;;  %v2585_v34 = vsel %vm846_vm1, %v3281_v27, 0  ;;  %v2591_v2 = vsel %vm846_vm1, %v3283_v23, 0  ;;  %s3573_s13 = scalar_lea.vmem %s3572_s26, 512  ;;  %p3574_p9 = scmp.lt.s32.totalorder %s4455_s16, %s3572_s26 }
 0x578   : > { %3219 = vmatprep.subr.msk.bf16.mxu0 %vm846_vm1, %v3282_v4  ;;  %3221 = vmatprep.subr.msk.bf16.mxu1 %vm846_vm1, %v3284_v15  ;;  %v3287_v20 = vpack.c.bf16 %v2436_v9, %v2436_v9  ;;  %p3575_p12 = scmp.lt.s32.totalorder %s3573_s13, %s3567_s25 }
 0x57a   : > { %3212 = vmatmul.mubr.msk.bf16.vlgmr.msra.gmra.mrb[40].mxu0 %vm842_vm2, %v3477_v56  ;;  %3214 = vmatmul.mubr.msk.bf16.vlgmr.msra.gmra.mrb[40].mxu1 %vm842_vm2, %v3477_v56  ;;  %v2689_v48 = vsel %vm846_vm1, %v3287_v20, 0  ;;  %p3576_p2 = por %p3575_p12, %p3574_p9 }
 0x57b   : > { %2597 = vmatpush1.bf16.msra.mxu0 %v2585_v34  ;;  %2638 = vmatpush1.bf16.msra.mxu1 %v2591_v2 }
 0x57c   : > { %3227 = vmatprep.subr.msk.bf16.mxu0 %vm846_vm1, %v3286_v10  ;;  %3229 = vmatprep.subr.msk.bf16.mxu1 %vm846_vm1, %v3288_v14  ;;  %p3577_p13 = pnand %p3576_p2, %p3570_p7 }
 0x57d   : > { %2628 = vmatprep.mubr.bf16.mxu0 %v4603_v40  ;;  %2669 = vmatprep.mubr.bf16.mxu1 %v4603_v40 }
 0x582   : > { %3220 = vmatmul.mubr.msk.bf16.vlgmr.msra.gmra.mrb[44].mxu0 %vm842_vm2, %v3478_v12  ;;  %3222 = vmatmul.mubr.msk.bf16.vlgmr.msra.gmra.mrb[44].mxu1 %vm842_vm2, %v3478_v12 }
 0x583   : > { %2695 = vmatpush1.bf16.msra.mxu0 %v2683_v52  ;;  %2736 = vmatpush1.bf16.msra.mxu1 %v2689_v48 }
 0x584   : > { %3235 = vmatprep.subr.msk.bf16.mxu0 %vm846_vm1, %v3290_v63  ;;  %3237 = vmatprep.subr.msk.bf16.mxu1 %vm846_vm1, %v3292_v11 }
 0x585   : > { %2726 = vmatprep.mubr.bf16.mxu0 %v4603_v40  ;;  %2767 = vmatprep.mubr.bf16.mxu1 %v4603_v40 }
 0x58a   : > { %3228 = vmatmul.mubr.msk.bf16.vlgmr.msra.gmra.mrb[40].mxu0 %vm842_vm2, %v3479_v13  ;;  %3230 = vmatmul.mubr.msk.bf16.vlgmr.msra.gmra.mrb[40].mxu1 %vm842_vm2, %v3479_v13 }
 0x58b   : > { %2793 = vmatpush1.bf16.msra.mxu0 %v2781_v41  ;;  %2834 = vmatpush1.bf16.msra.mxu1 %v2787_v50 }
 0x58c   : > { %2824 = vmatprep.mubr.bf16.mxu0 %v4603_v40  ;;  %2865 = vmatprep.mubr.bf16.mxu1 %v4603_v40 }
 0x592   : > { %3236 = vmatmul.mubr.msk.bf16.vlgmr.msra.gmra.mrb[44].mxu0 %vm842_vm2, %v3480_v17  ;;  %3238 = vmatmul.mubr.msk.bf16.vlgmr.msra.gmra.mrb[44].mxu1 %vm842_vm2, %v3480_v17 }
 0x65d   : > { %v2728_v21 = vpop.f32.mrb[40].mxu0  ;;  %v2769_v22 = vpop.f32.mrb[40].mxu1 }
 0x65e   : > { %v2874_v24 = vmul.f32 0.5, %v2728_v21  ;;  %v2876_v28 = vmul.f32 0.5, %v2769_v22  ;;  %v2730_v31 = vpop.f32.mrb[41].mxu0  ;;  %v2771_v35 = vpop.f32.mrb[41].mxu1 }
 0x65f   : > { %v2877_v46 = vmul.f32 0.5, %v2771_v35  ;;  %v2732_v37 = vpop.f32.mrb[42].mxu0  ;;  %v2773_v45 = vpop.f32.mrb[42].mxu1  ;;  %v2875_v18 = vmul.f32 0.5, %v2730_v31 }
 0x660   : > { %3457 = vtanh.f32 %v2874_v24  ;;  %v2733_v51 = vpop.f32.mrb[43].mxu0  ;;  %v2774_v49 = vpop.f32.mrb[43].mxu1 }
 0x661   : > { %3459 = vtanh.f32 %v2876_v28 }
 0x662   : > { %3461 = vtanh.f32 %v2877_v46 }
 0x665   : > { %v2826_v40 = vpop.f32.mrb[44].mxu0  ;;  %v2867_v33 = vpop.f32.mrb[44].mxu1 }
 0x666   : > { %v2878_v44 = vmul.f32 0.5, %v2826_v40  ;;  %v2880_v38 = vmul.f32 0.5, %v2867_v33  ;;  %v2828_v62 = vpop.f32.mrb[45].mxu0  ;;  %v2869_v16 = vpop.f32.mrb[45].mxu1 }
 0x667   : > { %v2881_v30 = vmul.f32 0.5, %v2869_v16  ;;  %v2830_v26 = vpop.f32.mrb[46].mxu0  ;;  %v2871_v55 = vpop.f32.mrb[46].mxu1  ;;  %v2879_v53 = vmul.f32 0.5, %v2828_v62 }
 0x668   : > { %3463 = vtanh.f32 %v2878_v44  ;;  %v2831_v36 = vpop.f32.mrb[47].mxu0  ;;  %v2872_v29 = vpop.f32.mrb[47].mxu1 }
 0x669   : > { %3465 = vtanh.f32 %v2880_v38 }
 0x66a   : > { %v3458_v8 = vpop.eup %3457  ;;  %3467 = vtanh.f32 %v2881_v30 }
 0x66b   : > { %v3460_v25 = vpop.eup %3459  ;;  %v2890_v0 = vmul.f32 0.5, %v3458_v8  ;;  %3469 = vtanh.f32 %v2875_v18 }
 0x66c   : > { %v2892_v19 = vmul.f32 0.5, %v3460_v25  ;;  %v3462_v57 = vpop.eup %3461  ;;  %3471 = vtanh.f32 %v2879_v53 }
 0x66d   : > { %v2898_v60 = vadd.f32 0.5, %v2890_v0  ;;  %v2893_v59 = vmul.f32 0.5, %v3462_v57 }
 0x66e   : > { %v2900_v54 = vadd.f32 0.5, %v2892_v19 }
 0x66f   : > { %v2901_v3 = vadd.f32 0.5, %v2893_v59 }
 0x670   : > { %v2906_v61 = vmul.f32 %v2900_v54, %v4355_v7 }
 0x671   : > { %v2908_v23 = vmul.f32 %v2901_v3, %v2898_v60 }
 0x672   : > { %v3464_v27 = vpop.eup %3463 }
 0x673   : > { %v3466_v4 = vpop.eup %3465  ;;  %v2894_v15 = vmul.f32 0.5, %v3464_v27  ;;  %v2910_v1 = vadd.f32 %v2908_v23, %v2906_v61 }
 0x674   : > { %v2896_v9 = vmul.f32 0.5, %v3466_v4  ;;  %v3468_v10 = vpop.eup %3467 }
 0x675   : > { %3473 = vtanh.f32 %v2910_v1  ;;  %v2902_v14 = vadd.f32 0.5, %v2894_v15  ;;  %v2897_v2 = vmul.f32 0.5, %v3468_v10  ;;  %v3470_v56 = vpop.eup %3469 }
 0x676   : > { %v2904_v34 = vadd.f32 0.5, %v2896_v9  ;;  %v2891_v5 = vmul.f32 0.5, %v3470_v56  ;;  %v3472_v6 = vpop.eup %3471 }
 0x677   : > { %v2905_v7 = vadd.f32 0.5, %v2897_v2  ;;  %v2895_v63 = vmul.f32 0.5, %v3472_v6 }
 0x678   : > { %v2907_v58 = vmul.f32 %v2904_v34, %v4359_v32  ;;  %v2899_v42 = vadd.f32 0.5, %v2891_v5 }
 0x679   : > { %v2909_v20 = vmul.f32 %v2905_v7, %v2902_v14  ;;  %v2903_v11 = vadd.f32 0.5, %v2895_v63 }
 0x67b   : > { %v2911_v43 = vadd.f32 %v2909_v20, %v2907_v58 }
 0x67d   : > { %3475 = vtanh.f32 %v2911_v43 }
 0x67f   : > { %v3474_v52 = vpop.eup %3473 }
 0x680   : > { %v2914_v48 = vmul.f32 %v3474_v52, %v2899_v42 }
 0x682   : > { %2916 = vst [vmem:[%s384_s17] sm:$0xff] %v2914_v48 }
 0x687   : > { %v3476_v12 = vpop.eup %3475 }
 0x688   : > { %v2915_v32 = vmul.f32 %v3476_v12, %v2903_v11 }
 0x68a   : > { %2917 = vst [vmem:[%s384_s17 + $0x8] sm:$0xff] %v2915_v32 }
 0x68b   : > { %3580 = shalt.err (!%p3577_p13)
}
 0x68c   : > { %s3581_s11 = scalar_lea.hbm %s4453_s10, 256  ;;  %s3585_s19 = scalar_lea.hbm %s4507_s8, 512 }
 0x68d   : > { %p3582_p6 = scmp.ne.s32.totalorder %s4453_s10, %s3581_s11  ;;  %p3586_p5 = scmp.lt.u32.totalorder %s4453_s10, %s4507_s8 }
 0x68e   : > { %p3587_p8 = scmp.lt.u32.totalorder %s3585_s19, %s3581_s11  ;;  %p3589_p0 = scmp.lt.u32.totalorder %s3581_s11, %s4453_s10 }
 0x68f   : > { %p3583_p10 = pnand %p3582_p6, %p4677_p1 }
 0x690   : > { %p3588_p11 = por %p3587_p8, %p3586_p5 }
 0x691   : > { %p3584_p4 = pneg %p3583_p10 }
 0x692   : > { %p3590_p3 = por %p3589_p0, %p3588_p11 }
 0x694   : > { %p3591_p7 = pnand %p3590_p3, %p3584_p4 }
 0x696   : > { %3594 = shalt.err (!%p3591_p7)
}
 0x697   : > { %s3648_s25 = smov 128   ;;  %s3649_s9 = smov 8  }
 0x698   : > { %3352 = dma.vmem_to_hbm [thread:$0]  (%p4677_p1), %s4455_s16, 256, %s4453_s10, %s2919_s24, %s3648_s25, %s3648_s25, %s3649_s9  }
 0x699 PF: > { %s2947_s26 = sand.u32 1, %s3625_s27   ;;  %p4678_p9 = scmp.ne.s32.totalorder %s4565_s12, 0 }
 0x69a   : > { %p4679_p12 = scmp.ge.s32.totalorder %s3637_s30, 2  ;;  %s2948_s13 = scalar_lea.sflag [#allocation4], %s2947_s26 }
 0x69c   : > { %p3366_p2 = pnand %p4679_p12, %p4678_p9 }
 0x69e   : > { %3620 = dma.done.wait (!%p3366_p2), %s2948_s13, 256  }
 0x69f   : > { %3622 = vsyncadd (!%p3366_p2), %s2948_s13, 4294967040  ;;  %p22_p13 = scmp.ge.s32.totalorder %s3805_s20, 4   ;;  %s4680_s27 = smov %s3629_s28 }
 0x6a0   : > { %s4681_s28 = smov %s3633_s29  ;;  %s4682_s29 = smov %s3821_s23 }
 0x6a1   : > { %s4683_s30 = smov %s3805_s20  ;;  %24 = sbr.rel (!%p22_p13) target bundleno = 6 (0x6), region = 111 }
 0x6a8   :  { %2953 = vsyncpa [#allocation3], 1 }
 0x6a9   :  { %2955 = vsyncpa [#allocation3 + $0x1], 1 }
 0x6aa   :  { %2956 = vsyncpa [#allocation6], 1 }
 0x6ab   :  { %2957 = vsyncpa [#allocation4], 1 }
 0x6ac   :  { %2959 = vsyncpa [#allocation4 + $0x1], 1 }

// kernel: tpu_custom_call.1
= control target key start
LH: loop header
LB: loop body
LE: loop exit
PB: predicated region body
PF: predicated region fallthrough
CT: control target
= control target key end

     0   :  { %13 = vsyncpa [#allocation3], 0  ;;  %s4499_s0 = inlined_call_operand.vmem [shape: bf16[32,16], index: 0, kind: input, shape index: {}]   ;;  %s4500_s1 = inlined_call_operand.vmem [shape: bf16[4,8,8], index: 1, kind: input, shape index: {}]   ;;  %s4501_s2 = inlined_call_operand.hbm [shape: bf16[4,8,8], index: 2, kind: input, shape index: {}]   ;;  %s4502_s3 = inlined_call_operand.hbm [shape: bf16[16,1024], index: 3, kind: input, shape index: {}]   ;;  %s4503_s4 = inlined_call_operand.hbm [shape: bf16[128,1024], index: 4, kind: input, shape index: {}]   ;;  %s4504_s5 = inlined_call_operand.vmem [shape: f32[1,1024], index: 5, kind: input, shape index: {}]   ;;  %s4505_s6 = inlined_call_operand.vmem [shape: f32[1,1024], index: 6, kind: input, shape index: {}]   ;;  %s4506_s7 = inlined_call_operand.vmem [shape: f32[1,128], index: 7, kind: input, shape index: {}]   ;;  %s4507_s8 = inlined_call_operand.hbm [shape: f32[32,128], index: 8, kind: output, shape index: {}]  }
   0x1   :  { %15 = vsyncpa [#allocation3 + $0x1], 0 }
   0x2   :  { %16 = vsyncpa [#allocation6], 0 }
   0x3   :  { %17 = vsyncpa [#allocation4], 0 }
   0x4   :  { %19 = vsyncpa [#allocation4 + $0x1], 0  ;;  %s3695_s27 = smov 0   ;;  %s3697_s28 = smov 0  }
   0x5   :  { %s3699_s29 = smov 0   ;;  %s3701_s30 = smov 0  }
   0x6 LB: > { %s3716_s9 = sadd.s32 4294967295, %s3637_s30   ;;  %s3048_s10 = sadd.s32 4294967294, %s3637_s30   ;;  %s3637_s30 = sphi %s3701_s30, %s4683_s30   ;;  %s3633_s29 = sphi %s3699_s29, %s4682_s29   ;;  %s3629_s28 = sphi %s3697_s28, %s4681_s28   ;;  %s3625_s27 = sphi %s3695_s27, %s4680_s27  }
   0x7   : > { %p97_p0 = scmp.ne.s32.totalorder %s3629_s28, %s3625_s27  ;;  %p4508_p1 = scmp.eq.s32.totalorder %s3716_s9, 0 }
   0x8   : > { %p232_p3 = scmp.eq.s32.totalorder %s3048_s10, 1  ;;  %p3049_p5 = scmp.ge.s32.totalorder %s3637_s30, 1 }
   0x9   : > { %p3725_p4 = por %p4508_p1, %p97_p0  ;;  %p239_p7 = scmp.lt.s32.totalorder %s3637_s30, 3 }
   0xa   : > { %p3730_p6 = por %p232_p3, %p97_p0  ;;  %s3639_s14 = smov [#allocation5]  }
   0xb   : > { %s4564_s11 = scalar_select %p3725_p4, 1, 0 }
   0xc   : > { %s4565_s12 = scalar_select %p3730_p6, 1, 0 }
   0xd   : > { %p3735_p8 = pnand %p3049_p5, %p239_p7  ;;  %s251_s15 = sshll.u32 %s3639_s14, 4  ;;  %s3739_s15 = int_to_ptr.vmem [resolvable:$true] %s251_s15 }
   0xe   : > { %s3640_s17 = smov [#allocation7]   ;;  %s3481_s21 = scalar_lea.hbm %s4502_s3, 1024 }
   0xf   : > { %p3354_p9 = pneg %p3735_p8  ;;  %s264_s18 = sshll.u32 %s3640_s17, 4  ;;  %s3750_s18 = int_to_ptr.vmem [resolvable:$true] %s264_s18 }
  0x10   : > { %p3482_p12 = scmp.ne.s32.totalorder %s4502_s3, %s3481_s21  ;;  %p3488_p5 = scmp.lt.u32.totalorder %s3481_s21, %s4502_s3 }
  0x11   : > { %p3746_p11 = pnand %p3354_p9, %p4508_p1 }
  0x13   : > { %p3483_p13 = pneg %p3746_p11 }
  0x15   : > { %p3484_p0 = pnand %p3483_p13, %p3482_p12 }
  0x17   : > { %p3485_p3 = pneg %p3484_p0 }
  0x19   : > { %p3490_p7 = pnand %p3488_p5, %p3485_p3 }
  0x1b   : > { %3493 = shalt.err (!%p3490_p7)
}
  0x1c   : > { %s3494_s26 = scalar_lea.vmem %s3739_s15, 1024  ;;  %p3502_p2 = scmp.lt.s32.totalorder %s3739_s15, %s3739_s15 }
  0x1d   : > { %p3495_p9 = scmp.ne.s32.totalorder %s3739_s15, %s3494_s26  ;;  %p3503_p12 = scmp.lt.s32.totalorder %s3494_s26, %s3494_s26 }
  0x1f   : > { %p3497_p10 = pnand %p3495_p9, %p3483_p13  ;;  %p3504_p0 = por %p3503_p12, %p3502_p2 }
  0x21   : > { %p3498_p1 = pneg %p3497_p10 }
  0x23   : > { %p3505_p6 = pnand %p3504_p0, %p3498_p1 }
  0x25   : > { %3508 = shalt.err (!%p3505_p6)
}
  0x26   : > { %s3641_s10 = smov 512   ;;  %s3642_s14 = smov 32  }
  0x27   : > { %3357 = dma.hbm_to_vmem [thread:$0]  (!%p3746_p11), %s4502_s3, 1024, %s3739_s15, [#allocation6], %s3641_s10, %s3641_s10, %s3642_s14  }
  0x28   : > { %s3509_s22 = scalar_lea.hbm %s4503_s4, 8192 }
  0x29   : > { %p3510_p2 = scmp.ne.s32.totalorder %s4503_s4, %s3509_s22  ;;  %p3516_p10 = scmp.lt.u32.totalorder %s3509_s22, %s4503_s4 }
  0x2b   : > { %p3512_p1 = pnand %p3510_p2, %p3483_p13 }
  0x2d   : > { %p3513_p6 = pneg %p3512_p1 }
  0x2f   : > { %p3518_p3 = pnand %p3516_p10, %p3513_p6 }
  0x31   : > { %3521 = shalt.err (!%p3518_p3)
}
  0x32   : > { %s3522_s15 = scalar_lea.vmem %s3750_s18, 8192  ;;  %p3530_p12 = scmp.lt.s32.totalorder %s3750_s18, %s3750_s18 }
  0x33   : > { %p3523_p5 = scmp.ne.s32.totalorder %s3750_s18, %s3522_s15  ;;  %p3531_p0 = scmp.lt.s32.totalorder %s3522_s15, %s3522_s15 }
  0x35   : > { %p3525_p7 = pnand %p3523_p5, %p3483_p13  ;;  %p3532_p2 = por %p3531_p0, %p3530_p12 }
  0x37   : > { %p3526_p9 = pneg %p3525_p7 }
  0x39   : > { %p3533_p1 = pnand %p3532_p2, %p3526_p9 }
  0x3b   : > { %3536 = shalt.err (!%p3533_p1)
}
  0x3c   : > { %3360 = dma.hbm_to_vmem [thread:$0]  (!%p3746_p11), %s4503_s4, 8192, %s3750_s18, [#allocation6], %s3641_s10, %s3641_s10, %s3642_s14  }
  0x3d   : > { %s3805_s20 = sadd.s32 1, %s3637_s30   ;;  %s84_s16 = sadd.s32 1, %s3633_s29 }
  0x3e   : > { %s81_s21 = ssub.s32 %s3637_s30, %s3805_s20  ;;  %p91_p13 = scmp.ne.s32.totalorder %s3633_s29, %s3629_s28 }
  0x3f   : > { %p82_p6 = scmp.eq.s32.totalorder %s81_s21, 0  ;;  %p92_p10 = scmp.eq.s32.totalorder %s3637_s30, 0 }
  0x40   : > { %p4568_p3 = scmp.eq.s32.totalorder %s3716_s9, 1  ;;  %p3371_p7 = scmp.lt.s32.totalorder %s3637_s30, 2 }
  0x41   : > { %s3821_s23 = scalar_select %p82_p6, %s3633_s29, %s84_s16  }
  0x42   : > { %p3815_p5 = por %p4568_p3, %p91_p13  ;;  %p93_p9 = por %p92_p10, %p91_p13 }
  0x43   : > { %s305_s24 = sand.u32 1, %s3633_s29   ;;  %s3244_s18 = sshll.u32 %s3637_s30, 7 }
  0x44   : > { %s4569_s22 = scalar_select %p3815_p5, 1, 0 }
  0x45   : > { %s3053_s25 = sshll.u32 %s305_s24, 3  ;;  %s3828_s26 = scalar_lea.hbm %s4501_s2, %s3244_s18 }
  0x46   : > { %s309_s15 = scalar_lea.vmem [#allocation2], %s3053_s25  ;;  %p3832_p11 = pnand %p3371_p7, %p93_p9 }
  0x47   : > { %s316_s17 = sshll.u32 %s309_s15, 4  ;;  %s3836_s16 = scalar_lea.sflag [#allocation3], %s305_s24  ;;  %s3830_s17 = int_to_ptr.vmem [resolvable:$true] %s316_s17 }
  0x48   : > { %s3537_s21 = scalar_lea.hbm %s3828_s26, 128  ;;  %p3539_p0 = pneg %p3832_p11 }
  0x49   : > { %p3538_p12 = scmp.ne.s32.totalorder %s3828_s26, %s3537_s21  ;;  %s3542_s10 = scalar_lea.hbm %s4501_s2, 256 }
  0x4a   : > { %p3543_p13 = scmp.lt.u32.totalorder %s3828_s26, %s4501_s2  ;;  %p3544_p6 = scmp.lt.u32.totalorder %s3542_s10, %s3537_s21 }
  0x4b   : > { %p3540_p2 = pnand %p3539_p0, %p3538_p12  ;;  %p3546_p3 = scmp.lt.u32.totalorder %s3537_s21, %s3828_s26 }
  0x4c   : > { %p3545_p10 = por %p3544_p6, %p3543_p13 }
  0x4d   : > { %p3541_p1 = pneg %p3540_p2 }
  0x4e   : > { %p3547_p7 = por %p3546_p3, %p3545_p10 }
  0x50   : > { %p3548_p9 = pnand %p3547_p7, %p3541_p1 }
  0x52   : > { %3551 = shalt.err (!%p3548_p9)
}
  0x53   : > { %s3552_s24 = scalar_lea.vmem %s3830_s17, 128  ;;  %s3643_s25 = smov [#allocation2]  }
  0x54   : > { %p3553_p12 = scmp.ne.s32.totalorder %s3830_s17, %s3552_s24  ;;  %s3557_s18 = sshll.u32 %s3643_s25, 4  ;;  %s3558_s18 = int_to_ptr.vmem [resolvable:$false] %s3557_s18 }
  0x55   : > { %s3559_s14 = scalar_lea.vmem %s3558_s18, 256  ;;  %p3560_p4 = scmp.lt.s32.totalorder %s3830_s17, %s3558_s18 }
  0x56   : > { %p3555_p2 = pnand %p3553_p12, %p3539_p0  ;;  %p3561_p13 = scmp.lt.s32.totalorder %s3559_s14, %s3552_s24 }
  0x58   : > { %p3556_p5 = pneg %p3555_p2  ;;  %p3562_p6 = por %p3561_p13, %p3560_p4 }
  0x5a   : > { %p3563_p10 = pnand %p3562_p6, %p3556_p5 }
  0x5c   : > { %3566 = shalt.err (!%p3563_p10)
}
  0x5d   : > { %s3644_s21 = smov 64   ;;  %s3645_s10 = smov 4  }
  0x5e   : > { %3364 = dma.hbm_to_vmem [thread:$0]  (!%p3832_p11), %s3828_s26, 128, %s3830_s17, %s3836_s16, %s3644_s21, %s3644_s21, %s3645_s10  }
  0x5f   : > { %328 = sbr.rel (%p3735_p8) target bundleno = 1689 (0x699), region = 52 }
  0x66   : > { %s3867_s15 = sand.u32 1, %s3629_s28   ;;  %p4571_p4 = scmp.ne.s32.totalorder %s4564_s11, 0 }
  0x67   : > { %s3057_s24 = sshll.u32 %s3867_s15, 3  ;;  %s331_s25 = scalar_lea.sflag [#allocation3], %s3867_s15 }
  0x68   : > { %s3871_s18 = scalar_lea.vmem [#allocation2], %s3057_s24 }
  0x69   : > { %3612 = dma.done.wait (%p4571_p4), %s331_s25, 128  }
  0x6a   : > { %3614 = vsyncadd (%p4571_p4), %s331_s25, 4294967168  ;;  %p4572_p5 = scmp.eq.s32.totalorder %s3716_s9, 0 }
  0x6c   : > { %3616 = dma.done.wait (%p4572_p5), [#allocation6], 9216   ;;  %p4573_p8 = pmov %p4572_p5 }
  0x6d   : > { %s3061_s13 = sshll.u32 %s3716_s9, 1  ;;  %v4511_v0 = vmov 0   ;;  %v406_v1 = vld [vmem:[#allocation5] sm:$0xff]  ;;  %v407_v3 = vld [vmem:[#allocation5 + $0x8] sm:$0xff]  ;;  %v408_v9 = vld [vmem:[#allocation5 + $0x10] sm:$0xff]  ;;  %vm565_vm0 = vcmask 130048   ;;  %v480_v18 = vlaneseq }
  0x6e   : > { %3618 = vsyncadd (%p4573_p8), [#allocation6], 4294958080  ;;  %601 = vmatprep.mubr.bf16.mxu0 %v4511_v0  ;;  %644 = vmatprep.mubr.bf16.mxu1 %v4511_v0  ;;  %p386_p11 = scmp.lt.s32.totalorder %s3061_s13, 3  ;;  %v410_v2 = vld [vmem:[#allocation5 + $0x20] sm:$0xff]  ;;  %v411_v5 = vld [vmem:[#allocation5 + $0x28] sm:$0xff]  ;;  %vm846_vm1 = vcmask 1043456  }
  0x6f   : > { %v3067_v4 = vcombine.high %v406_v1, %v410_v2  ;;  %v3066_v6 = vcombine.low %v406_v1, %v410_v2  ;;  %v3069_v7 = vcombine.high %v407_v3, %v411_v5  ;;  %v3068_v8 = vcombine.low %v407_v3, %v411_v5  ;;  %v412_v10 = vld [vmem:[#allocation5 + $0x30] sm:$0xff]  ;;  %v409_v13 = vld [vmem:[#allocation5 + $0x18] sm:$0xff]  ;;  %s2919_s24 = scalar_lea.sflag [#allocation4], %s3867_s15  ;;  %p4677_p1 = scmp.ne.s32.totalorder %s4569_s22, 0 }
  0x70   : > { %s4685_s13 = smov (!%p386_p11, %s3061_s13), 3  ;;  %v3071_v12 = vcombine.high %v408_v9, %v412_v10  ;;  %v413_v14 = vld [vmem:[#allocation5 + $0x38] sm:$0xff]  ;;  %v3070_v15 = vcombine.low %v408_v9, %v412_v10  ;;  %v481_v19 = vshrl.u32 %v480_v18, 7  ;;  %vm842_vm2 = vcmask 64512  }
  0x71   : > { %s3062_s11 = sshll.u32 %s4685_s13, 2  ;;  %569 = vmatprep.subr.bf16.mxu0 %v3067_v4  ;;  %612 = vmatprep.subr.bf16.mxu1 %v3069_v7  ;;  %v3073_v16 = vcombine.high %v409_v13, %v413_v14  ;;  %v3072_v17 = vcombine.low %v409_v13, %v413_v14  ;;  %v478_v21 = vld [vmem:[%s4504_s5] sm:$0xff] }
  0x72   : > { %s389_s19 = scalar_lea.vmem %s4499_s0, %s3062_s11  ;;  %570 = vmatpush1.bf16.msra.mxu0 %v3066_v6  ;;  %613 = vmatpush1.bf16.msra.mxu1 %v3068_v8  ;;  %v482_v22 = vsub.s32 0, %v481_v19  ;;  %v498_v25 = vsub.s32 4, %v481_v19  ;;  %v490_v26 = vsub.s32 2, %v481_v19  ;;  %v486_v27 = vsub.s32 1, %v481_v19  ;;  %v748_v36 = vld [vmem:[%s4505_s6] sm:$0xff]  ;;  %s4028_s26 = scalar_lea.vmem %s4500_s1, %s3062_s11 }
  0x73   : > { %v3416_v11 = vld [vmem:[%s389_s19] sm:$0xff]   ;;  %655 = vmatprep.subr.bf16.mxu0 %v3071_v12  ;;  %698 = vmatprep.subr.bf16.mxu1 %v3073_v16  ;;  %v506_v30 = vsub.s32 6, %v481_v19  ;;  %v502_v31 = vsub.s32 5, %v481_v19  ;;  %v494_v32 = vsub.s32 3, %v481_v19  ;;  %v510_v35 = vsub.s32 7, %v481_v19  ;;  %s3293_s19 = sshll.u32 %s3716_s9, 8 }
  0x74   : > { %v3910_v38 = vrot.slane %v478_v21, %v482_v22  ;;  %v499_v39 = vrot.slane %v478_v21, %v498_v25  ;;  %v3912_v40 = vrot.slane %v478_v21, %v490_v26  ;;  %v3914_v41 = vrot.slane %v478_v21, %v486_v27  ;;  %s4453_s10 = scalar_lea.hbm %s4507_s8, %s3293_s19  ;;  %s3647_s9 = smov [#allocation8]  }
  0x75   : > { %3074 = vmatmul.mubr.msk.bf16.vlgmr.msra.gmra.mrb[0].mxu0 %vm565_vm0, %v3416_v11  ;;  %3075 = vmatmul.mubr.msk.bf16.vlgmr.msra.gmra.mrb[0].mxu1 %vm565_vm0, %v3416_v11  ;;  %v507_v42 = vrot.slane %v478_v21, %v506_v30  ;;  %v503_v43 = vrot.slane %v478_v21, %v502_v31  ;;  %v3916_v44 = vrot.slane %v748_v36, %v482_v22 }
  0x76   : > { %656 = vmatpush1.bf16.msra.mxu0 %v3070_v15  ;;  %699 = vmatpush1.bf16.msra.mxu1 %v3072_v17  ;;  %v3918_v45 = vrot.slane %v478_v21, %v494_v32  ;;  %v769_v46 = vrot.slane %v748_v36, %v498_v25  ;;  %v511_v47 = vrot.slane %v478_v21, %v510_v35 }
  0x77   : > { %687 = vmatprep.mubr.bf16.mxu0 %v4511_v0  ;;  %730 = vmatprep.mubr.bf16.mxu1 %v4511_v0  ;;  %v3920_v48 = vrot.slane %v748_v36, %v490_v26  ;;  %v3922_v49 = vrot.slane %v748_v36, %v486_v27  ;;  %v777_v51 = vrot.slane %v748_v36, %v506_v30 }
  0x78   : > { %v773_v52 = vrot.slane %v748_v36, %v502_v31  ;;  %v3924_v53 = vrot.slane %v748_v36, %v494_v32  ;;  %v781_v57 = vrot.slane %v748_v36, %v510_v35 }
  0x7d   : > { %3076 = vmatmul.mubr.msk.bf16.vlgmr.msra.gmra.mrb[4].mxu0 %vm565_vm0, %v3416_v11  ;;  %3077 = vmatmul.mubr.msk.bf16.vlgmr.msra.gmra.mrb[4].mxu1 %vm565_vm0, %v3416_v11 }
  0x7e   : > { %891 = vmatprep.mubr.bf16.mxu0 %v4511_v0  ;;  %932 = vmatprep.mubr.bf16.mxu1 %v4511_v0 }
 0x148   : > { %v603_v20 = vpop.f32.mrb[0].mxu0  ;;  %v646_v23 = vpop.f32.mrb[0].mxu1 }
 0x149   : > { %v605_v24 = vpop.f32.mrb[1].mxu0  ;;  %v648_v28 = vpop.f32.mrb[1].mxu1  ;;  %v3929_v58 = vadd.f32 %v603_v20, %v3910_v38  ;;  %v3959_v20 = vadd.f32 %v646_v23, %v3912_v40  ;;  %v3971_v23 = vld [vmem:[%s3871_s18] sm:$0xf] }
 0x14a   : > { %v3899_v29 = vpop.f32.mrb[2].mxu0  ;;  %v3901_v33 = vpop.f32.mrb[2].mxu1  ;;  %v3932_v59 = vadd.f32 %v605_v24, %v3914_v41  ;;  %v3939_v1 = vadd.f32 %v648_v28, %v3918_v45 }
 0x14b   : > { %v3903_v34 = vpop.f32.mrb[3].mxu0  ;;  %v3908_v37 = vpop.f32.mrb[3].mxu1  ;;  %v790_v35 = vadd.f32 %v3916_v44, %v3929_v58 }
 0x14c   : > { %v791_v25 = vadd.f32 %v3922_v49, %v3932_v59  ;;  %v793_v30 = vadd.f32 %v3924_v53, %v3939_v1 }
 0x14e   : > { %v3254_v36 = vpack.c.bf16 %v791_v25, %v791_v25  ;;  %v430_v25 = vld [vmem:[#allocation7 + $0x80] sm:$0xff] }
 0x150   : > { %v689_v50 = vpop.f32.mrb[4].mxu0  ;;  %v732_v55 = vpop.f32.mrb[4].mxu1 }
 0x151   : > { %v3926_v54 = vadd.f32 %v689_v50, %v499_v39  ;;  %v691_v56 = vpop.f32.mrb[5].mxu0  ;;  %v3934_v60 = vadd.f32 %v732_v55, %v507_v42  ;;  %v734_v62 = vpop.f32.mrb[5].mxu1  ;;  %v4005_v50 = vadd.f32 %v3901_v33, %v3912_v40 }
 0x152   : > { %v3936_v61 = vadd.f32 %v691_v56, %v503_v43  ;;  %v693_v63 = vpop.f32.mrb[6].mxu0  ;;  %v3942_v3 = vadd.f32 %v734_v62, %v511_v47  ;;  %v736_v5 = vpop.f32.mrb[6].mxu1 }
 0x153   : > { %4574 = vst [vmem:[#allocation12_spill] sm:$0xff] %v3926_v54  ;;  %4575 = vst [vmem:[#allocation13_spill] sm:$0xff] %v3934_v60  ;;  %v794_v2 = vadd.f32 %v769_v46, %v3926_v54  ;;  %v3944_v4 = vadd.f32 %v693_v63, %v499_v39  ;;  %v695_v6 = vpop.f32.mrb[7].mxu0  ;;  %v796_v7 = vadd.f32 %v777_v51, %v3934_v60  ;;  %v738_v11 = vpop.f32.mrb[7].mxu1  ;;  %v4045_v63 = vld [vmem:[%s4028_s26 + $0x4] sm:$0xf] }
 0x154   : > { %4576 = vst [vmem:[#allocation14_spill] sm:$0xff] %v3936_v61  ;;  %4577 = vst [vmem:[#allocation15_spill] sm:$0xff] %v3942_v3  ;;  %v795_v8 = vadd.f32 %v773_v52, %v3936_v61  ;;  %v3948_v9 = vadd.f32 %v736_v5, %v507_v42  ;;  %v3950_v10 = vadd.f32 %v695_v6, %v503_v43  ;;  %v418_v5 = vld [vmem:[#allocation7 + $0x20] sm:$0xff]  ;;  %v415_v6 = vld [vmem:[#allocation7 + $0x8] sm:$0xff] }
 0x155   : > { %v797_v12 = vadd.f32 %v781_v57, %v3942_v3  ;;  %v802_v13 = vadd.f32 %v769_v46, %v3944_v4  ;;  %v3954_v14 = vadd.f32 %v738_v11, %v511_v47  ;;  %v3245_v15 = vpack.c.bf16 %v794_v2, %v794_v2  ;;  %v414_v2 = vld [vmem:[#allocation7] sm:$0xff] }
 0x156   : > { %v3246_v16 = vpack.c.bf16 %v795_v8, %v795_v8  ;;  %v804_v17 = vadd.f32 %v777_v51, %v3948_v9  ;;  %v803_v18 = vadd.f32 %v773_v52, %v3950_v10  ;;  %v3247_v19 = vpack.c.bf16 %v796_v7, %v796_v7  ;;  %v4010_v52 = vld [vmem:[%s3871_s18 + $0x4] sm:$0xf]  ;;  %v419_v8 = vld [vmem:[#allocation7 + $0x28] sm:$0xff] }
 0x157   : > { %v3248_v21 = vpack.c.bf16 %v797_v12, %v797_v12  ;;  %v805_v22 = vadd.f32 %v781_v57, %v3954_v14  ;;  %v848_v24 = vsel %vm846_vm1, %v3245_v15, 0  ;;  %v3249_v28 = vpack.c.bf16 %v802_v13, %v802_v13  ;;  %v422_v15 = vld [vmem:[#allocation7 + $0x40] sm:$0xff] }
 0x158   : > { %v3250_v26 = vpack.c.bf16 %v803_v18, %v803_v18  ;;  %3083 = vmatprep.subr.msk.bf16.mxu0 %vm846_vm1, %v3246_v16  ;;  %v854_v27 = vsel %vm846_vm1, %v3247_v19, 0  ;;  %v3251_v32 = vpack.c.bf16 %v804_v17, %v804_v17  ;;  %v3979_v39 = vadd.f32 %v3903_v34, %v3914_v41  ;;  %v426_v16 = vld [vmem:[#allocation7 + $0x60] sm:$0xff]  ;;  %v423_v18 = vld [vmem:[#allocation7 + $0x48] sm:$0xff] }
 0x159   : > { %v3252_v31 = vpack.c.bf16 %v805_v22, %v805_v22  ;;  %3085 = vmatprep.subr.msk.bf16.mxu1 %vm846_vm1, %v3248_v21  ;;  %860 = vmatpush1.bf16.msra.mxu0 %v848_v24  ;;  %v949_v42 = vsel %vm846_vm1, %v3249_v28, 0  ;;  %v792_v43 = vadd.f32 %v3920_v48, %v3959_v20  ;;  %v3256_v46 = vpack.c.bf16 %v793_v30, %v793_v30  ;;  %v427_v19 = vld [vmem:[#allocation7 + $0x68] sm:$0xff] }
 0x15a   : > { %901 = vmatpush1.bf16.msra.mxu1 %v854_v27  ;;  %3091 = vmatprep.subr.msk.bf16.mxu0 %vm846_vm1, %v3250_v26  ;;  %v3988_v47 = vadd.f32 %v3908_v37, %v3918_v45  ;;  %v955_v34 = vsel %vm846_vm1, %v3251_v32, 0  ;;  %v3998_v41 = vadd.f32 %v3899_v29, %v3910_v38  ;;  %v799_v37 = vadd.f32 %v3922_v49, %v3979_v39  ;;  %v434_v26 = vld [vmem:[#allocation7 + $0xa0] sm:$0xff]  ;;  %v431_v27 = vld [vmem:[#allocation7 + $0x88] sm:$0xff] }
 0x15b   : > { %3093 = vmatprep.subr.msk.bf16.mxu1 %vm846_vm1, %v3252_v31  ;;  %v3253_v45 = vpack.c.bf16 %v790_v35, %v790_v35  ;;  %v3255_v55 = vpack.c.bf16 %v792_v43, %v792_v43  ;;  %v800_v56 = vadd.f32 %v3920_v48, %v4005_v50  ;;  %v4034_v48 = vld [vmem:[%s4028_s26] sm:$0xf]  ;;  %v4053_v7 = vcombine.high %v414_v2, %v418_v5  ;;  %v435_v30 = vld [vmem:[#allocation7 + $0xa8] sm:$0xff] }
 0x15c   : > { %3084 = vmatmul.mubr.msk.bf16.vlgmr.msra.gmra.mrb[8].mxu0 %vm842_vm2, %v3971_v23  ;;  %v801_v51 = vadd.f32 %v3924_v53, %v3988_v47  ;;  %v798_v29 = vadd.f32 %v3916_v44, %v3998_v41  ;;  %v3258_v38 = vpack.c.bf16 %v799_v37, %v799_v37  ;;  %v4055_v11 = vcombine.low %v414_v2, %v418_v5  ;;  %v439_v43 = vld [vmem:[#allocation7 + $0xc8] sm:$0xff] }
 0x15d   : > { %3086 = vmatmul.mubr.msk.bf16.vlgmr.msra.gmra.mrb[8].mxu1 %vm842_vm2, %v3971_v23  ;;  %961 = vmatpush1.bf16.msra.mxu0 %v949_v42  ;;  %v1050_v49 = vsel %vm846_vm1, %v3253_v45, 0  ;;  %v1056_v40 = vsel %vm846_vm1, %v3255_v55, 0  ;;  %v3259_v53 = vpack.c.bf16 %v800_v56, %v800_v56  ;;  %v4057_v12 = vcombine.low %v415_v6, %v419_v8  ;;  %v442_v42 = vld [vmem:[#allocation7 + $0xe0] sm:$0xff]  ;;  %v451_v56 = vld [vmem:[#allocation7 + $0x128] sm:$0xff] }
 0x15e   : > { %1002 = vmatpush1.bf16.msra.mxu1 %v955_v34  ;;  %3099 = vmatprep.subr.msk.bf16.mxu0 %vm846_vm1, %v3254_v36  ;;  %v3260_v33 = vpack.c.bf16 %v801_v51, %v801_v51  ;;  %v3257_v44 = vpack.c.bf16 %v798_v29, %v798_v29  ;;  %v4059_v13 = vcombine.high %v415_v6, %v419_v8  ;;  %v438_v36 = vld [vmem:[#allocation7 + $0xc0] sm:$0xff]  ;;  %v443_v34 = vld [vmem:[#allocation7 + $0xe8] sm:$0xff] }
 0x15f   : > { %3101 = vmatprep.subr.msk.bf16.mxu1 %vm846_vm1, %v3256_v46  ;;  %992 = vmatprep.mubr.bf16.mxu0 %v4511_v0  ;;  %v1157_v62 = vsel %vm846_vm1, %v3259_v53, 0  ;;  %v4065_v17 = vcombine.high %v422_v15, %v426_v16  ;;  %v4067_v21 = vcombine.low %v422_v15, %v426_v16  ;;  %v4069_v22 = vcombine.low %v423_v18, %v427_v19  ;;  %v446_v55 = vld [vmem:[#allocation7 + $0x100] sm:$0xff]  ;;  %v459_v6 = vld [vmem:[#allocation7 + $0x168] sm:$0xff] }
 0x160   : > { %1033 = vmatprep.mubr.bf16.mxu1 %v4511_v0  ;;  %v1151_v57 = vsel %vm846_vm1, %v3257_v44, 0  ;;  %v4071_v24 = vcombine.high %v423_v18, %v427_v19  ;;  %v4077_v28 = vcombine.high %v430_v25, %v434_v26  ;;  %v4079_v31 = vcombine.low %v430_v25, %v434_v26  ;;  %v450_v29 = vld [vmem:[#allocation7 + $0x120] sm:$0xff]  ;;  %v463_v25 = vld [vmem:[#allocation7 + $0x188] sm:$0xff] }
 0x161   : > { %v4081_v32 = vcombine.low %v431_v27, %v435_v30  ;;  %v4083_v35 = vcombine.high %v431_v27, %v435_v30  ;;  %v4089_v46 = vcombine.high %v438_v36, %v442_v42  ;;  %v4091_v37 = vcombine.low %v438_v36, %v442_v42  ;;  %v454_v53 = vld [vmem:[#allocation7 + $0x140] sm:$0xff]  ;;  %v467_v26 = vld [vmem:[#allocation7 + $0x1a8] sm:$0xff] }
 0x162   : > { %v4093_v45 = vcombine.low %v439_v43, %v443_v34  ;;  %v4095_v51 = vcombine.high %v439_v43, %v443_v34  ;;  %v462_v8 = vld [vmem:[#allocation7 + $0x180] sm:$0xff]  ;;  %v4124_v30 = vcombine.high %v463_v25, %v467_v26  ;;  %v471_v42 = vld [vmem:[#allocation7 + $0x1c8] sm:$0xff] }
 0x163   : > { %v466_v15 = vld [vmem:[#allocation7 + $0x1a0] sm:$0xff]  ;;  %v475_v43 = vld [vmem:[#allocation7 + $0x1e8] sm:$0xff] }
 0x164   : > { %3092 = vmatmul.mubr.msk.bf16.vlgmr.msra.gmra.mrb[12].mxu0 %vm842_vm2, %v4010_v52  ;;  %v4121_v19 = vcombine.high %v462_v8, %v466_v15  ;;  %v470_v27 = vld [vmem:[#allocation7 + $0x1c0] sm:$0xff]  ;;  %4584 = vst [vmem:[#allocation22_spill] sm:$0xff] %v4124_v30  ;;  %v4128_v34 = vcombine.low %v462_v8, %v466_v15 }
 0x165   : > { %3094 = vmatmul.mubr.msk.bf16.vlgmr.msra.gmra.mrb[12].mxu1 %vm842_vm2, %v4010_v52  ;;  %1062 = vmatpush1.bf16.msra.mxu0 %v1050_v49  ;;  %v4101_v49 = vcombine.high %v446_v55, %v450_v29  ;;  %v474_v36 = vld [vmem:[#allocation7 + $0x1e0] sm:$0xff] }
 0x166   : > { %1103 = vmatpush1.bf16.msra.mxu1 %v1056_v40  ;;  %3107 = vmatprep.subr.msk.bf16.mxu0 %vm846_vm1, %v3258_v38  ;;  %v447_v38 = vld [vmem:[#allocation7 + $0x108] sm:$0xff]  ;;  %4583 = vst [vmem:[#allocation21_spill] sm:$0xff] %v4121_v19  ;;  %4585 = vst [vmem:[#allocation23_spill] sm:$0xff] %v4128_v34  ;;  %v4144_v15 = vcombine.low %v470_v27, %v474_v36 }
 0x167   : > { %3109 = vmatprep.subr.msk.bf16.mxu1 %vm846_vm1, %v3260_v33  ;;  %1093 = vmatprep.mubr.bf16.mxu0 %v4511_v0  ;;  %v4103_v33 = vcombine.low %v446_v55, %v450_v29  ;;  %v4105_v40 = vcombine.low %v447_v38, %v451_v56  ;;  %v4107_v44 = vcombine.high %v447_v38, %v451_v56  ;;  %v416_v55 = vld [vmem:[#allocation7 + $0x10] sm:$0xff]  ;;  %v417_v38 = vld [vmem:[#allocation7 + $0x18] sm:$0xff] }
 0x168   : > { %1134 = vmatprep.mubr.bf16.mxu1 %v4511_v0  ;;  %v420_v29 = vld [vmem:[#allocation7 + $0x30] sm:$0xff]  ;;  %v4132_v56 = vcombine.low %v463_v25, %v467_v26  ;;  %4591 = vst [vmem:[#allocation29_spill] sm:$0xff] %v4144_v15  ;;  %v4148_v25 = vcombine.low %v471_v42, %v475_v43 }
 0x169   : > { %4578 = vst [vmem:[#allocation16_spill] sm:$0xff] %v4105_v40  ;;  %v4150_v26 = vcombine.high %v416_v55, %v420_v29 }
 0x16a   : > { %4586 = vst [vmem:[#allocation24_spill] sm:$0xff] %v4132_v56  ;;  %4592 = vst [vmem:[#allocation30_spill] sm:$0xff] %v4148_v25 }
 0x16b   : > { %4593 = vst [vmem:[#allocation31_spill] sm:$0xff] %v4150_v26 }
 0x16c   : > { %3100 = vmatmul.mubr.msk.bf16.vlgmr.msra.gmra.mrb[8].mxu0 %vm842_vm2, %v4034_v48 }
 0x16d   : > { %3102 = vmatmul.mubr.msk.bf16.vlgmr.msra.gmra.mrb[8].mxu1 %vm842_vm2, %v4034_v48  ;;  %1163 = vmatpush1.bf16.msra.mxu0 %v1151_v57  ;;  %v458_v57 = vld [vmem:[#allocation7 + $0x160] sm:$0xff] }
 0x16e   : > { %1204 = vmatpush1.bf16.msra.mxu1 %v1157_v62  ;;  %1194 = vmatprep.mubr.bf16.mxu0 %v4511_v0  ;;  %v455_v62 = vld [vmem:[#allocation7 + $0x148] sm:$0xff]  ;;  %v4113_v2 = vcombine.low %v454_v53, %v458_v57  ;;  %v4115_v5 = vcombine.high %v454_v53, %v458_v57  ;;  %v4134_v53 = vcombine.high %v470_v27, %v474_v36 }
 0x16f   : > { %1235 = vmatprep.mubr.bf16.mxu1 %v4511_v0  ;;  %1607 = vmatprep.subr.bf16.mxu0 %v4053_v7  ;;  %v4117_v16 = vcombine.low %v455_v62, %v459_v6  ;;  %v4119_v18 = vcombine.high %v455_v62, %v459_v6  ;;  %v4136_v57 = vcombine.low %v416_v55, %v420_v29  ;;  %v421_v62 = vld [vmem:[#allocation7 + $0x38] sm:$0xff] }
 0x170   : > { %1650 = vmatprep.subr.bf16.mxu1 %v4059_v13  ;;  %4579 = vst [vmem:[#allocation17_spill] sm:$0xff] %v4113_v2  ;;  %4580 = vst [vmem:[#allocation18_spill] sm:$0xff] %v4115_v5  ;;  %v4139_v6 = vcombine.high %v471_v42, %v475_v43  ;;  %v4141_v8 = vcombine.low %v417_v38, %v421_v62 }
 0x171   : > { %4581 = vst [vmem:[#allocation19_spill] sm:$0xff] %v4117_v16  ;;  %4582 = vst [vmem:[#allocation20_spill] sm:$0xff] %v4119_v18 }
 0x172   : > { %4587 = vst [vmem:[#allocation25_spill] sm:$0xff] %v4134_v53  ;;  %4588 = vst [vmem:[#allocation26_spill] sm:$0xff] %v4136_v57 }
 0x173   : > { %4589 = vst [vmem:[#allocation27_spill] sm:$0xff] %v4139_v6  ;;  %4590 = vst [vmem:[#allocation28_spill] sm:$0xff] %v4141_v8 }
 0x174   : > { %3108 = vmatmul.mubr.msk.bf16.vlgmr.msra.gmra.mrb[12].mxu0 %vm842_vm2, %v4045_v63 }
 0x175   : > { %3110 = vmatmul.mubr.msk.bf16.vlgmr.msra.gmra.mrb[12].mxu1 %vm842_vm2, %v4045_v63  ;;  %1639 = vmatprep.mubr.bf16.mxu0 %v4511_v0 }
 0x176   : > { %1682 = vmatprep.mubr.bf16.mxu1 %v4511_v0  ;;  %1608 = vmatpush1.bf16.msra.mxu0 %v4055_v11  ;;  %v4153_v0 = vcombine.high %v417_v38, %v421_v62 }
 0x177   : > { %1651 = vmatpush1.bf16.msra.mxu1 %v4057_v12  ;;  %1609 = vmatprep.subr.bf16.mxu0 %v4065_v17 }
 0x178   : > { %1652 = vmatprep.subr.bf16.mxu1 %v4071_v24  ;;  %4594 = vst [vmem:[#allocation32_spill] sm:$0xff] %v4153_v0 }
 0x17a   : > { %1610 = vmatpush1.bf16.msra.mxu0 %v4067_v21 }
 0x17b   : > { %1653 = vmatpush1.bf16.msra.mxu1 %v4069_v22  ;;  %1611 = vmatprep.subr.bf16.mxu0 %v4077_v28 }
 0x17c   : > { %1654 = vmatprep.subr.bf16.mxu1 %v4083_v35 }
 0x17e   : > { %1612 = vmatpush1.bf16.msra.mxu0 %v4079_v31 }
 0x17f   : > { %1655 = vmatpush1.bf16.msra.mxu1 %v4081_v32  ;;  %1613 = vmatprep.subr.bf16.mxu0 %v4089_v46 }
 0x180   : > { %1656 = vmatprep.subr.bf16.mxu1 %v4095_v51 }
 0x182   : > { %1614 = vmatpush1.bf16.msra.mxu0 %v4091_v37 }
 0x183   : > { %1657 = vmatpush1.bf16.msra.mxu1 %v4093_v45  ;;  %1615 = vmatprep.subr.bf16.mxu0 %v4101_v49 }
 0x184   : > { %1658 = vmatprep.subr.bf16.mxu1 %v4107_v44 }
 0x186   : > { %1616 = vmatpush1.bf16.msra.mxu0 %v4103_v33 }
 0x187   : > { %1659 = vmatpush1.bf16.msra.mxu1 %v4105_v40  ;;  %1617 = vmatprep.subr.bf16.mxu0 %v4115_v5 }
 0x188   : > { %1660 = vmatprep.subr.bf16.mxu1 %v4119_v18 }
 0x18a   : > { %1618 = vmatpush1.bf16.msra.mxu0 %v4113_v2 }
 0x18b   : > { %1661 = vmatpush1.bf16.msra.mxu1 %v4117_v16  ;;  %1619 = vmatprep.subr.bf16.mxu0 %v4121_v19 }
 0x18c   : > { %1662 = vmatprep.subr.bf16.mxu1 %v4124_v30 }
 0x18e   : > { %1620 = vmatpush1.bf16.msra.mxu0 %v4128_v34 }
 0x18f   : > { %1663 = vmatpush1.bf16.msra.mxu1 %v4132_v56  ;;  %1621 = vmatprep.subr.bf16.mxu0 %v4134_v53 }
 0x190   : > { %1664 = vmatprep.subr.bf16.mxu1 %v4139_v6 }
 0x192   : > { %1622 = vmatpush1.bf16.msra.mxu0 %v4144_v15 }
 0x193   : > { %1665 = vmatpush1.bf16.msra.mxu1 %v4148_v25  ;;  %1693 = vmatprep.subr.bf16.mxu0 %v4150_v26 }
 0x194   : > { %1736 = vmatprep.subr.bf16.mxu1 %v4153_v0 }
 0x23f   : > { %v1095_v27 = vpop.f32.mrb[8].mxu0 }
 0x240   : > { %v1244_v36 = vmul.f32 0.5, %v1095_v27  ;;  %v1136_v56 = vpop.f32.mrb[8].mxu1  ;;  %v1097_v53 = vpop.f32.mrb[9].mxu0 }
 0x241   : > { %v1246_v42 = vmul.f32 0.5, %v1136_v56  ;;  %v1138_v43 = vpop.f32.mrb[9].mxu1  ;;  %v1099_v55 = vpop.f32.mrb[10].mxu0 }
 0x242   : > { %3417 = vtanh.f32 %v1244_v36  ;;  %v1247_v29 = vmul.f32 0.5, %v1138_v43  ;;  %v1140_v6 = vpop.f32.mrb[10].mxu1  ;;  %v1100_v38 = vpop.f32.mrb[11].mxu0 }
 0x243   : > { %3419 = vtanh.f32 %v1246_v42  ;;  %v1141_v62 = vpop.f32.mrb[11].mxu1 }
 0x244   : > { %3421 = vtanh.f32 %v1247_v29 }
 0x247   : > { %v1196_v15 = vpop.f32.mrb[12].mxu0 }
 0x248   : > { %v1248_v25 = vmul.f32 0.5, %v1196_v15  ;;  %v1237_v34 = vpop.f32.mrb[12].mxu1  ;;  %v1198_v26 = vpop.f32.mrb[13].mxu0  ;;  %v3078_v15 = vld [vmem:[%s4506_s7] ss:$0 sm:$0xff] }
 0x249   : > { %v1250_v30 = vmul.f32 0.5, %v1237_v34  ;;  %v1239_v0 = vpop.f32.mrb[13].mxu1  ;;  %v1200_v19 = vpop.f32.mrb[14].mxu0 }
 0x24a   : > { %3423 = vtanh.f32 %v1248_v25  ;;  %v1251_v27 = vmul.f32 0.5, %v1239_v0  ;;  %v1241_v16 = vpop.f32.mrb[14].mxu1  ;;  %v1201_v56 = vpop.f32.mrb[15].mxu0  ;;  %v1245_v0 = vmul.f32 0.5, %v1097_v53 }
 0x24b   : > { %3425 = vtanh.f32 %v1250_v30  ;;  %v1242_v55 = vpop.f32.mrb[15].mxu1  ;;  %v1249_v30 = vmul.f32 0.5, %v1198_v26 }
 0x24c   : > { %v3418_v36 = vpop.eup %3417  ;;  %3427 = vtanh.f32 %v1251_v27 }
 0x24d   : > { %v3420_v43 = vpop.eup %3419  ;;  %v1260_v6 = vmul.f32 0.5, %v3418_v36  ;;  %3429 = vtanh.f32 %v1245_v0 }
 0x24e   : > { %v1262_v42 = vmul.f32 0.5, %v3420_v43  ;;  %v3422_v38 = vpop.eup %3421  ;;  %3431 = vtanh.f32 %v1249_v30  ;;  %v425_v30 = vld [vmem:[#allocation7 + $0x58] sm:$0xff] }
 0x24f   : > { %v1268_v29 = vadd.f32 0.5, %v1260_v6  ;;  %v1263_v62 = vmul.f32 0.5, %v3422_v38 }
 0x250   : > { %v1270_v34 = vadd.f32 0.5, %v1262_v42 }
 0x251   : > { %v1271_v25 = vadd.f32 0.5, %v1263_v62 }
 0x252   : > { %v1276_v19 = vmul.f32 %v3078_v15, %v1270_v34 }
 0x253   : > { %v1278_v56 = vmul.f32 %v1271_v25, %v1268_v29 }
 0x254   : > { %v3424_v16 = vpop.eup %3423 }
 0x255   : > { %v3426_v55 = vpop.eup %3425  ;;  %v1264_v2 = vmul.f32 0.5, %v3424_v16  ;;  %v4162_v18 = vadd.f32 %v1278_v56, %v1276_v19  ;;  %v428_v56 = vld [vmem:[#allocation7 + $0x70] sm:$0xff] }
 0x256   : > { %v1266_v27 = vmul.f32 0.5, %v3426_v55  ;;  %v3428_v36 = vpop.eup %3427 }
 0x257   : > { %4595 = vst [vmem:[#allocation33_spill] sm:$0xff] %v4162_v18  ;;  %v1272_v43 = vadd.f32 0.5, %v1264_v2  ;;  %v1267_v40 = vmul.f32 0.5, %v3428_v36  ;;  %3433 = vtanh.f32 %v4162_v18  ;;  %v3430_v26 = vpop.eup %3429  ;;  %v424_v2 = vld [vmem:[#allocation7 + $0x50] sm:$0xff] }
 0x258   : > { %v1274_v5 = vadd.f32 0.5, %v1266_v27  ;;  %v3432_v29 = vpop.eup %3431  ;;  %v1261_v34 = vmul.f32 0.5, %v3430_v26  ;;  %v4170_v27 = vcombine.high %v424_v2, %v428_v56  ;;  %v4178_v26 = vcombine.low %v424_v2, %v428_v56 }
 0x259   : > { %v1275_v42 = vadd.f32 0.5, %v1267_v40  ;;  %v1265_v62 = vmul.f32 0.5, %v3432_v29 }
 0x25a   : > { %v1277_v6 = vmul.f32 %v3078_v15, %v1274_v5  ;;  %v1269_v25 = vadd.f32 0.5, %v1261_v34  ;;  %v429_v5 = vld [vmem:[#allocation7 + $0x78] sm:$0xff]  ;;  %4597 = vst [vmem:[#allocation35_spill] sm:$0xff] %v4170_v27  ;;  %4599 = vst [vmem:[#allocation37_spill] sm:$0xff] %v4178_v26 }
 0x25b   : > { %v1279_v38 = vmul.f32 %v1275_v42, %v1272_v43  ;;  %v1273_v0 = vadd.f32 0.5, %v1265_v62  ;;  %v4172_v36 = vcombine.high %v425_v30, %v429_v5  ;;  %v432_v43 = vld [vmem:[#allocation7 + $0x90] sm:$0xff]  ;;  %v433_v42 = vld [vmem:[#allocation7 + $0x98] sm:$0xff]  ;;  %v4180_v29 = vcombine.low %v425_v30, %v429_v5 }
 0x25d   : > { %v4165_v53 = vadd.f32 %v1279_v38, %v1277_v6  ;;  %4598 = vst [vmem:[#allocation36_spill] sm:$0xff] %v4172_v36  ;;  %v436_v6 = vld [vmem:[#allocation7 + $0xb0] sm:$0xff]  ;;  %v437_v38 = vld [vmem:[#allocation7 + $0xb8] sm:$0xff]  ;;  %4600 = vst [vmem:[#allocation38_spill] sm:$0xff] %v4180_v29 }
 0x25e   : > { %v4184_v34 = vcombine.high %v432_v43, %v436_v6  ;;  %v4186_v62 = vcombine.high %v433_v42, %v437_v38  ;;  %v4192_v2 = vcombine.low %v432_v43, %v436_v6  ;;  %v4194_v56 = vcombine.low %v433_v42, %v437_v38 }
 0x25f   : > { %4596 = vst [vmem:[#allocation34_spill] sm:$0xff] %v4165_v53  ;;  %3435 = vtanh.f32 %v4165_v53 }
 0x260   : > { %4601 = vst [vmem:[#allocation39_spill] sm:$0xff] %v4184_v34  ;;  %4602 = vst [vmem:[#allocation40_spill] sm:$0xff] %v4186_v62 }
 0x261   : > { %v3434_v19 = vpop.eup %3433  ;;  %4604 = vst [vmem:[#allocation41_spill] sm:$0xff] %v4192_v2  ;;  %4605 = vst [vmem:[#allocation42_spill] sm:$0xff] %v4194_v56 }
 0x262   : > { %v1284_v40 = vmul.f32 %v3434_v19, %v1269_v25  ;;  %v440_v19 = vld [vmem:[#allocation7 + $0xd0] sm:$0xff] }
 0x263   : > { %v444_v25 = vld [vmem:[#allocation7 + $0xf0] sm:$0xff] }
 0x264   : > { %v4198_v30 = vcombine.high %v440_v19, %v444_v25  ;;  %v4204_v43 = vcombine.low %v440_v19, %v444_v25 }
 0x266   : > { %4606 = vst [vmem:[#allocation43_spill] sm:$0xff] %v4198_v30  ;;  %4608 = vst [vmem:[#allocation45_spill] sm:$0xff] %v4204_v43 }
 0x269   : > { %v3436_v16 = vpop.eup %3435 }
 0x26a   : > { %v1285_v15 = vmul.f32 %v3436_v16, %v1273_v0  ;;  %v441_v0 = vld [vmem:[#allocation7 + $0xd8] sm:$0xff] }
 0x26b   : > { %v445_v16 = vld [vmem:[#allocation7 + $0xf8] sm:$0xff] }
 0x26c   : > { %v4168_v55 = vpack.c.bf16 %v1285_v15, %v1284_v40  ;;  %v4603_v40 = vmov 0   ;;  %v4200_v5 = vcombine.high %v441_v0, %v445_v16  ;;  %v448_v15 = vld [vmem:[#allocation7 + $0x110] sm:$0xff]  ;;  %v4206_v6 = vcombine.low %v441_v0, %v445_v16 }
 0x26e   : > { %1640 = vmatmul.mubr.bf16.vlgmr.msra.gmra.mrb[16].mxu0 %v4168_v55  ;;  %1683 = vmatmul.mubr.bf16.vlgmr.msra.gmra.mrb[16].mxu1 %v4168_v55  ;;  %4607 = vst [vmem:[#allocation44_spill] sm:$0xff] %v4200_v5  ;;  %4609 = vst [vmem:[#allocation46_spill] sm:$0xff] %v4206_v6 }
 0x26f   : > { %1694 = vmatpush1.bf16.msra.mxu0 %v4136_v57  ;;  %1737 = vmatpush1.bf16.msra.mxu1 %v4141_v8  ;;  %v453_v8 = vld [vmem:[#allocation7 + $0x138] sm:$0xff] }
 0x270   : > { %1695 = vmatprep.subr.bf16.mxu0 %v4170_v27  ;;  %1738 = vmatprep.subr.bf16.mxu1 %v4172_v36  ;;  %v452_v36 = vld [vmem:[#allocation7 + $0x130] sm:$0xff]  ;;  %v449_v27 = vld [vmem:[#allocation7 + $0x118] sm:$0xff] }
 0x271   : > { %1725 = vmatprep.mubr.bf16.mxu0 %v4603_v40  ;;  %1768 = vmatprep.mubr.bf16.mxu1 %v4603_v40  ;;  %v4210_v42 = vcombine.high %v448_v15, %v452_v36  ;;  %v4212_v38 = vcombine.high %v449_v27, %v453_v8  ;;  %v4216_v19 = vcombine.low %v448_v15, %v452_v36 }
 0x272   : > { %v4218_v25 = vcombine.low %v449_v27, %v453_v8 }
 0x273   : > { %1696 = vmatpush1.bf16.msra.mxu0 %v4178_v26  ;;  %1739 = vmatpush1.bf16.msra.mxu1 %v4180_v29  ;;  %4610 = vst [vmem:[#allocation47_spill] sm:$0xff] %v4210_v42  ;;  %4611 = vst [vmem:[#allocation48_spill] sm:$0xff] %v4212_v38  ;;  %v457_v29 = vld [vmem:[#allocation7 + $0x158] sm:$0xff] }
 0x274   : > { %1697 = vmatprep.subr.bf16.mxu0 %v4184_v34  ;;  %1740 = vmatprep.subr.bf16.mxu1 %v4186_v62  ;;  %v456_v62 = vld [vmem:[#allocation7 + $0x150] sm:$0xff]  ;;  %v461_v26 = vld [vmem:[#allocation7 + $0x178] sm:$0xff]  ;;  %4612 = vst [vmem:[#allocation49_spill] sm:$0xff] %v4216_v19  ;;  %4613 = vst [vmem:[#allocation50_spill] sm:$0xff] %v4218_v25 }
 0x275   : > { %v460_v34 = vld [vmem:[#allocation7 + $0x170] sm:$0xff]  ;;  %v4224_v16 = vcombine.high %v457_v29, %v461_v26  ;;  %v4230_v8 = vcombine.low %v457_v29, %v461_v26 }
 0x276   : > { %v4222_v0 = vcombine.high %v456_v62, %v460_v34  ;;  %v4228_v36 = vcombine.low %v456_v62, %v460_v34 }
 0x277   : > { %1698 = vmatpush1.bf16.msra.mxu0 %v4192_v2  ;;  %1741 = vmatpush1.bf16.msra.mxu1 %v4194_v56  ;;  %4615 = vst [vmem:[#allocation52_spill] sm:$0xff] %v4224_v16  ;;  %v465_v56 = vld [vmem:[#allocation7 + $0x198] sm:$0xff]  ;;  %4617 = vst [vmem:[#allocation54_spill] sm:$0xff] %v4230_v8 }
 0x278   : > { %1699 = vmatprep.subr.bf16.mxu0 %v4198_v30  ;;  %1742 = vmatprep.subr.bf16.mxu1 %v4200_v5  ;;  %4614 = vst [vmem:[#allocation51_spill] sm:$0xff] %v4222_v0  ;;  %v464_v5 = vld [vmem:[#allocation7 + $0x190] sm:$0xff]  ;;  %v469_v2 = vld [vmem:[#allocation7 + $0x1b8] sm:$0xff]  ;;  %4616 = vst [vmem:[#allocation53_spill] sm:$0xff] %v4228_v36 }
 0x279   : > { %v468_v30 = vld [vmem:[#allocation7 + $0x1b0] sm:$0xff]  ;;  %v4236_v15 = vcombine.high %v465_v56, %v469_v2  ;;  %v4242_v26 = vcombine.low %v465_v56, %v469_v2 }
 0x27a   : > { %v4234_v27 = vcombine.high %v464_v5, %v468_v30  ;;  %v4240_v34 = vcombine.low %v464_v5, %v468_v30 }
 0x27b   : > { %1700 = vmatpush1.bf16.msra.mxu0 %v4204_v43  ;;  %1743 = vmatpush1.bf16.msra.mxu1 %v4206_v6  ;;  %4619 = vst [vmem:[#allocation56_spill] sm:$0xff] %v4236_v15  ;;  %v473_v6 = vld [vmem:[#allocation7 + $0x1d8] sm:$0xff]  ;;  %4621 = vst [vmem:[#allocation58_spill] sm:$0xff] %v4242_v26 }
 0x27c   : > { %1701 = vmatprep.subr.bf16.mxu0 %v4210_v42  ;;  %1744 = vmatprep.subr.bf16.mxu1 %v4212_v38  ;;  %4618 = vst [vmem:[#allocation55_spill] sm:$0xff] %v4234_v27  ;;  %v472_v38 = vld [vmem:[#allocation7 + $0x1d0] sm:$0xff]  ;;  %v477_v43 = vld [vmem:[#allocation7 + $0x1f8] sm:$0xff]  ;;  %4620 = vst [vmem:[#allocation57_spill] sm:$0xff] %v4240_v34 }
 0x27d   : > { %v476_v42 = vld [vmem:[#allocation7 + $0x1f0] sm:$0xff]  ;;  %v4248_v62 = vcombine.high %v473_v6, %v477_v43 }
 0x27e   : > { %v4246_v29 = vcombine.high %v472_v38, %v476_v42 }
 0x27f   : > { %1702 = vmatpush1.bf16.msra.mxu0 %v4216_v19  ;;  %1745 = vmatpush1.bf16.msra.mxu1 %v4218_v25  ;;  %4623 = vst [vmem:[#allocation60_spill] sm:$0xff] %v4248_v62 }
 0x280   : > { %1703 = vmatprep.subr.bf16.mxu0 %v4222_v0  ;;  %1746 = vmatprep.subr.bf16.mxu1 %v4224_v16  ;;  %4622 = vst [vmem:[#allocation59_spill] sm:$0xff] %v4246_v29  ;;  %v4252_v16 = vcombine.low %v472_v38, %v476_v42 }
 0x282   : > { %4624 = vst [vmem:[#allocation61_spill] sm:$0xff] %v4252_v16 }
 0x283   : > { %1704 = vmatpush1.bf16.msra.mxu0 %v4228_v36  ;;  %1747 = vmatpush1.bf16.msra.mxu1 %v4230_v8  ;;  %v4254_v36 = vcombine.low %v473_v6, %v477_v43 }
 0x284   : > { %1705 = vmatprep.subr.bf16.mxu0 %v4234_v27  ;;  %1748 = vmatprep.subr.bf16.mxu1 %v4236_v15 }
 0x285   : > { %4625 = vst [vmem:[#allocation62_spill] sm:$0xff] %v4254_v36 }
 0x287   : > { %1706 = vmatpush1.bf16.msra.mxu0 %v4240_v34  ;;  %1749 = vmatpush1.bf16.msra.mxu1 %v4242_v26 }
 0x288   : > { %1707 = vmatprep.subr.bf16.mxu0 %v4246_v29  ;;  %1750 = vmatprep.subr.bf16.mxu1 %v4248_v62 }
 0x28b   : > { %1708 = vmatpush1.bf16.msra.mxu0 %v4252_v16  ;;  %1751 = vmatpush1.bf16.msra.mxu1 %v4254_v36 }
 0x28e   : > { %1726 = vmatmul.mubr.bf16.vlgmr.msra.gmra.mrb[20].mxu0 %v4168_v55  ;;  %1769 = vmatmul.mubr.bf16.vlgmr.msra.gmra.mrb[20].mxu1 %v4168_v55 }
 0x28f   : > { %1875 = vmatprep.mubr.bf16.mxu0 %v4603_v40  ;;  %1916 = vmatprep.mubr.bf16.mxu1 %v4603_v40 }
 0x341   : > { %v1641_v2 = vpop.f32.mrb[16].mxu0  ;;  %v1684_v56 = vpop.f32.mrb[16].mxu1 }
 0x342   : > { %v1643_v30 = vpop.f32.mrb[17].mxu0  ;;  %v1686_v5 = vpop.f32.mrb[17].mxu1 }
 0x343   : > { %v1645_v43 = vpop.f32.mrb[18].mxu0  ;;  %v1688_v6 = vpop.f32.mrb[18].mxu1  ;;  %v1780_v34 = vadd.f32 %v1643_v30, %v3932_v59 }
 0x344   : > { %v1647_v42 = vpop.f32.mrb[19].mxu0  ;;  %v1690_v38 = vpop.f32.mrb[19].mxu1 }
 0x361   : > { %v1727_v62 = vpop.f32.mrb[20].mxu0  ;;  %v1770_v16 = vpop.f32.mrb[20].mxu1 }
 0x362   : > { %v1783_v36 = vadd.f32 %v1727_v62, %v3926_v54  ;;  %v1785_v29 = vadd.f32 %v1770_v16, %v3934_v60  ;;  %v1729_v26 = vpop.f32.mrb[21].mxu0  ;;  %v1772_v55 = vpop.f32.mrb[21].mxu1 }
 0x363   : > { %v1784_v15 = vadd.f32 %v1729_v26, %v3936_v61  ;;  %v1786_v27 = vadd.f32 %v1772_v55, %v3942_v3  ;;  %v1731_v8 = vpop.f32.mrb[22].mxu0  ;;  %v1774_v0 = vpop.f32.mrb[22].mxu1  ;;  %v1782_v26 = vadd.f32 %v1686_v5, %v3939_v1 }
 0x364   : > { %v3261_v25 = vpack.c.bf16 %v1783_v36, %v1783_v36  ;;  %v3263_v19 = vpack.c.bf16 %v1785_v29, %v1785_v29  ;;  %v1791_v57 = vadd.f32 %v1731_v8, %v3944_v4  ;;  %v1793_v53 = vadd.f32 %v1774_v0, %v3948_v9  ;;  %v1733_v18 = vpop.f32.mrb[23].mxu0  ;;  %v1776_v62 = vpop.f32.mrb[23].mxu1 }
 0x365   : > { %v3262_v54 = vpack.c.bf16 %v1784_v15, %v1784_v15  ;;  %v3264_v16 = vpack.c.bf16 %v1786_v27, %v1786_v27  ;;  %v1792_v60 = vadd.f32 %v1733_v18, %v3950_v10  ;;  %v1794_v30 = vadd.f32 %v1776_v62, %v3954_v14 }
 0x366   : > { %v1832_v55 = vsel %vm846_vm1, %v3261_v25, 0  ;;  %v1838_v3 = vsel %vm846_vm1, %v3263_v19, 0  ;;  %v3265_v36 = vpack.c.bf16 %v1791_v57, %v1791_v57  ;;  %v3267_v29 = vpack.c.bf16 %v1793_v53, %v1793_v53 }
 0x367   : > { %v3266_v61 = vpack.c.bf16 %v1792_v60, %v1792_v60  ;;  %v3268_v8 = vpack.c.bf16 %v1794_v30, %v1794_v30  ;;  %3179 = vmatprep.subr.msk.bf16.mxu0 %vm846_vm1, %v3262_v54  ;;  %3181 = vmatprep.subr.msk.bf16.mxu1 %vm846_vm1, %v3264_v16  ;;  %v1779_v18 = vadd.f32 %v1641_v2, %v3929_v58 }
 0x368   : > { %1844 = vmatpush1.bf16.msra.mxu0 %v1832_v55  ;;  %1885 = vmatpush1.bf16.msra.mxu1 %v1838_v3  ;;  %v1781_v25 = vadd.f32 %v1684_v56, %v3959_v20  ;;  %v3270_v0 = vpack.c.bf16 %v1780_v34, %v1780_v34  ;;  %v3272_v19 = vpack.c.bf16 %v1782_v26, %v1782_v26  ;;  %v1930_v57 = vsel %vm846_vm1, %v3265_v36, 0 }
 0x369   : > { %3187 = vmatprep.subr.msk.bf16.mxu0 %vm846_vm1, %v3266_v61  ;;  %3189 = vmatprep.subr.msk.bf16.mxu1 %vm846_vm1, %v3268_v8  ;;  %v1936_v60 = vsel %vm846_vm1, %v3267_v29, 0  ;;  %v3269_v54 = vpack.c.bf16 %v1779_v18, %v1779_v18  ;;  %v1788_v3 = vadd.f32 %v1647_v42, %v3979_v39  ;;  %v1790_v53 = vadd.f32 %v1690_v38, %v3988_v47 }
 0x36a   : > { %v3271_v61 = vpack.c.bf16 %v1781_v25, %v1781_v25  ;;  %v1787_v27 = vadd.f32 %v1645_v43, %v3998_v41 }
 0x36b   : > { %3180 = vmatmul.mubr.msk.bf16.vlgmr.msra.gmra.mrb[24].mxu0 %vm842_vm2, %v3971_v23  ;;  %3182 = vmatmul.mubr.msk.bf16.vlgmr.msra.gmra.mrb[24].mxu1 %vm842_vm2, %v3971_v23  ;;  %v1789_v23 = vadd.f32 %v1688_v6, %v4005_v50  ;;  %v2028_v15 = vsel %vm846_vm1, %v3269_v54, 0  ;;  %v3274_v2 = vpack.c.bf16 %v1788_v3, %v1788_v3  ;;  %v3276_v56 = vpack.c.bf16 %v1790_v53, %v1790_v53 }
 0x36c   : > { %1942 = vmatpush1.bf16.msra.mxu0 %v1930_v57  ;;  %1983 = vmatpush1.bf16.msra.mxu1 %v1936_v60  ;;  %v2034_v34 = vsel %vm846_vm1, %v3271_v61, 0  ;;  %v3273_v5 = vpack.c.bf16 %v1787_v27, %v1787_v27 }
 0x36d   : > { %3195 = vmatprep.subr.msk.bf16.mxu0 %vm846_vm1, %v3270_v0  ;;  %3197 = vmatprep.subr.msk.bf16.mxu1 %vm846_vm1, %v3272_v19  ;;  %v3275_v43 = vpack.c.bf16 %v1789_v23, %v1789_v23 }
 0x36e   : > { %1973 = vmatprep.mubr.bf16.mxu0 %v4603_v40  ;;  %2014 = vmatprep.mubr.bf16.mxu1 %v4603_v40  ;;  %v2126_v6 = vsel %vm846_vm1, %v3273_v5, 0 }
 0x36f   : > { %v2132_v42 = vsel %vm846_vm1, %v3275_v43, 0 }
 0x373   : > { %3188 = vmatmul.mubr.msk.bf16.vlgmr.msra.gmra.mrb[28].mxu0 %vm842_vm2, %v4010_v52  ;;  %3190 = vmatmul.mubr.msk.bf16.vlgmr.msra.gmra.mrb[28].mxu1 %vm842_vm2, %v4010_v52  ;;  %v4626_v52 = vld [vmem:[#allocation16_spill] sm:$0xff] }
 0x374   : > { %2040 = vmatpush1.bf16.msra.mxu0 %v2028_v15  ;;  %2081 = vmatpush1.bf16.msra.mxu1 %v2034_v34 }
 0x375   : > { %3203 = vmatprep.subr.msk.bf16.mxu0 %vm846_vm1, %v3274_v2  ;;  %3205 = vmatprep.subr.msk.bf16.mxu1 %vm846_vm1, %v3276_v56  ;;  %v4641_v2 = vld [vmem:[#allocation33_spill] sm:$0xff] }
 0x376   : > { %2071 = vmatprep.mubr.bf16.mxu0 %v4603_v40  ;;  %2112 = vmatprep.mubr.bf16.mxu1 %v4603_v40 }
 0x37b   : > { %3196 = vmatmul.mubr.msk.bf16.vlgmr.msra.gmra.mrb[24].mxu0 %vm842_vm2, %v4034_v48  ;;  %3198 = vmatmul.mubr.msk.bf16.vlgmr.msra.gmra.mrb[24].mxu1 %vm842_vm2, %v4034_v48  ;;  %v4627_v48 = vld [vmem:[#allocation18_spill] sm:$0xff] }
 0x37c   : > { %2138 = vmatpush1.bf16.msra.mxu0 %v2126_v6  ;;  %2179 = vmatpush1.bf16.msra.mxu1 %v2132_v42 }
 0x37d   : > { %2169 = vmatprep.mubr.bf16.mxu0 %v4603_v40  ;;  %2210 = vmatprep.mubr.bf16.mxu1 %v4603_v40 }
 0x37e   : > { %2262 = vmatprep.subr.bf16.mxu0 %v4053_v7  ;;  %2305 = vmatprep.subr.bf16.mxu1 %v4059_v13  ;;  %v4629_v7 = vld [vmem:[#allocation17_spill] sm:$0xff]  ;;  %v4632_v13 = vld [vmem:[#allocation22_spill] sm:$0xff] }
 0x383   : > { %3204 = vmatmul.mubr.msk.bf16.vlgmr.msra.gmra.mrb[28].mxu0 %vm842_vm2, %v4045_v63  ;;  %3206 = vmatmul.mubr.msk.bf16.vlgmr.msra.gmra.mrb[28].mxu1 %vm842_vm2, %v4045_v63  ;;  %v4628_v63 = vld [vmem:[#allocation20_spill] sm:$0xff] }
 0x384   : > { %2263 = vmatpush1.bf16.msra.mxu0 %v4055_v11  ;;  %2306 = vmatpush1.bf16.msra.mxu1 %v4057_v12  ;;  %v4630_v11 = vld [vmem:[#allocation19_spill] sm:$0xff]  ;;  %v4631_v12 = vld [vmem:[#allocation21_spill] sm:$0xff] }
 0x385   : > { %2264 = vmatprep.subr.bf16.mxu0 %v4065_v17  ;;  %2307 = vmatprep.subr.bf16.mxu1 %v4071_v24  ;;  %v4633_v17 = vld [vmem:[#allocation23_spill] sm:$0xff] }
 0x386   : > { %2294 = vmatprep.mubr.bf16.mxu0 %v4603_v40  ;;  %2337 = vmatprep.mubr.bf16.mxu1 %v4603_v40  ;;  %v4636_v24 = vld [vmem:[#allocation27_spill] sm:$0xff] }
 0x388   : > { %2265 = vmatpush1.bf16.msra.mxu0 %v4067_v21  ;;  %2308 = vmatpush1.bf16.msra.mxu1 %v4069_v22  ;;  %v4634_v21 = vld [vmem:[#allocation24_spill] sm:$0xff]  ;;  %v4635_v22 = vld [vmem:[#allocation25_spill] sm:$0xff] }
 0x389   : > { %2266 = vmatprep.subr.bf16.mxu0 %v4077_v28  ;;  %2309 = vmatprep.subr.bf16.mxu1 %v4083_v35  ;;  %v4637_v28 = vld [vmem:[#allocation29_spill] sm:$0xff]  ;;  %v4640_v35 = vld [vmem:[#allocation32_spill] sm:$0xff] }
 0x38c   : > { %2267 = vmatpush1.bf16.msra.mxu0 %v4079_v31  ;;  %2310 = vmatpush1.bf16.msra.mxu1 %v4081_v32  ;;  %v4638_v31 = vld [vmem:[#allocation30_spill] sm:$0xff]  ;;  %v4639_v32 = vld [vmem:[#allocation31_spill] sm:$0xff] }
 0x38d   : > { %2268 = vmatprep.subr.bf16.mxu0 %v4089_v46  ;;  %2311 = vmatprep.subr.bf16.mxu1 %v4095_v51 }
 0x390   : > { %2269 = vmatpush1.bf16.msra.mxu0 %v4091_v37  ;;  %2312 = vmatpush1.bf16.msra.mxu1 %v4093_v45 }
 0x391   : > { %2270 = vmatprep.subr.bf16.mxu0 %v4101_v49  ;;  %2313 = vmatprep.subr.bf16.mxu1 %v4107_v44 }
 0x394   : > { %2271 = vmatpush1.bf16.msra.mxu0 %v4103_v33  ;;  %2314 = vmatpush1.bf16.msra.mxu1 %v4626_v52 }
 0x395   : > { %2272 = vmatprep.subr.bf16.mxu0 %v4627_v48  ;;  %2315 = vmatprep.subr.bf16.mxu1 %v4628_v63 }
 0x398   : > { %2273 = vmatpush1.bf16.msra.mxu0 %v4629_v7  ;;  %2316 = vmatpush1.bf16.msra.mxu1 %v4630_v11 }
 0x399   : > { %2274 = vmatprep.subr.bf16.mxu0 %v4631_v12  ;;  %2317 = vmatprep.subr.bf16.mxu1 %v4632_v13 }
 0x39c   : > { %2275 = vmatpush1.bf16.msra.mxu0 %v4633_v17  ;;  %2318 = vmatpush1.bf16.msra.mxu1 %v4634_v21 }
 0x39d   : > { %2276 = vmatprep.subr.bf16.mxu0 %v4635_v22  ;;  %2319 = vmatprep.subr.bf16.mxu1 %v4636_v24  ;;  %v4642_v22 = vld [vmem:[#allocation34_spill] sm:$0xff] }
 0x3a0   : > { %2277 = vmatpush1.bf16.msra.mxu0 %v4637_v28  ;;  %2320 = vmatpush1.bf16.msra.mxu1 %v4638_v31 }
 0x3a1   : > { %2348 = vmatprep.subr.bf16.mxu0 %v4639_v32  ;;  %2391 = vmatprep.subr.bf16.mxu1 %v4640_v35 }
 0x44e   : > { %v2073_v46 = vpop.f32.mrb[24].mxu0  ;;  %v2114_v37 = vpop.f32.mrb[24].mxu1 }
 0x44f   : > { %v2219_v45 = vmul.f32 0.5, %v2073_v46  ;;  %v2221_v51 = vmul.f32 0.5, %v2114_v37  ;;  %v2075_v49 = vpop.f32.mrb[25].mxu0  ;;  %v2116_v33 = vpop.f32.mrb[25].mxu1 }
 0x450   : > { %v2222_v44 = vmul.f32 0.5, %v2116_v33  ;;  %v2077_v38 = vpop.f32.mrb[26].mxu0  ;;  %v2118_v62 = vpop.f32.mrb[26].mxu1  ;;  %v2220_v43 = vmul.f32 0.5, %v2075_v49 }
 0x451   : > { %3437 = vtanh.f32 %v2219_v45  ;;  %v2078_v16 = vpop.f32.mrb[27].mxu0  ;;  %v2119_v30 = vpop.f32.mrb[27].mxu1 }
 0x452   : > { %3439 = vtanh.f32 %v2221_v51  ;;  %v4643_v30 = vld [vmem:[#allocation26_spill] sm:$0xff] }
 0x453   : > { %3441 = vtanh.f32 %v2222_v44 }
 0x456   : > { %v2171_v26 = vpop.f32.mrb[28].mxu0  ;;  %v2212_v55 = vpop.f32.mrb[28].mxu1 }
 0x457   : > { %v2223_v36 = vmul.f32 0.5, %v2171_v26  ;;  %v2225_v29 = vmul.f32 0.5, %v2212_v55  ;;  %v2173_v8 = vpop.f32.mrb[29].mxu0  ;;  %v2214_v18 = vpop.f32.mrb[29].mxu1  ;;  %v4644_v26 = vld [vmem:[#allocation28_spill] sm:$0xff]  ;;  %v4645_v55 = vld [vmem:[#allocation35_spill] sm:$0xff] }
 0x458   : > { %v2226_v25 = vmul.f32 0.5, %v2214_v18  ;;  %v2175_v0 = vpop.f32.mrb[30].mxu0  ;;  %v2216_v19 = vpop.f32.mrb[30].mxu1  ;;  %v2224_v52 = vmul.f32 0.5, %v2173_v8  ;;  %v4648_v8 = vld [vmem:[#allocation38_spill] sm:$0xff]  ;;  %v4649_v18 = vld [vmem:[#allocation39_spill] sm:$0xff] }
 0x459   : > { %3443 = vtanh.f32 %v2223_v36  ;;  %v2176_v57 = vpop.f32.mrb[31].mxu0  ;;  %v2217_v60 = vpop.f32.mrb[31].mxu1  ;;  %v4646_v36 = vld [vmem:[#allocation36_spill] sm:$0xff]  ;;  %v4651_v0 = vld [vmem:[#allocation41_spill] sm:$0xff]  ;;  %v4652_v19 = vld [vmem:[#allocation42_spill] sm:$0xff] }
 0x45a   : > { %3445 = vtanh.f32 %v2225_v29  ;;  %v4647_v29 = vld [vmem:[#allocation37_spill] sm:$0xff]  ;;  %v4653_v57 = vld [vmem:[#allocation43_spill] sm:$0xff]  ;;  %v4654_v60 = vld [vmem:[#allocation44_spill] sm:$0xff] }
 0x45b   : > { %v3438_v54 = vpop.eup %3437  ;;  %3447 = vtanh.f32 %v2226_v25  ;;  %v4650_v25 = vld [vmem:[#allocation40_spill] sm:$0xff] }
 0x45c   : > { %v3440_v61 = vpop.eup %3439  ;;  %v2235_v3 = vmul.f32 0.5, %v3438_v54  ;;  %3449 = vtanh.f32 %v2220_v43  ;;  %v4655_v54 = vld [vmem:[#allocation45_spill] sm:$0xff]  ;;  %v4666_v43 = vld [vmem:[#allocation56_spill] sm:$0xff] }
 0x45d   : > { %v2237_v53 = vmul.f32 0.5, %v3440_v61  ;;  %v3442_v27 = vpop.eup %3441  ;;  %3451 = vtanh.f32 %v2224_v52  ;;  %v4656_v61 = vld [vmem:[#allocation46_spill] sm:$0xff]  ;;  %v4669_v52 = vld [vmem:[#allocation59_spill] sm:$0xff] }
 0x45e   : > { %v2243_v23 = vadd.f32 0.5, %v2235_v3  ;;  %v2238_v34 = vmul.f32 0.5, %v3442_v27  ;;  %v4657_v3 = vld [vmem:[#allocation47_spill] sm:$0xff]  ;;  %v4659_v27 = vld [vmem:[#allocation49_spill] sm:$0xff] }
 0x45f   : > { %v2245_v15 = vadd.f32 0.5, %v2237_v53  ;;  %v4658_v53 = vld [vmem:[#allocation48_spill] sm:$0xff] }
 0x460   : > { %v2246_v5 = vadd.f32 0.5, %v2238_v34  ;;  %v4662_v34 = vld [vmem:[#allocation52_spill] sm:$0xff] }
 0x461   : > { %v2251_v56 = vmul.f32 %v2245_v15, %v4641_v2  ;;  %v4661_v15 = vld [vmem:[#allocation51_spill] sm:$0xff]  ;;  %v4663_v2 = vld [vmem:[#allocation53_spill] sm:$0xff] }
 0x462   : > { %v2253_v42 = vmul.f32 %v2246_v5, %v2243_v23  ;;  %v4660_v23 = vld [vmem:[#allocation50_spill] sm:$0xff]  ;;  %v4665_v5 = vld [vmem:[#allocation55_spill] sm:$0xff] }
 0x463   : > { %v3444_v6 = vpop.eup %3443 }
 0x464   : > { %v3446_v48 = vpop.eup %3445  ;;  %v2239_v63 = vmul.f32 0.5, %v3444_v6  ;;  %v4355_v7 = vadd.f32 %v2253_v42, %v2251_v56  ;;  %v4664_v56 = vld [vmem:[#allocation54_spill] sm:$0xff]  ;;  %v4667_v6 = vld [vmem:[#allocation57_spill] sm:$0xff] }
 0x465   : > { %v2241_v11 = vmul.f32 0.5, %v3446_v48  ;;  %v3448_v12 = vpop.eup %3447  ;;  %v4668_v42 = vld [vmem:[#allocation58_spill] sm:$0xff]  ;;  %v4670_v48 = vld [vmem:[#allocation60_spill] sm:$0xff] }
 0x466   : > { %v2247_v13 = vadd.f32 0.5, %v2239_v63  ;;  %v2242_v21 = vmul.f32 0.5, %v3448_v12  ;;  %3453 = vtanh.f32 %v4355_v7  ;;  %v3450_v35 = vpop.eup %3449  ;;  %v4671_v63 = vld [vmem:[#allocation61_spill] sm:$0xff] }
 0x467   : > { %v2249_v17 = vadd.f32 0.5, %v2241_v11  ;;  %v3452_v46 = vpop.eup %3451  ;;  %v2236_v37 = vmul.f32 0.5, %v3450_v35  ;;  %v4672_v11 = vld [vmem:[#allocation62_spill] sm:$0xff] }
 0x468   : > { %v2250_v28 = vadd.f32 0.5, %v2242_v21  ;;  %v2240_v45 = vmul.f32 0.5, %v3452_v46 }
 0x469   : > { %v2252_v24 = vmul.f32 %v2249_v17, %v4642_v22  ;;  %v2244_v49 = vadd.f32 0.5, %v2236_v37  ;;  %v4673_v37 = vld [vmem:[#allocation12_spill] sm:$0xff] }
 0x46a   : > { %v2254_v31 = vmul.f32 %v2250_v28, %v2247_v13  ;;  %v2248_v33 = vadd.f32 0.5, %v2240_v45 }
 0x46c   : > { %v4359_v32 = vadd.f32 %v2254_v31, %v2252_v24 }
 0x46e   : > { %3455 = vtanh.f32 %v4359_v32 }
 0x470   : > { %v3454_v51 = vpop.eup %3453 }
 0x471   : > { %v2259_v38 = vmul.f32 %v3454_v51, %v2244_v49  ;;  %v4674_v51 = vld [vmem:[#allocation13_spill] sm:$0xff] }
 0x478   : > { %v3456_v44 = vpop.eup %3455 }
 0x479   : > { %v2260_v62 = vmul.f32 %v3456_v44, %v2248_v33 }
 0x47b   : > { %v2261_v16 = vpack.c.bf16 %v2260_v62, %v2259_v38  ;;  %v4675_v62 = vld [vmem:[#allocation14_spill] sm:$0xff] }
 0x47d   : > { %2295 = vmatmul.mubr.bf16.vlgmr.msra.gmra.mrb[32].mxu0 %v2261_v16  ;;  %2338 = vmatmul.mubr.bf16.vlgmr.msra.gmra.mrb[32].mxu1 %v2261_v16 }
 0x47e   : > { %2349 = vmatpush1.bf16.msra.mxu0 %v4643_v30  ;;  %2392 = vmatpush1.bf16.msra.mxu1 %v4644_v26  ;;  %v4676_v30 = vld [vmem:[#allocation15_spill] sm:$0xff] }
 0x47f   : > { %2350 = vmatprep.subr.bf16.mxu0 %v4645_v55  ;;  %2393 = vmatprep.subr.bf16.mxu1 %v4646_v36 }
 0x480   : > { %2380 = vmatprep.mubr.bf16.mxu0 %v4603_v40  ;;  %2423 = vmatprep.mubr.bf16.mxu1 %v4603_v40 }
 0x482   : > { %2351 = vmatpush1.bf16.msra.mxu0 %v4647_v29  ;;  %2394 = vmatpush1.bf16.msra.mxu1 %v4648_v8 }
 0x483   : > { %2352 = vmatprep.subr.bf16.mxu0 %v4649_v18  ;;  %2395 = vmatprep.subr.bf16.mxu1 %v4650_v25 }
 0x486   : > { %2353 = vmatpush1.bf16.msra.mxu0 %v4651_v0  ;;  %2396 = vmatpush1.bf16.msra.mxu1 %v4652_v19 }
 0x487   : > { %2354 = vmatprep.subr.bf16.mxu0 %v4653_v57  ;;  %2397 = vmatprep.subr.bf16.mxu1 %v4654_v60 }
 0x48a   : > { %2355 = vmatpush1.bf16.msra.mxu0 %v4655_v54  ;;  %2398 = vmatpush1.bf16.msra.mxu1 %v4656_v61 }
 0x48b   : > { %2356 = vmatprep.subr.bf16.mxu0 %v4657_v3  ;;  %2399 = vmatprep.subr.bf16.mxu1 %v4658_v53 }
 0x48e   : > { %2357 = vmatpush1.bf16.msra.mxu0 %v4659_v27  ;;  %2400 = vmatpush1.bf16.msra.mxu1 %v4660_v23 }
 0x48f   : > { %2358 = vmatprep.subr.bf16.mxu0 %v4661_v15  ;;  %2401 = vmatprep.subr.bf16.mxu1 %v4662_v34 }
 0x492   : > { %2359 = vmatpush1.bf16.msra.mxu0 %v4663_v2  ;;  %2402 = vmatpush1.bf16.msra.mxu1 %v4664_v56  ;;  %v3477_v56 = vld [vmem:[%s3871_s18] sm:$0xf] }
 0x493   : > { %2360 = vmatprep.subr.bf16.mxu0 %v4665_v5  ;;  %2403 = vmatprep.subr.bf16.mxu1 %v4666_v43 }
 0x496   : > { %2361 = vmatpush1.bf16.msra.mxu0 %v4667_v6  ;;  %2404 = vmatpush1.bf16.msra.mxu1 %v4668_v42 }
 0x497   : > { %2362 = vmatprep.subr.bf16.mxu0 %v4669_v52  ;;  %2405 = vmatprep.subr.bf16.mxu1 %v4670_v48 }
 0x49a   : > { %2363 = vmatpush1.bf16.msra.mxu0 %v4671_v63  ;;  %2406 = vmatpush1.bf16.msra.mxu1 %v4672_v11 }
 0x49d   : > { %2381 = vmatmul.mubr.bf16.vlgmr.msra.gmra.mrb[36].mxu0 %v2261_v16  ;;  %2424 = vmatmul.mubr.bf16.vlgmr.msra.gmra.mrb[36].mxu1 %v2261_v16 }
 0x49e   : > { %2530 = vmatprep.mubr.bf16.mxu0 %v4603_v40  ;;  %2571 = vmatprep.mubr.bf16.mxu1 %v4603_v40 }
 0x550   : > { %v2296_v12 = vpop.f32.mrb[32].mxu0  ;;  %v2339_v13 = vpop.f32.mrb[32].mxu1 }
 0x551   : > { %v2298_v17 = vpop.f32.mrb[33].mxu0  ;;  %v2341_v21 = vpop.f32.mrb[33].mxu1 }
 0x552   : > { %v2300_v22 = vpop.f32.mrb[34].mxu0  ;;  %v2343_v24 = vpop.f32.mrb[34].mxu1  ;;  %v2435_v38 = vadd.f32 %v2298_v17, %v3932_v59  ;;  %v2437_v61 = vadd.f32 %v2341_v21, %v3939_v1  ;;  %v2434_v1 = vadd.f32 %v2296_v12, %v3929_v58  ;;  %v3478_v12 = vld [vmem:[%s3871_s18 + $0x4] sm:$0xf]  ;;  %s3060_s18 = sshll.u32 %s3867_s15, 4 }
 0x553   : > { %v2302_v28 = vpop.f32.mrb[35].mxu0  ;;  %v2345_v31 = vpop.f32.mrb[35].mxu1  ;;  %v2442_v6 = vadd.f32 %v2300_v22, %v3998_v41  ;;  %v2444_v42 = vadd.f32 %v2343_v24, %v4005_v50  ;;  %v3480_v17 = vld [vmem:[%s4028_s26 + $0x4] sm:$0xf]  ;;  %s384_s17 = scalar_lea.vmem [#allocation8], %s3060_s18 }
 0x554   : > { %v3285_v58 = vpack.c.bf16 %v2434_v1, %v2434_v1  ;;  %v2443_v5 = vadd.f32 %v2302_v28, %v3979_v39  ;;  %v2445_v43 = vadd.f32 %v2345_v31, %v3988_v47  ;;  %s2932_s16 = sshll.u32 %s384_s17, 4  ;;  %s4455_s16 = int_to_ptr.vmem [resolvable:$true] %s2932_s16 }
 0x555   : > { %v3289_v39 = vpack.c.bf16 %v2442_v6, %v2442_v6  ;;  %v3291_v47 = vpack.c.bf16 %v2444_v42, %v2444_v42  ;;  %s3567_s25 = scalar_lea.vmem %s4455_s16, 256 }
 0x556   : > { %v2683_v52 = vsel %vm846_vm1, %v3285_v58, 0  ;;  %v3290_v63 = vpack.c.bf16 %v2443_v5, %v2443_v5  ;;  %v3292_v11 = vpack.c.bf16 %v2445_v43, %v2445_v43  ;;  %p3568_p0 = scmp.ne.s32.totalorder %s4455_s16, %s3567_s25 }
 0x557   : > { %v2781_v41 = vsel %vm846_vm1, %v3289_v39, 0  ;;  %v2787_v50 = vsel %vm846_vm1, %v3291_v47, 0 }
 0x558   : > { %p3569_p3 = pnand %p3568_p0, %p4677_p1 }
 0x55a   : > { %p3570_p7 = pneg %p3569_p3 }
 0x570   : > { %v2382_v35 = vpop.f32.mrb[36].mxu0  ;;  %v2425_v46 = vpop.f32.mrb[36].mxu1 }
 0x571   : > { %v2438_v45 = vadd.f32 %v2382_v35, %v4673_v37  ;;  %v2440_v49 = vadd.f32 %v2425_v46, %v4674_v51  ;;  %v2384_v33 = vpop.f32.mrb[37].mxu0  ;;  %v2427_v44 = vpop.f32.mrb[37].mxu1 }
 0x572   : > { %v2439_v16 = vadd.f32 %v2384_v33, %v4675_v62  ;;  %v2441_v26 = vadd.f32 %v2427_v44, %v4676_v30  ;;  %v2386_v55 = vpop.f32.mrb[38].mxu0  ;;  %v2429_v36 = vpop.f32.mrb[38].mxu1 }
 0x573   : > { %v3277_v29 = vpack.c.bf16 %v2438_v45, %v2438_v45  ;;  %v3279_v8 = vpack.c.bf16 %v2440_v49, %v2440_v49  ;;  %v2446_v18 = vadd.f32 %v2386_v55, %v3944_v4  ;;  %v2448_v25 = vadd.f32 %v2429_v36, %v3948_v9  ;;  %v2388_v0 = vpop.f32.mrb[39].mxu0  ;;  %v2431_v19 = vpop.f32.mrb[39].mxu1 }
 0x574   : > { %v3278_v57 = vpack.c.bf16 %v2439_v16, %v2439_v16  ;;  %v3280_v60 = vpack.c.bf16 %v2441_v26, %v2441_v26  ;;  %v2447_v54 = vadd.f32 %v2388_v0, %v3950_v10  ;;  %v2449_v59 = vadd.f32 %v2431_v19, %v3954_v14 }
 0x575   : > { %v2487_v3 = vsel %vm846_vm1, %v3277_v29, 0  ;;  %v2493_v53 = vsel %vm846_vm1, %v3279_v8, 0  ;;  %v3281_v27 = vpack.c.bf16 %v2446_v18, %v2446_v18  ;;  %v3283_v23 = vpack.c.bf16 %v2448_v25, %v2448_v25 }
 0x576   : > { %v3282_v4 = vpack.c.bf16 %v2447_v54, %v2447_v54  ;;  %v3284_v15 = vpack.c.bf16 %v2449_v59, %v2449_v59  ;;  %3211 = vmatprep.subr.msk.bf16.mxu0 %vm846_vm1, %v3278_v57  ;;  %3213 = vmatprep.subr.msk.bf16.mxu1 %vm846_vm1, %v3280_v60  ;;  %v2436_v9 = vadd.f32 %v2339_v13, %v3959_v20  ;;  %v3479_v13 = vld [vmem:[%s4028_s26] sm:$0xf]  ;;  %s3571_s26 = sshll.u32 %s3647_s9, 4  ;;  %s3572_s26 = int_to_ptr.vmem [resolvable:$false] %s3571_s26 }
 0x577   : > { %2499 = vmatpush1.bf16.msra.mxu0 %v2487_v3  ;;  %2540 = vmatpush1.bf16.msra.mxu1 %v2493_v53  ;;  %v3286_v10 = vpack.c.bf16 %v2435_v38, %v2435_v38  ;;  %v3288_v14 = vpack.c.bf16 %v2437_v61, %v2437_v61  ;;  %v2585_v34 = vsel %vm846_vm1, %v3281_v27, 0  ;;  %v2591_v2 = vsel %vm846_vm1, %v3283_v23, 0  ;;  %s3573_s13 = scalar_lea.vmem %s3572_s26, 512  ;;  %p3574_p9 = scmp.lt.s32.totalorder %s4455_s16, %s3572_s26 }
 0x578   : > { %3219 = vmatprep.subr.msk.bf16.mxu0 %vm846_vm1, %v3282_v4  ;;  %3221 = vmatprep.subr.msk.bf16.mxu1 %vm846_vm1, %v3284_v15  ;;  %v3287_v20 = vpack.c.bf16 %v2436_v9, %v2436_v9  ;;  %p3575_p12 = scmp.lt.s32.totalorder %s3573_s13, %s3567_s25 }
 0x57a   : > { %3212 = vmatmul.mubr.msk.bf16.vlgmr.msra.gmra.mrb[40].mxu0 %vm842_vm2, %v3477_v56  ;;  %3214 = vmatmul.mubr.msk.bf16.vlgmr.msra.gmra.mrb[40].mxu1 %vm842_vm2, %v3477_v56  ;;  %v2689_v48 = vsel %vm846_vm1, %v3287_v20, 0  ;;  %p3576_p2 = por %p3575_p12, %p3574_p9 }
 0x57b   : > { %2597 = vmatpush1.bf16.msra.mxu0 %v2585_v34  ;;  %2638 = vmatpush1.bf16.msra.mxu1 %v2591_v2 }
 0x57c   : > { %3227 = vmatprep.subr.msk.bf16.mxu0 %vm846_vm1, %v3286_v10  ;;  %3229 = vmatprep.subr.msk.bf16.mxu1 %vm846_vm1, %v3288_v14  ;;  %p3577_p13 = pnand %p3576_p2, %p3570_p7 }
 0x57d   : > { %2628 = vmatprep.mubr.bf16.mxu0 %v4603_v40  ;;  %2669 = vmatprep.mubr.bf16.mxu1 %v4603_v40 }
 0x582   : > { %3220 = vmatmul.mubr.msk.bf16.vlgmr.msra.gmra.mrb[44].mxu0 %vm842_vm2, %v3478_v12  ;;  %3222 = vmatmul.mubr.msk.bf16.vlgmr.msra.gmra.mrb[44].mxu1 %vm842_vm2, %v3478_v12 }
 0x583   : > { %2695 = vmatpush1.bf16.msra.mxu0 %v2683_v52  ;;  %2736 = vmatpush1.bf16.msra.mxu1 %v2689_v48 }
 0x584   : > { %3235 = vmatprep.subr.msk.bf16.mxu0 %vm846_vm1, %v3290_v63  ;;  %3237 = vmatprep.subr.msk.bf16.mxu1 %vm846_vm1, %v3292_v11 }
 0x585   : > { %2726 = vmatprep.mubr.bf16.mxu0 %v4603_v40  ;;  %2767 = vmatprep.mubr.bf16.mxu1 %v4603_v40 }
 0x58a   : > { %3228 = vmatmul.mubr.msk.bf16.vlgmr.msra.gmra.mrb[40].mxu0 %vm842_vm2, %v3479_v13  ;;  %3230 = vmatmul.mubr.msk.bf16.vlgmr.msra.gmra.mrb[40].mxu1 %vm842_vm2, %v3479_v13 }
 0x58b   : > { %2793 = vmatpush1.bf16.msra.mxu0 %v2781_v41  ;;  %2834 = vmatpush1.bf16.msra.mxu1 %v2787_v50 }
 0x58c   : > { %2824 = vmatprep.mubr.bf16.mxu0 %v4603_v40  ;;  %2865 = vmatprep.mubr.bf16.mxu1 %v4603_v40 }
 0x592   : > { %3236 = vmatmul.mubr.msk.bf16.vlgmr.msra.gmra.mrb[44].mxu0 %vm842_vm2, %v3480_v17  ;;  %3238 = vmatmul.mubr.msk.bf16.vlgmr.msra.gmra.mrb[44].mxu1 %vm842_vm2, %v3480_v17 }
 0x65d   : > { %v2728_v21 = vpop.f32.mrb[40].mxu0  ;;  %v2769_v22 = vpop.f32.mrb[40].mxu1 }
 0x65e   : > { %v2874_v24 = vmul.f32 0.5, %v2728_v21  ;;  %v2876_v28 = vmul.f32 0.5, %v2769_v22  ;;  %v2730_v31 = vpop.f32.mrb[41].mxu0  ;;  %v2771_v35 = vpop.f32.mrb[41].mxu1 }
 0x65f   : > { %v2877_v46 = vmul.f32 0.5, %v2771_v35  ;;  %v2732_v37 = vpop.f32.mrb[42].mxu0  ;;  %v2773_v45 = vpop.f32.mrb[42].mxu1  ;;  %v2875_v18 = vmul.f32 0.5, %v2730_v31 }
 0x660   : > { %3457 = vtanh.f32 %v2874_v24  ;;  %v2733_v51 = vpop.f32.mrb[43].mxu0  ;;  %v2774_v49 = vpop.f32.mrb[43].mxu1 }
 0x661   : > { %3459 = vtanh.f32 %v2876_v28 }
 0x662   : > { %3461 = vtanh.f32 %v2877_v46 }
 0x665   : > { %v2826_v40 = vpop.f32.mrb[44].mxu0  ;;  %v2867_v33 = vpop.f32.mrb[44].mxu1 }
 0x666   : > { %v2878_v44 = vmul.f32 0.5, %v2826_v40  ;;  %v2880_v38 = vmul.f32 0.5, %v2867_v33  ;;  %v2828_v62 = vpop.f32.mrb[45].mxu0  ;;  %v2869_v16 = vpop.f32.mrb[45].mxu1 }
 0x667   : > { %v2881_v30 = vmul.f32 0.5, %v2869_v16  ;;  %v2830_v26 = vpop.f32.mrb[46].mxu0  ;;  %v2871_v55 = vpop.f32.mrb[46].mxu1  ;;  %v2879_v53 = vmul.f32 0.5, %v2828_v62 }
 0x668   : > { %3463 = vtanh.f32 %v2878_v44  ;;  %v2831_v36 = vpop.f32.mrb[47].mxu0  ;;  %v2872_v29 = vpop.f32.mrb[47].mxu1 }
 0x669   : > { %3465 = vtanh.f32 %v2880_v38 }
 0x66a   : > { %v3458_v8 = vpop.eup %3457  ;;  %3467 = vtanh.f32 %v2881_v30 }
 0x66b   : > { %v3460_v25 = vpop.eup %3459  ;;  %v2890_v0 = vmul.f32 0.5, %v3458_v8  ;;  %3469 = vtanh.f32 %v2875_v18 }
 0x66c   : > { %v2892_v19 = vmul.f32 0.5, %v3460_v25  ;;  %v3462_v57 = vpop.eup %3461  ;;  %3471 = vtanh.f32 %v2879_v53 }
 0x66d   : > { %v2898_v60 = vadd.f32 0.5, %v2890_v0  ;;  %v2893_v59 = vmul.f32 0.5, %v3462_v57 }
 0x66e   : > { %v2900_v54 = vadd.f32 0.5, %v2892_v19 }
 0x66f   : > { %v2901_v3 = vadd.f32 0.5, %v2893_v59 }
 0x670   : > { %v2906_v61 = vmul.f32 %v2900_v54, %v4355_v7 }
 0x671   : > { %v2908_v23 = vmul.f32 %v2901_v3, %v2898_v60 }
 0x672   : > { %v3464_v27 = vpop.eup %3463 }
 0x673   : > { %v3466_v4 = vpop.eup %3465  ;;  %v2894_v15 = vmul.f32 0.5, %v3464_v27  ;;  %v2910_v1 = vadd.f32 %v2908_v23, %v2906_v61 }
 0x674   : > { %v2896_v9 = vmul.f32 0.5, %v3466_v4  ;;  %v3468_v10 = vpop.eup %3467 }
 0x675   : > { %3473 = vtanh.f32 %v2910_v1  ;;  %v2902_v14 = vadd.f32 0.5, %v2894_v15  ;;  %v2897_v2 = vmul.f32 0.5, %v3468_v10  ;;  %v3470_v56 = vpop.eup %3469 }
 0x676   : > { %v2904_v34 = vadd.f32 0.5, %v2896_v9  ;;  %v2891_v5 = vmul.f32 0.5, %v3470_v56  ;;  %v3472_v6 = vpop.eup %3471 }
 0x677   : > { %v2905_v7 = vadd.f32 0.5, %v2897_v2  ;;  %v2895_v63 = vmul.f32 0.5, %v3472_v6 }
 0x678   : > { %v2907_v58 = vmul.f32 %v2904_v34, %v4359_v32  ;;  %v2899_v42 = vadd.f32 0.5, %v2891_v5 }
 0x679   : > { %v2909_v20 = vmul.f32 %v2905_v7, %v2902_v14  ;;  %v2903_v11 = vadd.f32 0.5, %v2895_v63 }
 0x67b   : > { %v2911_v43 = vadd.f32 %v2909_v20, %v2907_v58 }
 0x67d   : > { %3475 = vtanh.f32 %v2911_v43 }
 0x67f   : > { %v3474_v52 = vpop.eup %3473 }
 0x680   : > { %v2914_v48 = vmul.f32 %v3474_v52, %v2899_v42 }
 0x682   : > { %2916 = vst [vmem:[%s384_s17] sm:$0xff] %v2914_v48 }
 0x687   : > { %v3476_v12 = vpop.eup %3475 }
 0x688   : > { %v2915_v32 = vmul.f32 %v3476_v12, %v2903_v11 }
 0x68a   : > { %2917 = vst [vmem:[%s384_s17 + $0x8] sm:$0xff] %v2915_v32 }
 0x68b   : > { %3580 = shalt.err (!%p3577_p13)
}
 0x68c   : > { %s3581_s11 = scalar_lea.hbm %s4453_s10, 256  ;;  %s3585_s19 = scalar_lea.hbm %s4507_s8, 512 }
 0x68d   : > { %p3582_p6 = scmp.ne.s32.totalorder %s4453_s10, %s3581_s11  ;;  %p3586_p5 = scmp.lt.u32.totalorder %s4453_s10, %s4507_s8 }
 0x68e   : > { %p3587_p8 = scmp.lt.u32.totalorder %s3585_s19, %s3581_s11  ;;  %p3589_p0 = scmp.lt.u32.totalorder %s3581_s11, %s4453_s10 }
 0x68f   : > { %p3583_p10 = pnand %p3582_p6, %p4677_p1 }
 0x690   : > { %p3588_p11 = por %p3587_p8, %p3586_p5 }
 0x691   : > { %p3584_p4 = pneg %p3583_p10 }
 0x692   : > { %p3590_p3 = por %p3589_p0, %p3588_p11 }
 0x694   : > { %p3591_p7 = pnand %p3590_p3, %p3584_p4 }
 0x696   : > { %3594 = shalt.err (!%p3591_p7)
}
 0x697   : > { %s3648_s25 = smov 128   ;;  %s3649_s9 = smov 8  }
 0x698   : > { %3352 = dma.vmem_to_hbm [thread:$0]  (%p4677_p1), %s4455_s16, 256, %s4453_s10, %s2919_s24, %s3648_s25, %s3648_s25, %s3649_s9  }
 0x699 PF: > { %s2947_s26 = sand.u32 1, %s3625_s27   ;;  %p4678_p9 = scmp.ne.s32.totalorder %s4565_s12, 0 }
 0x69a   : > { %p4679_p12 = scmp.ge.s32.totalorder %s3637_s30, 2  ;;  %s2948_s13 = scalar_lea.sflag [#allocation4], %s2947_s26 }
 0x69c   : > { %p3366_p2 = pnand %p4679_p12, %p4678_p9 }
 0x69e   : > { %3620 = dma.done.wait (!%p3366_p2), %s2948_s13, 256  }
 0x69f   : > { %3622 = vsyncadd (!%p3366_p2), %s2948_s13, 4294967040  ;;  %p22_p13 = scmp.ge.s32.totalorder %s3805_s20, 4   ;;  %s4680_s27 = smov %s3629_s28 }
 0x6a0   : > { %s4681_s28 = smov %s3633_s29  ;;  %s4682_s29 = smov %s3821_s23 }
 0x6a1   : > { %s4683_s30 = smov %s3805_s20  ;;  %24 = sbr.rel (!%p22_p13) target bundleno = 6 (0x6), region = 111 }
 0x6a8   :  { %2953 = vsyncpa [#allocation3], 1 }
 0x6a9   :  { %2955 = vsyncpa [#allocation3 + $0x1], 1 }
 0x6aa   :  { %2956 = vsyncpa [#allocation6], 1 }
 0x6ab   :  { %2957 = vsyncpa [#allocation4], 1 }
 0x6ac   :  { %2959 = vsyncpa [#allocation4 + $0x1], 1 }

</bundles_post_ra>
